<compile_context>
chip_gen: v7x
topology: tpu7x:2x2x1
jax: 0.10.0
libtpu: 0.0.40
codegen_flags: <defaults>
</compile_context>

<pallas_src>
import functools

import jax
import jax.numpy as jnp
from jax.experimental import pallas as pl
from jax.experimental.pallas import tpu as pltpu

LANES = 128  # channel padding target (TPU lane width)


def _round_up(v, m):
    return (v + m - 1) // m * m


# ----------------------------------------------------------------------------
# Fused Pallas kernel: one grid step = one conv layer of one image.
#   grid = (N, n_layers); batch axis 'parallel', layer axis 'arbitrary'.
# ----------------------------------------------------------------------------
def _fused_ae_kernel(x_ref, w_ref, b_ref, m_ref, o_ref, act_ref, *,
                     n_enc, n_layers, pitch, rows, margin):
    """
    x_ref   : (1, rows, 128)       bf16  padded-image slab (gutter rows zero)
    w_ref   : (1, 9, 128, 128)     bf16  this layer's weights, one (cin,cout)
                                         block per 3x3 tap (channels 0-padded)
    b_ref   : (1, 1, 128)          f32   this layer's bias (0-padded)
    m_ref   : (rows, 1)            f32   1.0 on interior (real-pixel) rows
    o_ref   : (1, rows, 128)       f32   output slab (written at last layer)
    act_ref : (rows+2*margin, 128) bf16  persistent activation scratch
    """
    l = pl.program_id(1)

    # First layer of this image: zero only the margins (interior rows are
    # rewritten every layer; margins never are) and load the input slab.
    @pl.when(l == 0)
    def _init():
        act_ref[:margin, :] = jnp.zeros((margin, LANES), act_ref.dtype)
        act_ref[margin + rows:, :] = jnp.zeros((margin, LANES), act_ref.dtype)
        act_ref[margin:margin + rows, :] = x_ref[0]

    # 3x3 SAME conv as nine per-tap K=128 matmuls accumulated in f32.  The
    # activation slab has zero gutter rows/cols, so shifted reads implicitly
    # provide the SAME zero-padding: no im2col patch, no tap-validity mask.
    taps = [(ky - 1) * pitch + (kx - 1) for ky in range(3) for kx in range(3)]
    acc = jnp.zeros((rows, LANES), jnp.float32)
    for t, d in enumerate(taps):
        shifted = act_ref[margin + d:margin + d + rows, :]        # (rows, 128)
        acc = acc + jnp.dot(shifted, w_ref[0, t],
                            preferred_element_type=jnp.float32)
    acc = acc + b_ref[0]                                          # (1,128) bcast

    # relu on hidden layers; sigmoid on the latent layer and the output layer.
    is_sigmoid = jnp.logical_or(l == n_enc - 1, l == n_layers - 1)
    out = jnp.where(is_sigmoid, jax.nn.sigmoid(acc), jnp.maximum(acc, 0.0))

    @pl.when(l < n_layers - 1)
    def _store_act():
        # Re-zero gutter/pad rows (conv + bias + activation makes them nonzero)
        # so the next layer keeps seeing implicit SAME zero-padding.
        act_ref[margin:margin + rows, :] = (out * m_ref[...]).astype(act_ref.dtype)

    @pl.when(l == n_layers - 1)
    def _store_out():
        o_ref[0] = out            # gutter rows are sliced off in the wrapper


# ----------------------------------------------------------------------------
# Wrapper-side packing (plain XLA ops).
# ----------------------------------------------------------------------------
def _pack_conv_stack(params, C=LANES):
    """Pad every conv to 128 in/out channels; (L, 9, 128, 128) per-tap blocks."""
    convs = list(params["enc"]) + list(params["dec"])
    w_list, b_list = [], []
    for w, b in convs:
        cin, cout = w.shape[2], w.shape[3]
        assert cin <= C and cout <= C
        wp = jnp.zeros((3, 3, C, C), jnp.float32).at[:, :, :cin, :cout].set(w)
        w_list.append(wp.reshape(9, C, C))
        b_list.append(jnp.zeros((1, C), jnp.float32).at[0, :cout].set(b))
    return (jnp.stack(w_list).astype(jnp.bfloat16),   # (L, 9, 128, 128) bf16
            jnp.stack(b_list))                        # (L, 1, 128)      f32


def _interior_row_mask(H, W, rows):
    """(rows, 1) f32: 1.0 where the padded-layout row is a real image pixel."""
    Pw = W + 2
    p = jnp.arange(rows)
    r, c = p // Pw, p % Pw
    valid = (p < (H + 2) * Pw) & (r >= 1) & (r <= H) & (c >= 1) & (c <= W)
    return valid.astype(jnp.float32)[:, None]


# ----------------------------------------------------------------------------
# Parameter construction (deterministic, synthetic — no checkpoint loading)
# ----------------------------------------------------------------------------
def _init_conv(key, cin, cout):
    kw, _ = jax.random.split(key)
    scale = jnp.sqrt(2.0 / (9.0 * cin)).astype(jnp.float32)
    w = jax.random.normal(kw, (3, 3, cin, cout), dtype=jnp.float32) * scale
    b = jnp.zeros((cout,), dtype=jnp.float32)
    return w, b


def build_autoencoder_params(key, in_chn, latent_bits, layers):
    enc_chans = [in_chn] + list(layers) + [latent_bits]
    dec_chans = [latent_bits] + list(layers)[::-1] + [in_chn]
    params = {"enc": [], "dec": []}
    for cin, cout in zip(enc_chans[:-1], enc_chans[1:]):
        key, sub = jax.random.split(key)
        params["enc"].append(_init_conv(sub, cin, cout))
    for cin, cout in zip(dec_chans[:-1], dec_chans[1:]):
        key, sub = jax.random.split(key)
        params["dec"].append(_init_conv(sub, cin, cout))
    return params


# ----------------------------------------------------------------------------
# Forward pass (mirrors AutoEncoder.forward = decode(encode(X)))
# ----------------------------------------------------------------------------
@jax.jit
def autoencoder_forward(params, x_nchw):
    N, Cin, H, W = x_nchw.shape
    C = LANES
    Ph, Pw = H + 2, W + 2
    rows_img = Ph * Pw                      # rows per zero-gutter padded image
    rows = _round_up(rows_img, 8)           # pad to sublane multiple
    margin = _round_up(Pw + 1, 8)           # covers the largest 3x3 tap shift
    assert margin % 8 == 0 and margin >= Pw + 1, (margin, Pw)
    assert rows % 8 == 0

    n_enc, n_dec = len(params["enc"]), len(params["dec"])
    n_layers = n_enc + n_dec

    w_all, b_all = _pack_conv_stack(params, C)
    rowmask = _interior_row_mask(H, W, rows)

    # NCHW -> NHWC, explicit 1-pixel zero border (becomes the implicit SAME
    # padding inside the kernel), channels 0-padded to 128 lanes, rows padded
    # to a multiple of 8 sublanes.
    x_nhwc = jnp.transpose(x_nchw, (0, 2, 3, 1))
    x_pad = jnp.pad(x_nhwc, ((0, 0), (1, 1), (1, 1), (0, C - Cin)))
    x_slab = x_pad.reshape(N, rows_img, C)
    x_slab = jnp.pad(x_slab, ((0, 0), (0, rows - rows_img), (0, 0)))
    x_slab = x_slab.astype(jnp.bfloat16)

    kernel = functools.partial(_fused_ae_kernel, n_enc=n_enc, n_layers=n_layers,
                               pitch=Pw, rows=rows, margin=margin)

    y_slab = pl.pallas_call(
        kernel,
        out_shape=jax.ShapeDtypeStruct((N, rows, C), jnp.float32),
        grid=(N, n_layers),
        in_specs=[
            pl.BlockSpec((1, rows, C), lambda b, l: (b, 0, 0)),     # input slab
            pl.BlockSpec((1, 9, C, C), lambda b, l: (l, 0, 0, 0)),  # layer weights
            pl.BlockSpec((1, 1, C), lambda b, l: (l, 0, 0)),        # layer bias
            pl.BlockSpec((rows, 1), lambda b, l: (0, 0)),           # interior mask
        ],
        out_specs=pl.BlockSpec((1, rows, C), lambda b, l: (b, 0, 0)),
        scratch_shapes=[
            pltpu.VMEM((rows + 2 * margin, C), jnp.bfloat16),       # activations
        ],
        compiler_params=pltpu.CompilerParams(
            dimension_semantics=("parallel", "arbitrary"),
        ),
    )(x_slab, w_all, b_all, rowmask)

    # Back to PyTorch NCHW; drop row padding, gutters and channel padding.
    y = y_slab[:, :rows_img, :].reshape(N, Ph, Pw, C)[:, 1:H + 1, 1:W + 1, :Cin]
    return jnp.transpose(y, (0, 3, 1, 2))


# ----------------------------------------------------------------------------
# Pure-JAX f32 reference (same math as the PyTorch module's forward).
# ----------------------------------------------------------------------------
def reference_forward(params, x_nchw):
    convs = list(params["enc"]) + list(params["dec"])
    n_enc = len(params["enc"])
    x = jnp.transpose(x_nchw, (0, 2, 3, 1))
    for i, (w, b) in enumerate(convs):
        x = jax.lax.conv_general_dilated(
            x, w, window_strides=(1, 1), padding="SAME",
            dimension_numbers=("NHWC", "HWIO", "NHWC")) + b
        if i == n_enc - 1 or i == len(convs) - 1:
            x = jax.nn.sigmoid(x)
        else:
            x = jnp.maximum(x, 0.0)
    return jnp.transpose(x, (0, 3, 1, 2))


if __name__ == "__main__":
    key = jax.random.PRNGKey(0)
    k_params, k_x = jax.random.split(key)

    in_chn = 4
    latent_bits = 8
    layers = [32 * i for i in range(1, 3 + 1)]   # layers=3 -> [32, 64, 96]

    params = build_autoencoder_params(k_params, in_chn, latent_bits, layers)

    # Small NCHW input consistent with the module: (batch=2, in_chn=4, 16, 16)
    x = jax.random.normal(k_x, (2, in_chn, 16, 16), dtype=jnp.float32)

    y = autoencoder_forward(params, x)
    jax.block_until_ready(y)

    assert y.shape == x.shape, (y.shape, x.shape)
    assert y.dtype == jnp.float32
    # Final layer is a sigmoid -> reconstruction must lie in [0, 1].
    assert bool(jnp.all((y >= 0.0) & (y <= 1.0)))

    # Numerical agreement with the f32 reference (bf16 MXU feed, f32 accum).
    y_ref = reference_forward(params, x)
    max_err = float(jnp.max(jnp.abs(y - y_ref)))
    assert max_err < 5e-2, f"max abs error vs reference: {max_err}"

    print("KERNEL_OK")
</pallas_src>

<mosaic_0001>
module attributes {stable_mosaic.version = 11 : i64} {
  func.func @_fused_ae_kernel(%arg0: i32, %arg1: i32, %arg2: memref<1x328x128xbf16, #tpu.memory_space<vmem>>, %arg3: memref<1x9x128x128xbf16, #tpu.memory_space<vmem>>, %arg4: memref<1x1x128xf32, #tpu.memory_space<vmem>>, %arg5: memref<328x1xf32, #tpu.memory_space<vmem>>, %arg6: memref<1x328x128xf32, #tpu.memory_space<vmem>>, %arg7: memref<376x128xbf16, #tpu.memory_space<vmem>>) attributes {dimension_semantics = [#tpu.dimension_semantics<parallel>, #tpu.dimension_semantics<arbitrary>], iteration_bounds = array<i64: 2, 8>, scalar_prefetch = 0 : i64, scratch_operands = 1 : i64, tpu.core_type = #tpu.core_type<tc>, window_params = [{transform_indices = @transform_0, window_bounds = array<i64: 1, 328, 128>}, {transform_indices = @transform_1, window_bounds = array<i64: 1, 9, 128, 128>}, {transform_indices = @transform_2, window_bounds = array<i64: 1, 1, 128>}, {pipeline_mode = #tpu.pipeline_mode<synchronous>, transform_indices = @transform_3, window_bounds = array<i64: 328, 1>}, {transform_indices = @transform_4, window_bounds = array<i64: 1, 328, 128>}]} {
    %c0_i32 = arith.constant 0 : i32
    %0 = arith.cmpi eq, %arg1, %c0_i32 : i32
    %1 = arith.extui %0 : i1 to i32
    %c0_i32_0 = arith.constant 0 : i32
    %2 = arith.cmpi ne, %1, %c0_i32_0 : i32
    scf.if %2 {
      %cst_58 = arith.constant 0.000000e+00 : bf16
      %70 = vector.broadcast %cst_58 : bf16 to vector<24x128xbf16>
      %c0_59 = arith.constant 0 : index
      %c0_60 = arith.constant 0 : index
      %71 = vector.load %arg7[%c0_59, %c0_60] : memref<376x128xbf16, #tpu.memory_space<vmem>>, vector<24x128xbf16>
      tpu.vector_store %arg7[%c0_59, %c0_60], %70 {strides = array<i32>} : memref<376x128xbf16, #tpu.memory_space<vmem>>, vector<24x128xbf16>,
      %cst_61 = arith.constant 0.000000e+00 : bf16
      %72 = vector.broadcast %cst_61 : bf16 to vector<24x128xbf16>
      %c352 = arith.constant 352 : index
      %c0_62 = arith.constant 0 : index
      %73 = vector.load %arg7[%c352, %c0_62] : memref<376x128xbf16, #tpu.memory_space<vmem>>, vector<24x128xbf16>
      tpu.vector_store %arg7[%c352, %c0_62], %72 {strides = array<i32>} : memref<376x128xbf16, #tpu.memory_space<vmem>>, vector<24x128xbf16>,
      %c0_63 = arith.constant 0 : index
      %c0_64 = arith.constant 0 : index
      %c0_65 = arith.constant 0 : index
      %74 = vector.load %arg2[%c0_63, %c0_64, %c0_65] : memref<1x328x128xbf16, #tpu.memory_space<vmem>>, vector<1x328x128xbf16>
      %75 = vector.shape_cast %74 : vector<1x328x128xbf16> to vector<328x128xbf16>
      %c24_66 = arith.constant 24 : index
      %c0_67 = arith.constant 0 : index
      %76 = vector.load %arg7[%c24_66, %c0_67] : memref<376x128xbf16, #tpu.memory_space<vmem>>, vector<328x128xbf16>
      tpu.vector_store %arg7[%c24_66, %c0_67], %75 {strides = array<i32>} : memref<376x128xbf16, #tpu.memory_space<vmem>>, vector<328x128xbf16>,
    } else {
    }
    %cst = arith.constant 0.000000e+00 : f32
    %3 = vector.broadcast %cst : f32 to vector<328x128xf32>
    %c5 = arith.constant 5 : index
    %c0 = arith.constant 0 : index
    %4 = vector.load %arg7[%c5, %c0] : memref<376x128xbf16, #tpu.memory_space<vmem>>, vector<328x128xbf16>
    %c0_1 = arith.constant 0 : index
    %c0_2 = arith.constant 0 : index
    %c0_3 = arith.constant 0 : index
    %c0_4 = arith.constant 0 : index
    %5 = vector.load %arg3[%c0_1, %c0_2, %c0_3, %c0_4] : memref<1x9x128x128xbf16, #tpu.memory_space<vmem>>, vector<1x1x128x128xbf16>
    %6 = vector.shape_cast %5 : vector<1x1x128x128xbf16> to vector<128x128xbf16>
    %cst_5 = arith.constant dense<0.000000e+00> : vector<328x128xf32>
    %7 = tpu.matmul %4, %6, %cst_5 {dimension_numbers = #tpu.dot_dimension_numbers<[1], [0], [0], [1], [0, 0, 1, 1], [], []>} : vector<328x128xbf16>, vector<128x128xbf16>, vector<328x128xf32> -> vector<328x128xf32>
    %8 = arith.addf %3, %7 : vector<328x128xf32>
    %c6 = arith.constant 6 : index
    %c0_6 = arith.constant 0 : index
    %9 = vector.load %arg7[%c6, %c0_6] : memref<376x128xbf16, #tpu.memory_space<vmem>>, vector<328x128xbf16>
    %c0_7 = arith.constant 0 : index
    %c1 = arith.constant 1 : index
    %c0_8 = arith.constant 0 : index
    %c0_9 = arith.constant 0 : index
    %10 = vector.load %arg3[%c0_7, %c1, %c0_8, %c0_9] : memref<1x9x128x128xbf16, #tpu.memory_space<vmem>>, vector<1x1x128x128xbf16>
    %11 = vector.shape_cast %10 : vector<1x1x128x128xbf16> to vector<128x128xbf16>
    %cst_10 = arith.constant dense<0.000000e+00> : vector<328x128xf32>
    %12 = tpu.matmul %9, %11, %cst_10 {dimension_numbers = #tpu.dot_dimension_numbers<[1], [0], [0], [1], [0, 0, 1, 1], [], []>} : vector<328x128xbf16>, vector<128x128xbf16>, vector<328x128xf32> -> vector<328x128xf32>
    %13 = arith.addf %8, %12 : vector<328x128xf32>
    %c7 = arith.constant 7 : index
    %c0_11 = arith.constant 0 : index
    %14 = vector.load %arg7[%c7, %c0_11] : memref<376x128xbf16, #tpu.memory_space<vmem>>, vector<328x128xbf16>
    %c0_12 = arith.constant 0 : index
    %c2 = arith.constant 2 : index
    %c0_13 = arith.constant 0 : index
    %c0_14 = arith.constant 0 : index
    %15 = vector.load %arg3[%c0_12, %c2, %c0_13, %c0_14] : memref<1x9x128x128xbf16, #tpu.memory_space<vmem>>, vector<1x1x128x128xbf16>
    %16 = vector.shape_cast %15 : vector<1x1x128x128xbf16> to vector<128x128xbf16>
    %cst_15 = arith.constant dense<0.000000e+00> : vector<328x128xf32>
    %17 = tpu.matmul %14, %16, %cst_15 {dimension_numbers = #tpu.dot_dimension_numbers<[1], [0], [0], [1], [0, 0, 1, 1], [], []>} : vector<328x128xbf16>, vector<128x128xbf16>, vector<328x128xf32> -> vector<328x128xf32>
    %18 = arith.addf %13, %17 : vector<328x128xf32>
    %c23 = arith.constant 23 : index
    %c0_16 = arith.constant 0 : index
    %19 = vector.load %arg7[%c23, %c0_16] : memref<376x128xbf16, #tpu.memory_space<vmem>>, vector<328x128xbf16>
    %c0_17 = arith.constant 0 : index
    %c3 = arith.constant 3 : index
    %c0_18 = arith.constant 0 : index
    %c0_19 = arith.constant 0 : index
    %20 = vector.load %arg3[%c0_17, %c3, %c0_18, %c0_19] : memref<1x9x128x128xbf16, #tpu.memory_space<vmem>>, vector<1x1x128x128xbf16>
    %21 = vector.shape_cast %20 : vector<1x1x128x128xbf16> to vector<128x128xbf16>
    %cst_20 = arith.constant dense<0.000000e+00> : vector<328x128xf32>
    %22 = tpu.matmul %19, %21, %cst_20 {dimension_numbers = #tpu.dot_dimension_numbers<[1], [0], [0], [1], [0, 0, 1, 1], [], []>} : vector<328x128xbf16>, vector<128x128xbf16>, vector<328x128xf32> -> vector<328x128xf32>
    %23 = arith.addf %18, %22 : vector<328x128xf32>
    %c24 = arith.constant 24 : index
    %c0_21 = arith.constant 0 : index
    %24 = vector.load %arg7[%c24, %c0_21] : memref<376x128xbf16, #tpu.memory_space<vmem>>, vector<328x128xbf16>
    %c0_22 = arith.constant 0 : index
    %c4 = arith.constant 4 : index
    %c0_23 = arith.constant 0 : index
    %c0_24 = arith.constant 0 : index
    %25 = vector.load %arg3[%c0_22, %c4, %c0_23, %c0_24] : memref<1x9x128x128xbf16, #tpu.memory_space<vmem>>, vector<1x1x128x128xbf16>
    %26 = vector.shape_cast %25 : vector<1x1x128x128xbf16> to vector<128x128xbf16>
    %cst_25 = arith.constant dense<0.000000e+00> : vector<328x128xf32>
    %27 = tpu.matmul %24, %26, %cst_25 {dimension_numbers = #tpu.dot_dimension_numbers<[1], [0], [0], [1], [0, 0, 1, 1], [], []>} : vector<328x128xbf16>, vector<128x128xbf16>, vector<328x128xf32> -> vector<328x128xf32>
    %28 = arith.addf %23, %27 : vector<328x128xf32>
    %c25 = arith.constant 25 : index
    %c0_26 = arith.constant 0 : index
    %29 = vector.load %arg7[%c25, %c0_26] : memref<376x128xbf16, #tpu.memory_space<vmem>>, vector<328x128xbf16>
    %c0_27 = arith.constant 0 : index
    %c5_28 = arith.constant 5 : index
    %c0_29 = arith.constant 0 : index
    %c0_30 = arith.constant 0 : index
    %30 = vector.load %arg3[%c0_27, %c5_28, %c0_29, %c0_30] : memref<1x9x128x128xbf16, #tpu.memory_space<vmem>>, vector<1x1x128x128xbf16>
    %31 = vector.shape_cast %30 : vector<1x1x128x128xbf16> to vector<128x128xbf16>
    %cst_31 = arith.constant dense<0.000000e+00> : vector<328x128xf32>
    %32 = tpu.matmul %29, %31, %cst_31 {dimension_numbers = #tpu.dot_dimension_numbers<[1], [0], [0], [1], [0, 0, 1, 1], [], []>} : vector<328x128xbf16>, vector<128x128xbf16>, vector<328x128xf32> -> vector<328x128xf32>
    %33 = arith.addf %28, %32 : vector<328x128xf32>
    %c41 = arith.constant 41 : index
    %c0_32 = arith.constant 0 : index
    %34 = vector.load %arg7[%c41, %c0_32] : memref<376x128xbf16, #tpu.memory_space<vmem>>, vector<328x128xbf16>
    %c0_33 = arith.constant 0 : index
    %c6_34 = arith.constant 6 : index
    %c0_35 = arith.constant 0 : index
    %c0_36 = arith.constant 0 : index
    %35 = vector.load %arg3[%c0_33, %c6_34, %c0_35, %c0_36] : memref<1x9x128x128xbf16, #tpu.memory_space<vmem>>, vector<1x1x128x128xbf16>
    %36 = vector.shape_cast %35 : vector<1x1x128x128xbf16> to vector<128x128xbf16>
    %cst_37 = arith.constant dense<0.000000e+00> : vector<328x128xf32>
    %37 = tpu.matmul %34, %36, %cst_37 {dimension_numbers = #tpu.dot_dimension_numbers<[1], [0], [0], [1], [0, 0, 1, 1], [], []>} : vector<328x128xbf16>, vector<128x128xbf16>, vector<328x128xf32> -> vector<328x128xf32>
    %38 = arith.addf %33, %37 : vector<328x128xf32>
    %c42 = arith.constant 42 : index
    %c0_38 = arith.constant 0 : index
    %39 = vector.load %arg7[%c42, %c0_38] : memref<376x128xbf16, #tpu.memory_space<vmem>>, vector<328x128xbf16>
    %c0_39 = arith.constant 0 : index
    %c7_40 = arith.constant 7 : index
    %c0_41 = arith.constant 0 : index
    %c0_42 = arith.constant 0 : index
    %40 = vector.load %arg3[%c0_39, %c7_40, %c0_41, %c0_42] : memref<1x9x128x128xbf16, #tpu.memory_space<vmem>>, vector<1x1x128x128xbf16>
    %41 = vector.shape_cast %40 : vector<1x1x128x128xbf16> to vector<128x128xbf16>
    %cst_43 = arith.constant dense<0.000000e+00> : vector<328x128xf32>
    %42 = tpu.matmul %39, %41, %cst_43 {dimension_numbers = #tpu.dot_dimension_numbers<[1], [0], [0], [1], [0, 0, 1, 1], [], []>} : vector<328x128xbf16>, vector<128x128xbf16>, vector<328x128xf32> -> vector<328x128xf32>
    %43 = arith.addf %38, %42 : vector<328x128xf32>
    %c43 = arith.constant 43 : index
    %c0_44 = arith.constant 0 : index
    %44 = vector.load %arg7[%c43, %c0_44] : memref<376x128xbf16, #tpu.memory_space<vmem>>, vector<328x128xbf16>
    %c0_45 = arith.constant 0 : index
    %c8 = arith.constant 8 : index
    %c0_46 = arith.constant 0 : index
    %c0_47 = arith.constant 0 : index
    %45 = vector.load %arg3[%c0_45, %c8, %c0_46, %c0_47] : memref<1x9x128x128xbf16, #tpu.memory_space<vmem>>, vector<1x1x128x128xbf16>
    %46 = vector.shape_cast %45 : vector<1x1x128x128xbf16> to vector<128x128xbf16>
    %cst_48 = arith.constant dense<0.000000e+00> : vector<328x128xf32>
    %47 = tpu.matmul %44, %46, %cst_48 {dimension_numbers = #tpu.dot_dimension_numbers<[1], [0], [0], [1], [0, 0, 1, 1], [], []>} : vector<328x128xbf16>, vector<128x128xbf16>, vector<328x128xf32> -> vector<328x128xf32>
    %48 = arith.addf %43, %47 : vector<328x128xf32>
    %c0_49 = arith.constant 0 : index
    %c0_50 = arith.constant 0 : index
    %c0_51 = arith.constant 0 : index
    %49 = vector.load %arg4[%c0_49, %c0_50, %c0_51] : memref<1x1x128xf32, #tpu.memory_space<vmem>>, vector<1x1x128xf32>
    %50 = vector.shape_cast %49 : vector<1x1x128xf32> to vector<1x128xf32>
    %51 = vector.broadcast %50 : vector<1x128xf32> to vector<328x128xf32>
    %52 = arith.addf %48, %51 : vector<328x128xf32>
    %c3_i32 = arith.constant 3 : i32
    %53 = arith.cmpi eq, %arg1, %c3_i32 : i32
    %c7_i32 = arith.constant 7 : i32
    %54 = arith.cmpi eq, %arg1, %c7_i32 : i32
    %55 = arith.ori %53, %54 : i1
    %56 = arith.negf %52 : vector<328x128xf32>
    %57 = math.exp %56 : vector<328x128xf32>
    %cst_52 = arith.constant 1.000000e+00 : f32
    %58 = vector.broadcast %cst_52 : f32 to vector<328x128xf32>
    %59 = arith.addf %58, %57 : vector<328x128xf32>
    %60 = arith.divf %58, %59 : vector<328x128xf32>
    %cst_53 = arith.constant 0.000000e+00 : f32
    %61 = vector.broadcast %cst_53 : f32 to vector<328x128xf32>
    %62 = arith.maximumf %52, %61 : vector<328x128xf32>
    %63 = arith.select %55, %60, %62 : vector<328x128xf32>
    %c7_i32_54 = arith.constant 7 : i32
    %64 = arith.cmpi slt, %arg1, %c7_i32_54 : i32
    %65 = arith.extui %64 : i1 to i32
    %c0_i32_55 = arith.constant 0 : i32
    %66 = arith.cmpi ne, %65, %c0_i32_55 : i32
    scf.if %66 {
      %c0_58 = arith.constant 0 : index
      %c0_59 = arith.constant 0 : index
      %70 = vector.load %arg5[%c0_58, %c0_59] : memref<328x1xf32, #tpu.memory_space<vmem>>, vector<328x1xf32>
      %71 = vector.broadcast %70 : vector<328x1xf32> to vector<328x128xf32>
      %72 = arith.mulf %63, %71 : vector<328x128xf32>
      %73 = arith.truncf %72 : vector<328x128xf32> to vector<328x128xbf16>
      %c24_60 = arith.constant 24 : index
      %c0_61 = arith.constant 0 : index
      %74 = vector.load %arg7[%c24_60, %c0_61] : memref<376x128xbf16, #tpu.memory_space<vmem>>, vector<328x128xbf16>
      tpu.vector_store %arg7[%c24_60, %c0_61], %73 {strides = array<i32>} : memref<376x128xbf16, #tpu.memory_space<vmem>>, vector<328x128xbf16>,
    } else {
    }
    %c7_i32_56 = arith.constant 7 : i32
    %67 = arith.cmpi eq, %arg1, %c7_i32_56 : i32
    %68 = arith.extui %67 : i1 to i32
    %c0_i32_57 = arith.constant 0 : i32
    %69 = arith.cmpi ne, %68, %c0_i32_57 : i32
    scf.if %69 {
      %c0_58 = arith.constant 0 : index
      %c0_59 = arith.constant 0 : index
      %c0_60 = arith.constant 0 : index
      %70 = vector.load %arg6[%c0_58, %c0_59, %c0_60] : memref<1x328x128xf32, #tpu.memory_space<vmem>>, vector<1x328x128xf32>
      %71 = vector.shape_cast %70 : vector<1x328x128xf32> to vector<328x128xf32>
      %72 = vector.shape_cast %63 : vector<328x128xf32> to vector<1x328x128xf32>
      tpu.vector_store %arg6[%c0_58, %c0_59, %c0_60], %72 {strides = array<i32>} : memref<1x328x128xf32, #tpu.memory_space<vmem>>, vector<1x328x128xf32>,
    } else {
    }
    return
  }
  func.func @transform_0(%arg0: i32, %arg1: i32) -> (i32, i32, i32) {
    %c0_i32 = arith.constant 0 : i32
    %c0_i32_0 = arith.constant 0 : i32
    %c0_i32_1 = arith.constant 0 : i32
    return %arg0, %c0_i32, %c0_i32_0 : i32, i32, i32
  }
  func.func @transform_1(%arg0: i32, %arg1: i32) -> (i32, i32, i32, i32) {
    %c0_i32 = arith.constant 0 : i32
    %c0_i32_0 = arith.constant 0 : i32
    %c0_i32_1 = arith.constant 0 : i32
    %c0_i32_2 = arith.constant 0 : i32
    return %arg1, %c0_i32, %c0_i32_0, %c0_i32_1 : i32, i32, i32, i32
  }
  func.func @transform_2(%arg0: i32, %arg1: i32) -> (i32, i32, i32) {
    %c0_i32 = arith.constant 0 : i32
    %c0_i32_0 = arith.constant 0 : i32
    %c0_i32_1 = arith.constant 0 : i32
    return %arg1, %c0_i32, %c0_i32_0 : i32, i32, i32
  }
  func.func @transform_3(%arg0: i32, %arg1: i32) -> (i32, i32) {
    %c0_i32 = arith.constant 0 : i32
    %c0_i32_0 = arith.constant 0 : i32
    %c0_i32_1 = arith.constant 0 : i32
    return %c0_i32, %c0_i32_0 : i32, i32
  }
  func.func @transform_4(%arg0: i32, %arg1: i32) -> (i32, i32, i32) {
    %c0_i32 = arith.constant 0 : i32
    %c0_i32_0 = arith.constant 0 : i32
    %c0_i32_1 = arith.constant 0 : i32
    return %arg0, %c0_i32, %c0_i32_0 : i32, i32, i32
  }
}

</mosaic_0001>

<bundles_post_ra>
// kernel: autoencoder_forward.1
= control target key start
LH: loop header
LB: loop body
LE: loop exit
PB: predicated region body
PF: predicated region fallthrough
CT: control target
= control target key end

     0   :  { %s8037_s15 = smov 0   ;;  %s8039_s16 = smov 0   ;;  %s10712_s0 = inlined_call_operand.vmem [shape: bf16[2,328,128], index: 0, kind: input, shape index: {}]   ;;  %s10713_s1 = inlined_call_operand.vmem [shape: bf16[8,9,128,128], index: 1, kind: input, shape index: {}]   ;;  %s10714_s2 = inlined_call_operand.vmem [shape: f32[8,1,128], index: 2, kind: input, shape index: {}]   ;;  %s10715_s3 = inlined_call_operand.vmem [shape: f32[328,1], index: 3, kind: input, shape index: {}]   ;;  %s10716_s4 = inlined_call_operand.vmem [shape: f32[2,328,128], index: 4, kind: output, shape index: {}]  }
   0x1   :  { %s8041_s17 = smov 0   ;;  %s8043_s18 = smov 0  }
   0x2   :  { %s8045_s19 = smov 0  }
   0x3 LB: > { %s23_s20 = sadd.s32 1, %s7998_s17  ;;  %s26_s21 = sadd.s32 1, %s8002_s18  ;;  %s8006_s19 = sphi %s8045_s19, %s14_s19   ;;  %s8002_s18 = sphi %s8043_s18, %s10928_s18   ;;  %s7998_s17 = sphi %s8041_s17, %s10927_s17   ;;  %s7994_s16 = sphi %s8039_s16, %s10926_s16   ;;  %s7990_s15 = sphi %s8037_s15, %s10925_s15  }
   0x4   : > { %p24_p0 = scmp.ge.s32.totalorder %s23_s20, 8  ;;  %p5820_p1 = scmp.ge.s32.totalorder %s8006_s19, 1 }
   0x5   : > { %p192_p2 = scmp.lt.s32.totalorder %s8006_s19, 17 }
   0x6   : > { %s10930_s20 = smov (%p24_p0, %s23_s20), 0  ;;  %s10932_s21 = smov (!%p24_p0, %s26_s21), %s8002_s18 }
   0x7   : > { %p193_p3 = pnand %p5820_p1, %p192_p2  ;;  %p28_p4 = scmp.ge.s32.totalorder %s10932_s21, 2 }
   0x9   : > { %s10934_s21 = smov (%p28_p4, %s10932_s21), 0  ;;  %196 = sbr.rel (%p193_p3) target bundleno = 1276 (0x4fc), region = 36 }
  0x10   : > { %p226_p5 = scmp.lt.s32.totalorder %s7994_s16, 1  ;;  %p231_p6 = scmp.lt.s32.totalorder %s7990_s15, 7 }
  0x11   : > { %p5824_p7 = scmp.ne.s32.totalorder %s7990_s15, 0 }
  0x12   : > { %s10936_s16 = smov (!%p226_p5, %s7994_s16), 1  ;;  %v8008_v3 = vmov (!%p5824_p7), 0  }
  0x13   : > { %s232_s22 = scalar_select %p231_p6, %s7990_s15, 7 }
  0x14   : > { %s7559_s23 = smul.u32 164, %s10936_s16  ;;  %249 = vst [vmem:[#allocation2] sm:$0xf] (!%p5824_p7), %v8008_v3  ;;  %250 = vst [vmem:[#allocation2 + $0x4] sm:$0xf] (!%p5824_p7), %v8008_v3 }
  0x15   : > { %s7560_s24 = smul.u32 576, %s232_s22  ;;  %s8074_s27 = scalar_lea.vmem %s10714_s2, %s232_s22  ;;  %251 = vst [vmem:[#allocation2 + $0x8] sm:$0xf] (!%p5824_p7), %v8008_v3  ;;  %252 = vst [vmem:[#allocation2 + $0xb0] sm:$0xf] (!%p5824_p7), %v8008_v3 }
  0x16   : > { %s8079_s30 = scalar_lea.vmem %s10712_s0, %s7559_s23  ;;  %s7561_s5 = smul.u32 328, %s10936_s16  ;;  %253 = vst [vmem:[#allocation2 + $0xb4] sm:$0xf] (!%p5824_p7), %v8008_v3  ;;  %254 = vst [vmem:[#allocation2 + $0xb8] sm:$0xf] (!%p5824_p7), %v8008_v3 }
  0x17   : > { %s8084_s8 = scalar_lea.vmem %s10713_s1, %s7560_s24  ;;  %248 = sbr.rel (%p5824_p7) target bundleno = 35 (0x23), region = 40  ;;  %v255_v0 = vld [vmem:[%s8079_s30] sm:$0xff] (!%p5824_p7)   ;;  %v257_v1 = vld [vmem:[%s8079_s30 + $0x8] sm:$0xff] (!%p5824_p7)   ;;  %v259_v2 = vld [vmem:[%s8079_s30 + $0x10] sm:$0xff] (!%p5824_p7)  }
  0x18   : > { %s8089_s11 = scalar_lea.vmem %s10716_s4, %s7561_s5  ;;  %296 = vst [vmem:[#allocation2 + $0xc] sm:$0xff] (!%p5824_p7), %v255_v0   ;;  %298 = vst [vmem:[#allocation2 + $0x14] sm:$0xff] (!%p5824_p7), %v257_v1   ;;  %v261_v4 = vld [vmem:[%s8079_s30 + $0x18] sm:$0xff] (!%p5824_p7)   ;;  %v263_v5 = vld [vmem:[%s8079_s30 + $0x20] sm:$0xff] (!%p5824_p7)  }
  0x19   : > { %300 = vst [vmem:[#allocation2 + $0x1c] sm:$0xff] (!%p5824_p7), %v259_v2   ;;  %v265_v6 = vld [vmem:[%s8079_s30 + $0x28] sm:$0xff] (!%p5824_p7)   ;;  %302 = vst [vmem:[#allocation2 + $0x24] sm:$0xff] (!%p5824_p7), %v261_v4   ;;  %v267_v7 = vld [vmem:[%s8079_s30 + $0x30] sm:$0xff] (!%p5824_p7)  }
  0x1a   : > { %304 = vst [vmem:[#allocation2 + $0x2c] sm:$0xff] (!%p5824_p7), %v263_v5   ;;  %306 = vst [vmem:[#allocation2 + $0x34] sm:$0xff] (!%p5824_p7), %v265_v6   ;;  %v269_v8 = vld [vmem:[%s8079_s30 + $0x38] sm:$0xff] (!%p5824_p7)   ;;  %v271_v9 = vld [vmem:[%s8079_s30 + $0x40] sm:$0xff] (!%p5824_p7)  }
  0x1b   : > { %308 = vst [vmem:[#allocation2 + $0x3c] sm:$0xff] (!%p5824_p7), %v267_v7   ;;  %310 = vst [vmem:[#allocation2 + $0x44] sm:$0xff] (!%p5824_p7), %v269_v8   ;;  %v273_v10 = vld [vmem:[%s8079_s30 + $0x48] sm:$0xff] (!%p5824_p7)   ;;  %v275_v11 = vld [vmem:[%s8079_s30 + $0x50] sm:$0xff] (!%p5824_p7)  }
  0x1c   : > { %312 = vst [vmem:[#allocation2 + $0x4c] sm:$0xff] (!%p5824_p7), %v271_v9   ;;  %v277_v12 = vld [vmem:[%s8079_s30 + $0x58] sm:$0xff] (!%p5824_p7)   ;;  %314 = vst [vmem:[#allocation2 + $0x54] sm:$0xff] (!%p5824_p7), %v273_v10   ;;  %v279_v13 = vld [vmem:[%s8079_s30 + $0x60] sm:$0xff] (!%p5824_p7)  }
  0x1d   : > { %316 = vst [vmem:[#allocation2 + $0x5c] sm:$0xff] (!%p5824_p7), %v275_v11   ;;  %318 = vst [vmem:[#allocation2 + $0x64] sm:$0xff] (!%p5824_p7), %v277_v12   ;;  %v281_v14 = vld [vmem:[%s8079_s30 + $0x68] sm:$0xff] (!%p5824_p7)   ;;  %v283_v15 = vld [vmem:[%s8079_s30 + $0x70] sm:$0xff] (!%p5824_p7)  }
  0x1e   : > { %320 = vst [vmem:[#allocation2 + $0x6c] sm:$0xff] %v279_v13   ;;  %322 = vst [vmem:[#allocation2 + $0x74] sm:$0xff] %v281_v14   ;;  %v285_v16 = vld [vmem:[%s8079_s30 + $0x78] sm:$0xff]   ;;  %v287_v17 = vld [vmem:[%s8079_s30 + $0x80] sm:$0xff]  }
  0x1f   : > { %324 = vst [vmem:[#allocation2 + $0x7c] sm:$0xff] %v283_v15   ;;  %v289_v18 = vld [vmem:[%s8079_s30 + $0x88] sm:$0xff]   ;;  %326 = vst [vmem:[#allocation2 + $0x84] sm:$0xff] %v285_v16   ;;  %v291_v19 = vld [vmem:[%s8079_s30 + $0x90] sm:$0xff]  }
  0x20   : > { %328 = vst [vmem:[#allocation2 + $0x8c] sm:$0xff] %v287_v17   ;;  %330 = vst [vmem:[#allocation2 + $0x94] sm:$0xff] %v289_v18   ;;  %v293_v20 = vld [vmem:[%s8079_s30 + $0x98] sm:$0xff]   ;;  %v295_v21 = vld [vmem:[%s8079_s30 + $0xa0] sm:$0xf] }
  0x21   : > { %332 = vst [vmem:[#allocation2 + $0x9c] sm:$0xff] %v291_v19   ;;  %334 = vst [vmem:[#allocation2 + $0xa4] sm:$0xff] %v293_v20  }
  0x22   : > { %336 = vst [vmem:[#allocation2 + $0xac] sm:$0xf] %v295_v21 }
  0x23 PF: > { %v7606_v22 = vld [vmem:[%s8084_s8 + $0x40] sm:$0xff]   ;;  %v10717_v23 = vmov 0.0   ;;  %v7607_v24 = vld [vmem:[%s8084_s8 + $0x48] sm:$0xff]   ;;  %vm8010_vm0 = vmmov 0   ;;  %v7608_v25 = vld [vmem:[%s8084_s8 + $0x50] sm:$0xff]   ;;  %vm518_vm1 = vcmask 1044480  }
  0x24   : > { %6643 = vmatprep.subr.bf16.mxu0 %v10717_v23  ;;  %7543 = vmatprep.subr.bf16.mxu1 %v10717_v23  ;;  %v7609_v26 = vld [vmem:[%s8084_s8 + $0x58] sm:$0xff]   ;;  %v7610_v27 = vld [vmem:[%s8084_s8 + $0x60] sm:$0xff]   ;;  %v7611_v28 = vld [vmem:[%s8084_s8 + $0x68] sm:$0xff]   ;;  %vm832_vm2 = vsmask.f32 5376  ;;  %vm4029_vm6 = vcmask 1046528  }
  0x25   : > { %6644 = vmatpush3.bf16.msra.mxu0 %v7606_v22  ;;  %7551 = vmatpush3.bf16.msra.mxu1 %v7606_v22  ;;  %v337_v29 = vld [vmem:[#allocation2] sm:$0xc]  ;;  %v338_v30 = vld [vmem:[#allocation2 + $0x4] sm:$0xf]  ;;  %v7612_v32 = vld [vmem:[%s8084_s8 + $0x70] sm:$0xff]   ;;  %p4854_p8 = scmp.eq.s32.totalorder %s7990_s15, 3 }
  0x26   : > { %6645 = vmatprep.subr.bf16.mxu0 %v10717_v23  ;;  %7544 = vmatprep.subr.bf16.mxu1 %v10717_v23  ;;  %v395_v31 = vld [vmem:[#allocation2] sm:$0x8]  ;;  %v8136_v33 = vld [vmem:[#allocation2 + $0x8] sm:$0xff]   ;;  %v5870_v35 = vcombine.low %v337_v29, %v338_v30  ;;  %v7613_v38 = vld [vmem:[%s8084_s8 + $0x78] sm:$0xff]   ;;  %vm1311_vm3 = vsmask.f32 4352 }
  0x27   : > { %6659 = vmatprep.mubr.msk.bf16.mxu0 %vm8010_vm0, %v10717_v23  ;;  %6703 = vmatprep.mubr.msk.bf16.mxu1 %vm8010_vm0, %v10717_v23  ;;  %v8138_v34 = vcombine.low %v395_v31, %v338_v30  ;;  %v520_v39 = vrot.slane %v8136_v33, 3  ;;  %v8153_v44 = vld [vmem:[#allocation2 + $0x10] sm:$0xff]   ;;  %v7619_v45 = vld [vmem:[%s8084_s8 + $0x80] sm:$0xff]   ;;  %v842_v53 = vshrl.u32 %v8136_v33, 16  ;;  %v7623_v55 = vld [vmem:[%s8084_s8 + $0x88] sm:$0xff]   ;;  %v845_v61 = vshll.u32 %v8136_v33, 16 }
  0x28   : > { %v834_v41 = vshrl.u32 %v5870_v35, 16  ;;  %v7620_v47 = vld [vmem:[%s8084_s8] sm:$0xff]   ;;  %v837_v51 = vshll.u32 %v5870_v35, 16  ;;  %v522_v52 = vrot.slane %v8153_v44, 3  ;;  %v8171_v56 = vld [vmem:[#allocation2 + $0x18] sm:$0xff]   ;;  %v7626_v58 = vld [vmem:[%s8084_s8 + $0x8] sm:$0xff]  }
  0x29   : > { %6646 = vmatpush3.bf16.msra.mxu0 %v7607_v24  ;;  %7552 = vmatpush3.bf16.msra.mxu1 %v7607_v24  ;;  %v8140_v36 = vld [vmem:[#allocation2 + $0x58] sm:$0xff]   ;;  %v8142_v37 = vld [vmem:[#allocation2 + $0x60] sm:$0xff]   ;;  %v519_v40 = vrot.slane %v8138_v34, 3  ;;  %v8181_v62 = vld [vmem:[#allocation2 + $0x28] sm:$0xff]   ;;  %v851_v63 = vshrl.u32 %v8153_v44, 16  ;;  %v854_v0 = vshll.u32 %v8153_v44, 16 }
  0x2a   : > { %6647 = vmatprep.subr.bf16.mxu0 %v10717_v23  ;;  %7545 = vmatprep.subr.bf16.mxu1 %v10717_v23  ;;  %v540_v42 = vrot.slane %v8140_v36, 3  ;;  %v542_v43 = vrot.slane %v8142_v37, 3  ;;  %v8156_v46 = vld [vmem:[#allocation2 + $0x68] sm:$0xff]   ;;  %v8163_v50 = vrot.slane %v834_v41, 2  ;;  %v8173_v57 = vld [vmem:[#allocation2 + $0x70] sm:$0xff]   ;;  %v8176_v59 = vld [vmem:[#allocation2 + $0x20] sm:$0xff]   ;;  %v523_v7 = vsel %vm518_vm1, %v520_v39, %v522_v52 }
  0x2b   : > { %v521_v48 = vsel %vm518_vm1, %v519_v40, %v520_v39  ;;  %v544_v54 = vrot.slane %v8156_v46, 3  ;;  %v7629_v60 = vld [vmem:[#allocation2 + $0x78] sm:$0xff]   ;;  %v7632_v1 = vld [vmem:[#allocation2 + $0x80] sm:$0xff]   ;;  %v839_v2 = vrot.slane %v837_v51, 3  ;;  %v8189_v3 = vld [vmem:[#allocation2 + $0x30] sm:$0xff]   ;;  %v844_v4 = vrot.slane %v842_v53, 2 }
  0x2c   : > { %v543_v49 = vsel %vm518_vm1, %v540_v42, %v542_v43  ;;  %v8193_v5 = vld [vmem:[#allocation2 + $0x88] sm:$0xff]   ;;  %v847_v6 = vrot.slane %v845_v61, 3  ;;  %v853_v9 = vrot.slane %v851_v63, 2  ;;  %v856_v10 = vrot.slane %v854_v0, 3  ;;  %v7627_v13 = vld [vmem:[%s8084_s8 + $0x90] sm:$0xff]   ;;  %v7633_v20 = vld [vmem:[%s8084_s8 + $0x98] sm:$0xff]  }
  0x2d   : > { %6648 = vmatpush3.bf16.msra.mxu0 %v7608_v25  ;;  %7553 = vmatpush3.bf16.msra.mxu1 %v7608_v25  ;;  %v545_v8 = vsel %vm518_vm1, %v542_v43, %v544_v54  ;;  %v524_v11 = vrot.slane %v8171_v56, 3  ;;  %v546_v12 = vrot.slane %v8173_v57, 3  ;;  %v526_v14 = vrot.slane %v8176_v59, 3  ;;  %v7630_v16 = vld [vmem:[%s8084_s8 + $0x10] sm:$0xff]   ;;  %v7634_v30 = vld [vmem:[%s8084_s8 + $0x18] sm:$0xff]   ;;  %p4855_p9 = scmp.eq.s32.totalorder %s7990_s15, 7 }
  0x2e   : > { %6649 = vmatprep.subr.bf16.mxu0 %v10717_v23  ;;  %7546 = vmatprep.subr.bf16.mxu1 %v10717_v23  ;;  %v548_v15 = vrot.slane %v7629_v60, 3  ;;  %v528_v17 = vrot.slane %v8181_v62, 3  ;;  %v1313_v18 = vshrl.u32 %v8138_v34, 16  ;;  %v550_v19 = vrot.slane %v7632_v1, 3  ;;  %v8219_v24 = vld [vmem:[#allocation2 + $0x50] sm:$0xff]   ;;  %p6176_p11 = scmp.ge.s32.totalorder %s7990_s15, 7 }
  0x2f   : > { %v530_v21 = vrot.slane %v8189_v3, 3  ;;  %v552_v22 = vrot.slane %v8193_v5, 3  ;;  %v840_v25 = vor.u32 %v839_v2, %v8163_v50  ;;  %v547_v29 = vsel %vm518_vm1, %v544_v54, %v546_v12  ;;  %v7638_v50 = vld [vmem:[%s8084_s8 + $0x20] sm:$0xff]   ;;  %p10068_p10 = por %p4855_p9, %p4854_p8 }
  0x30   : > { %v1316_v31 = vshll.u32 %v8138_v34, 16  ;;  %v8232_v35 = vsel %vm518_vm1, %v546_v12, %v548_v15  ;;  %v1315_v39 = vrot.slane %v1313_v18, 3  ;;  %v8238_v40 = vsel %vm518_vm1, %v526_v14, %v528_v17  ;;  %v7647_v18 = vld [vmem:[%s8084_s8 + $0x30] sm:$0xff]  }
  0x31   : > { %6650 = vmatpush3.bf16.msra.mxu0 %v7609_v26  ;;  %7554 = vmatpush3.bf16.msra.mxu1 %v7609_v26  ;;  %v848_v26 = vor.u32 %v847_v6, %v844_v4  ;;  %v8241_v41 = vsel %vm518_vm1, %v548_v15, %v550_v19  ;;  %v8246_v34 = vsel %vm518_vm1, %v528_v17, %v530_v21  ;;  %v860_v54 = vshrl.u32 %v8171_v56, 16  ;;  %v7644_v4 = vld [vmem:[%s8084_s8 + $0x28] sm:$0xff]   ;;  %s5144_s13 = scalar_select %p10068_p10, 1, 0 }
  0x32   : > { %6651 = vmatprep.subr.bf16.mxu0 %v10717_v23  ;;  %7547 = vmatprep.subr.bf16.mxu1 %v10717_v23  ;;  %v8251_v43 = vsel %vm518_vm1, %v550_v19, %v552_v22  ;;  %v1318_v51 = vrot.slane %v1316_v31, 4  ;;  %v1325_v60 = vrot.slane %v854_v0, 4  ;;  %v872_v1 = vshll.u32 %v8176_v59, 16 }
  0x33   : > { %v1328_v0 = vrot.slane %v860_v54, 3  ;;  %v881_v12 = vshll.u32 %v8181_v62, 16  ;;  %v890_v31 = vshll.u32 %v8189_v3, 16  ;;  %v962_v5 = vshll.u32 %v8173_v57, 16 }
  0x34   : > { %v1319_v33 = vor.u32 %v1318_v51, %v1315_v39  ;;  %v1333_v17 = vrot.slane %v872_v1, 4  ;;  %v8315_v39 = vld [vmem:[#allocation2 + $0x40] sm:$0xff]   ;;  %vm4402_vm4 = vsmask.f32 6400  ;;  %vm2889_vm5 = vsmask.f32 7424 }
  0x35   : > { %6652 = vmatpush3.bf16.msra.mxu0 %v7610_v27  ;;  %7555 = vmatpush3.bf16.msra.mxu1 %v7610_v27  ;;  %v8222_v27 = vor.u32 %v856_v10, %v853_v9  ;;  %v1337_v51 = vrot.slane %v881_v12, 4 }
  0x36   : > { %6653 = vmatprep.subr.bf16.mxu0 %v10717_v23  ;;  %7548 = vmatprep.subr.bf16.mxu1 %v10717_v23 }
  0x39   : > { %6654 = vmatpush3.bf16.msra.mxu0 %v7611_v28  ;;  %7556 = vmatpush3.bf16.msra.mxu1 %v7611_v28  ;;  %v525_v28 = vsel %vm518_vm1, %v522_v52, %v524_v11  ;;  %v1320_v52 = vrot.slane %v842_v53, 3 }
  0x3a   : > { %6655 = vmatprep.subr.bf16.mxu0 %v10717_v23  ;;  %7549 = vmatprep.subr.bf16.mxu1 %v10717_v23 }
  0x3d   : > { %6656 = vmatpush3.bf16.msra.mxu0 %v7612_v32  ;;  %7557 = vmatpush3.bf16.msra.mxu1 %v7612_v32  ;;  %v8229_v32 = vsel %vm518_vm1, %v524_v11, %v526_v14  ;;  %v878_v11 = vshrl.u32 %v8181_v62, 16 }
  0x3e   : > { %6657 = vmatprep.subr.bf16.mxu0 %v10717_v23  ;;  %7550 = vmatprep.subr.bf16.mxu1 %v10717_v23 }
  0x41   : > { %6658 = vmatpush3.bf16.msra.mxu0 %v7613_v38  ;;  %7558 = vmatpush3.bf16.msra.mxu1 %v7613_v38  ;;  %v538_v38 = vrot.slane %v8219_v24, 3 }
  0x42   : > { %6843 = vmatprep.subr.bf16.mxu0 %v10717_v23  ;;  %6743 = vmatprep.subr.bf16.mxu1 %v10717_v23 }
  0x44   : > { %6660 = vmatmul.mubr.bf16.vlgmr.msra.gmra.mrb[0].mxu0 %v521_v48  ;;  %6704 = vmatmul.mubr.bf16.vlgmr.msra.gmra.mrb[0].mxu1 %v543_v49  ;;  %v8262_v48 = vsel %vm832_vm2, %v840_v25, %v848_v26  ;;  %v8266_v49 = vsel %vm832_vm2, %v848_v26, %v8222_v27  ;;  %v883_v25 = vrot.slane %v881_v12, 3  ;;  %v887_v26 = vshrl.u32 %v8189_v3, 16 }
  0x45   : > { %6844 = vmatpush3.bf16.msra.mxu0 %v7619_v45  ;;  %6663 = vmatprep.mubr.msk.bf16.mxu0 %vm8010_vm0, %v10717_v23  ;;  %v7637_v45 = vld [vmem:[%s8084_s8 + $0xa0] sm:$0xff]   ;;  %v959_v3 = vshrl.u32 %v8173_v57, 16 }
  0x46   : > { %6707 = vmatprep.mubr.msk.bf16.mxu1 %vm8010_vm0, %v10717_v23  ;;  %6744 = vmatpush3.bf16.msra.mxu1 %v7620_v47  ;;  %v8259_v47 = vsel %vm518_vm1, %v538_v38, %v540_v42  ;;  %v1321_v42 = vrot.slane %v845_v61, 4  ;;  %v869_v61 = vshrl.u32 %v8176_v59, 16  ;;  %v874_v59 = vrot.slane %v872_v1, 3 }
  0x47   : > { %6845 = vmatprep.subr.bf16.mxu0 %v10717_v23  ;;  %6745 = vmatprep.subr.bf16.mxu1 %v10717_v23 }
  0x48   : > { %v1322_v53 = vor.u32 %v1321_v42, %v1320_v52  ;;  %v7650_v52 = vld [vmem:[%s8084_s8 + $0x38] sm:$0xff]  }
  0x49   : > { %6846 = vmatpush3.bf16.msra.mxu0 %v7623_v55  ;;  %v863_v55 = vshll.u32 %v8171_v56, 16  ;;  %v7643_v56 = vld [vmem:[%s8084_s8 + $0xa8] sm:$0xff]  }
  0x4a   : > { %6746 = vmatpush3.bf16.msra.mxu1 %v7626_v58  ;;  %6847 = vmatprep.subr.bf16.mxu0 %v10717_v23  ;;  %v1324_v58 = vrot.slane %v851_v63, 3  ;;  %v862_v63 = vrot.slane %v860_v54, 2  ;;  %v8290_v6 = vsel %vm1311_vm3, %v1319_v33, %v1322_v53  ;;  %v892_v54 = vrot.slane %v890_v31, 3 }
  0x4b   : > { %6747 = vmatprep.subr.bf16.mxu1 %v10717_v23  ;;  %v865_v2 = vrot.slane %v863_v55, 3  ;;  %v1340_v33 = vrot.slane %v887_v26, 3 }
  0x4c   : > { %6664 = vmatmul.mubr.bf16.gmra.mrb[4].mxu0 %v523_v7  ;;  %6708 = vmatmul.mubr.bf16.gmra.mrb[4].mxu1 %v545_v8  ;;  %v1326_v44 = vor.u32 %v1325_v60, %v1324_v58  ;;  %v871_v7 = vrot.slane %v869_v61, 2  ;;  %v1329_v8 = vrot.slane %v863_v55, 4  ;;  %v8331_v60 = vld [vmem:[#allocation2 + $0x48] sm:$0xff]  }
  0x4d   : > { %6667 = vmatprep.mubr.msk.bf16.mxu0 %vm8010_vm0, %v10717_v23  ;;  %6711 = vmatprep.mubr.msk.bf16.mxu1 %vm8010_vm0, %v10717_v23  ;;  %v866_v9 = vor.u32 %v865_v2, %v862_v63  ;;  %v905_v2 = vshrl.u32 %v8315_v39, 16 }
  0x4e   : > { %6848 = vmatpush3.bf16.msra.mxu0 %v7627_v13  ;;  %6748 = vmatpush3.bf16.msra.mxu1 %v7630_v16  ;;  %v8295_v10 = vsel %vm1311_vm3, %v1322_v53, %v1326_v44  ;;  %v8299_v13 = vld [vmem:[#allocation2 + $0x38] sm:$0xff]   ;;  %v875_v14 = vor.u32 %v874_v59, %v871_v7  ;;  %v1330_v15 = vor.u32 %v1329_v8, %v1328_v0  ;;  %v1332_v16 = vrot.slane %v869_v61, 3 }
  0x4f   : > { %6849 = vmatprep.subr.bf16.mxu0 %v10717_v23  ;;  %6749 = vmatprep.subr.bf16.mxu1 %v10717_v23  ;;  %v8304_v19 = vsel %vm832_vm2, %v8222_v27, %v866_v9  ;;  %v896_v55 = vshrl.u32 %v8299_v13, 16  ;;  %v899_v58 = vshll.u32 %v8299_v13, 16  ;;  %v1341_v53 = vrot.slane %v890_v31, 4  ;;  %v7651_v61 = vld [vmem:[%s8084_s8 + $0xb8] sm:$0xff]  }
  0x50   : > { %v8309_v62 = vsel %vm832_vm2, %v866_v9, %v875_v14  ;;  %v907_v9 = vrot.slane %v905_v2, 2  ;;  %v923_v31 = vshrl.u32 %v8219_v24, 16 }
  0x51   : > { %v901_v63 = vrot.slane %v899_v58, 3  ;;  %v1342_v0 = vor.u32 %v1341_v53, %v1340_v33  ;;  %v1344_v7 = vrot.slane %v896_v55, 3  ;;  %v935_v33 = vshll.u32 %v8140_v36, 16 }
  0x52   : > { %6850 = vmatpush3.bf16.msra.mxu0 %v7633_v20  ;;  %6750 = vmatpush3.bf16.msra.mxu1 %v7634_v30  ;;  %v880_v20 = vrot.slane %v878_v11, 2  ;;  %v1334_v30 = vor.u32 %v1333_v17, %v1332_v16  ;;  %v917_v16 = vshll.u32 %v8331_v60, 16 }
  0x53   : > { %6851 = vmatprep.subr.bf16.mxu0 %v10717_v23  ;;  %6751 = vmatprep.subr.bf16.mxu1 %v10717_v23 }
  0x54   : > { %6668 = vmatmul.mubr.bf16.gmra.mrb[8].mxu0 %v525_v28  ;;  %6712 = vmatmul.mubr.bf16.gmra.mrb[8].mxu1 %v547_v29  ;;  %v7648_v28 = vld [vmem:[%s8084_s8 + $0xb0] sm:$0xff]   ;;  %v8312_v29 = vsel %vm1311_vm3, %v1326_v44, %v1330_v15  ;;  %v884_v27 = vor.u32 %v883_v25, %v880_v20  ;;  %v8323_v42 = vsel %vm1311_vm3, %v1330_v15, %v1334_v30  ;;  %v914_v15 = vshrl.u32 %v8331_v60, 16 }
  0x55   : > { %6671 = vmatprep.mubr.msk.bf16.mxu0 %vm8010_vm0, %v10717_v23  ;;  %6715 = vmatprep.mubr.msk.bf16.mxu1 %vm8010_vm0, %v10717_v23  ;;  %v1348_v20 = vrot.slane %v905_v2, 3 }
  0x56   : > { %6852 = vmatpush3.bf16.msra.mxu0 %v7637_v45  ;;  %6752 = vmatpush3.bf16.msra.mxu1 %v7638_v50  ;;  %v889_v45 = vrot.slane %v887_v26, 2  ;;  %v1336_v50 = vrot.slane %v878_v11, 3  ;;  %v1345_v11 = vrot.slane %v899_v58, 4 }
  0x57   : > { %6853 = vmatprep.subr.bf16.mxu0 %v10717_v23  ;;  %6753 = vmatprep.subr.bf16.mxu1 %v10717_v23 }
  0x58   : > { %v893_v1 = vor.u32 %v892_v54, %v889_v45 }
  0x5a   : > { %6854 = vmatpush3.bf16.msra.mxu0 %v7643_v56  ;;  %6754 = vmatpush3.bf16.msra.mxu1 %v7644_v4  ;;  %v898_v56 = vrot.slane %v896_v55, 2  ;;  %v908_v4 = vshll.u32 %v8315_v39, 16  ;;  %v8345_v59 = vsel %vm832_vm2, %v884_v27, %v893_v1  ;;  %v1353_v55 = vrot.slane %v917_v16, 4 }
  0x5b   : > { %6755 = vmatprep.subr.bf16.mxu1 %v10717_v23  ;;  %6855 = vmatprep.subr.bf16.mxu0 %v10717_v23 }
  0x5c   : > { %6672 = vmatmul.mubr.bf16.gmra.mrb[12].mxu0 %v8229_v32  ;;  %6716 = vmatmul.mubr.bf16.gmra.mrb[12].mxu1 %v8232_v35  ;;  %v8334_v32 = vsel %vm832_vm2, %v875_v14, %v884_v27  ;;  %v1338_v35 = vor.u32 %v1337_v51, %v1336_v50  ;;  %v902_v8 = vor.u32 %v901_v63, %v898_v56  ;;  %v910_v14 = vrot.slane %v908_v4, 3  ;;  %v8379_v63 = vld [vmem:[#allocation2 + $0x90] sm:$0xff]  }
  0x5d   : > { %6675 = vmatprep.mubr.msk.bf16.mxu0 %vm8010_vm0, %v10717_v23  ;;  %6719 = vmatprep.mubr.msk.bf16.mxu1 %vm8010_vm0, %v10717_v23  ;;  %v1349_v25 = vrot.slane %v908_v4, 4  ;;  %v926_v50 = vshll.u32 %v8219_v24, 16  ;;  %v1352_v51 = vrot.slane %v914_v15, 3  ;;  %v937_v4 = vrot.slane %v935_v33, 3  ;;  %v7654_v24 = vld [vmem:[%s8084_s8 + $0xc8] sm:$0xff]  }
  0x5e   : > { %6756 = vmatpush3.bf16.msra.mxu1 %v7647_v18  ;;  %6856 = vmatpush3.bf16.msra.mxu0 %v7648_v28  ;;  %v8341_v44 = vsel %vm1311_vm3, %v1334_v30, %v1338_v35  ;;  %v8348_v12 = vsel %vm1311_vm3, %v1338_v35, %v1342_v0  ;;  %v8353_v17 = vsel %vm832_vm2, %v893_v1, %v902_v8  ;;  %v916_v28 = vrot.slane %v914_v15, 2 }
  0x5f   : > { %6757 = vmatprep.subr.bf16.mxu1 %v10717_v23  ;;  %6857 = vmatprep.subr.bf16.mxu0 %v10717_v23  ;;  %v1346_v18 = vor.u32 %v1345_v11, %v1344_v7  ;;  %v911_v26 = vor.u32 %v910_v14, %v907_v9  ;;  %v919_v30 = vrot.slane %v917_v16, 3  ;;  %v1350_v45 = vor.u32 %v1349_v25, %v1348_v20 }
  0x60   : > { %v928_v58 = vrot.slane %v926_v50, 3  ;;  %v932_v35 = vshrl.u32 %v8140_v36, 16  ;;  %v1356_v1 = vrot.slane %v923_v31, 3  ;;  %v1357_v56 = vrot.slane %v926_v50, 4 }
  0x61   : > { %v8361_v27 = vsel %vm1311_vm3, %v1342_v0, %v1346_v18  ;;  %v920_v54 = vor.u32 %v919_v30, %v916_v28  ;;  %v941_v7 = vshrl.u32 %v8142_v37, 16  ;;  %v944_v11 = vshll.u32 %v8142_v37, 16  ;;  %v8397_v30 = vld [vmem:[#allocation2 + $0x98] sm:$0xff]  }
  0x62   : > { %6758 = vmatpush3.bf16.msra.mxu1 %v7650_v52  ;;  %6858 = vmatpush3.bf16.msra.mxu0 %v7651_v61  ;;  %v8369_v52 = vsel %vm832_vm2, %v902_v8, %v911_v26  ;;  %v1354_v61 = vor.u32 %v1353_v55, %v1352_v51  ;;  %v934_v0 = vrot.slane %v932_v35, 2  ;;  %v1358_v9 = vor.u32 %v1357_v56, %v1356_v1  ;;  %v8424_v56 = vld [vmem:[#allocation2 + $0xa0] sm:$0xf] }
  0x63   : > { %6943 = vmatprep.subr.bf16.mxu1 %v10717_v23  ;;  %7043 = vmatprep.subr.bf16.mxu0 %v10717_v23  ;;  %v8377_v53 = vsel %vm832_vm2, %v911_v26, %v920_v54  ;;  %v1360_v36 = vrot.slane %v932_v35, 3  ;;  %v943_v16 = vrot.slane %v941_v7, 2  ;;  %v532_v20 = vrot.slane %v8299_v13, 3 }
  0x64   : > { %6676 = vmatmul.mubr.bf16.gmra.mrb[16].mxu0 %v8238_v40  ;;  %6720 = vmatmul.mubr.bf16.gmra.mrb[16].mxu1 %v8241_v41  ;;  %v925_v40 = vrot.slane %v923_v31, 2  ;;  %v8372_v41 = vsel %vm1311_vm3, %v1346_v18, %v1350_v45  ;;  %v8383_v8 = vsel %vm1311_vm3, %v1350_v45, %v1354_v61  ;;  %v938_v15 = vor.u32 %v937_v4, %v934_v0 }
  0x65   : > { %6679 = vmatprep.mubr.msk.bf16.mxu0 %vm8010_vm0, %v10717_v23  ;;  %6723 = vmatprep.mubr.msk.bf16.mxu1 %vm8010_vm0, %v10717_v23  ;;  %v1361_v18 = vrot.slane %v935_v33, 4  ;;  %v8391_v25 = vsel %vm1311_vm3, %v1354_v61, %v1358_v9  ;;  %v946_v26 = vrot.slane %v944_v11, 3  ;;  %v554_v28 = vrot.slane %v8379_v63, 3 }
  0x66   : > { %v929_v2 = vor.u32 %v928_v58, %v925_v40  ;;  %v534_v37 = vrot.slane %v8315_v39, 3  ;;  %v1364_v40 = vrot.slane %v941_v7, 3  ;;  %v556_v55 = vrot.slane %v8397_v30, 3 }
  0x67   : > { %v1362_v45 = vor.u32 %v1361_v18, %v1360_v36  ;;  %v947_v13 = vor.u32 %v946_v26, %v943_v16  ;;  %v1365_v58 = vrot.slane %v944_v11, 4  ;;  %v533_v35 = vsel %vm518_vm1, %v530_v21, %v532_v20 }
  0x68   : > { %v8387_v14 = vsel %vm832_vm2, %v920_v54, %v929_v2  ;;  %v8400_v31 = vsel %vm832_vm2, %v929_v2, %v938_v15  ;;  %v378_v2 = vld [vmem:[#allocation2 + $0xa4] sm:$0x7]  ;;  %v961_v21 = vrot.slane %v959_v3, 2  ;;  %v557_v11 = vsel %vm518_vm1, %v554_v28, %v556_v55 }
  0x69   : > { %v8409_v50 = vsel %vm1311_vm3, %v1358_v9, %v1362_v45  ;;  %v8412_v39 = vsel %vm832_vm2, %v938_v15, %v947_v13  ;;  %v1366_v61 = vor.u32 %v1365_v58, %v1364_v40  ;;  %v535_v9 = vsel %vm518_vm1, %v532_v20, %v534_v37  ;;  %v7659_v40 = vld [vmem:[%s8084_s8 + $0x118] sm:$0xff]   ;;  %v7663_v58 = vld [vmem:[%s8084_s8 + $0x128] sm:$0xff]  }
  0x6a   : > { %v8438_v36 = vcombine.low %v8424_v56, %v378_v2  ;;  %v536_v20 = vrot.slane %v8331_v60, 3 }
  0x6b   : > { %v8427_v0 = vsel %vm1311_vm3, %v1362_v45, %v1366_v61  ;;  %v1373_v45 = vrot.slane %v962_v5, 4 }
  0x6c   : > { %6680 = vmatmul.mubr.bf16.gmra.mrb[20].mxu0 %v8246_v34  ;;  %6724 = vmatmul.mubr.bf16.gmra.mrb[20].mxu1 %v8251_v43  ;;  %v950_v34 = vshrl.u32 %v8156_v46, 16  ;;  %v953_v43 = vshll.u32 %v8156_v46, 16  ;;  %v555_v46 = vsel %vm518_vm1, %v552_v22, %v554_v28  ;;  %v964_v22 = vrot.slane %v962_v5, 3 }
  0x6d   : > { %6683 = vmatprep.mubr.msk.bf16.mxu0 %vm8010_vm0, %v10717_v23  ;;  %6727 = vmatprep.mubr.msk.bf16.mxu1 %vm8010_vm0, %v10717_v23  ;;  %v558_v26 = vrot.slane %v8438_v36, 3  ;;  %v1372_v28 = vrot.slane %v959_v3, 3  ;;  %v539_v60 = vsel %vm518_vm1, %v536_v20, %v538_v38  ;;  %v7653_v38 = vld [vmem:[%s8084_s8 + $0x100] sm:$0xff]  }
  0x6e   : > { %v952_v51 = vrot.slane %v950_v34, 2  ;;  %v955_v54 = vrot.slane %v953_v43, 3  ;;  %v1368_v4 = vrot.slane %v950_v34, 3  ;;  %v1369_v7 = vrot.slane %v953_v43, 4 }
  0x6f   : > { %v8440_v15 = vor.u32 %v964_v22, %v961_v21  ;;  %v559_v34 = vsel %vm518_vm1, %v556_v55, %v558_v26  ;;  %v8457_v43 = vor.u32 %v1373_v45, %v1372_v28  ;;  %v7662_v55 = vld [vmem:[%s8084_s8 + $0xe8] sm:$0xff]   ;;  %v1007_v28 = vshll.u32 %v8397_v30, 16 }
  0x70   : > { %v956_v33 = vor.u32 %v955_v54, %v952_v51  ;;  %v1370_v16 = vor.u32 %v1369_v7, %v1368_v4  ;;  %v7656_v54 = vld [vmem:[%s8084_s8 + $0xd0] sm:$0xff]   ;;  %v995_v7 = vshrl.u32 %v8379_v63, 16 }
  0x72   : > { %v8422_v1 = vsel %vm832_vm2, %v947_v13, %v956_v33  ;;  %v8444_v18 = vsel %vm832_vm2, %v956_v33, %v8440_v15  ;;  %v8447_v57 = vsel %vm1311_vm3, %v1366_v61, %v1370_v16  ;;  %v537_v13 = vsel %vm518_vm1, %v534_v37, %v536_v20  ;;  %v7652_v37 = vld [vmem:[%s8084_s8 + $0xc0] sm:$0xff]  }
  0x73   : > { %v8461_v51 = vsel %vm1311_vm3, %v1370_v16, %v8457_v43  ;;  %v997_v16 = vrot.slane %v995_v7, 2 }
  0x74   : > { %6684 = vmatmul.mubr.bf16.gmra.mrb[24].mxu0 %v533_v35  ;;  %6728 = vmatmul.mubr.bf16.gmra.mrb[24].mxu1 %v555_v46  ;;  %v7666_v35 = vld [vmem:[%s8084_s8 + $0xf8] sm:$0xff]  }
  0x75   : > { %6687 = vmatprep.mubr.msk.bf16.mxu0 %vm8010_vm0, %v10717_v23  ;;  %6731 = vmatprep.mubr.msk.bf16.mxu1 %vm8010_vm0, %v10717_v23 }
  0x7c   : > { %6688 = vmatmul.mubr.bf16.gmra.mrb[28].mxu0 %v535_v9  ;;  %6732 = vmatmul.mubr.bf16.gmra.mrb[28].mxu1 %v557_v11  ;;  %v998_v9 = vshll.u32 %v8379_v63, 16 }
  0x7d   : > { %6691 = vmatprep.mubr.msk.bf16.mxu0 %vm8010_vm0, %v10717_v23  ;;  %6735 = vmatprep.mubr.msk.bf16.mxu1 %vm8010_vm0, %v10717_v23 }
  0x84   : > { %6692 = vmatmul.mubr.bf16.gmra.mrb[32].mxu0 %v537_v13  ;;  %6736 = vmatmul.mubr.bf16.gmra.mrb[32].mxu1 %v559_v34 }
  0x85   : > { %6695 = vmatprep.mubr.msk.bf16.mxu0 %vm8010_vm0, %v10717_v23  ;;  %6739 = vmatprep.mubr.msk.bf16.mxu1 %vm8010_vm0, %v10717_v23 }
  0x8c   : > { %6696 = vmatmul.mubr.bf16.gmra.mrb[36].mxu0 %v539_v60  ;;  %6740 = vmatmul.mubr.bf16.gmra.mrb[36].mxu1 %v558_v26  ;;  %v1004_v26 = vshrl.u32 %v8397_v30, 16 }
  0x8d   : > { %6699 = vmatprep.mubr.msk.bf16.mxu0 %vm8010_vm0, %v10717_v23  ;;  %6759 = vmatprep.mubr.msk.bf16.mxu1 %vm8010_vm0, %v10717_v23 }
  0x8e   : > { %v1006_v60 = vrot.slane %v1004_v26, 2 }
  0x94   : > { %6700 = vmatmul.mubr.bf16.gmra.mrb[40].mxu0 %v8259_v47  ;;  %6760 = vmatmul.mubr.bf16.vlgmr.msra.gmra.mrb[40].mxu1 %v8262_v48  ;;  %v7655_v47 = vld [vmem:[%s8084_s8 + $0x108] sm:$0xff]   ;;  %v7658_v48 = vld [vmem:[%s8084_s8 + $0xd8] sm:$0xff]  }
  0x95   : > { %6763 = vmatprep.mubr.msk.bf16.mxu1 %vm8010_vm0, %v10717_v23  ;;  %6859 = vmatprep.mubr.msk.bf16.mxu0 %vm8010_vm0, %v10717_v23 }
  0x96   : > { %6944 = vmatpush3.bf16.msra.mxu1 %v7652_v37  ;;  %v1009_v37 = vrot.slane %v1007_v28, 3 }
  0x97   : > { %6945 = vmatprep.subr.bf16.mxu1 %v10717_v23 }
  0x9a   : > { %6946 = vmatpush3.bf16.msra.mxu1 %v7654_v24  ;;  %v1388_v24 = vrot.slane %v995_v7, 3 }
  0x9b   : > { %6947 = vmatprep.subr.bf16.mxu1 %v10717_v23 }
  0x9c   : > { %6764 = vmatmul.mubr.bf16.gmra.mrb[44].mxu1 %v8266_v49  ;;  %6860 = vmatmul.mubr.bf16.vlgmr.msra.gmra.mrb[44].mxu0 %v8290_v6  ;;  %v7657_v49 = vld [vmem:[%s8084_s8 + $0x110] sm:$0xff]   ;;  %v7660_v6 = vld [vmem:[%s8084_s8 + $0xe0] sm:$0xff]  }
  0x9d   : > { %7044 = vmatpush3.bf16.msra.mxu0 %v7653_v38  ;;  %6767 = vmatprep.mubr.msk.bf16.mxu1 %vm8010_vm0, %v10717_v23  ;;  %v1389_v38 = vrot.slane %v998_v9, 4 }
  0x9e   : > { %6863 = vmatprep.mubr.msk.bf16.mxu0 %vm8010_vm0, %v10717_v23  ;;  %7045 = vmatprep.subr.bf16.mxu0 %v10717_v23 }
  0x9f   : > { %6948 = vmatpush3.bf16.msra.mxu1 %v7656_v54 }
  0xa0   : > { %6949 = vmatprep.subr.bf16.mxu1 %v10717_v23 }
  0xa1   : > { %7046 = vmatpush3.bf16.msra.mxu0 %v7655_v47 }
  0xa2   : > { %7047 = vmatprep.subr.bf16.mxu0 %v10717_v23 }
  0xa3   : > { %6950 = vmatpush3.bf16.msra.mxu1 %v7658_v48 }
  0xa4   : > { %6768 = vmatmul.mubr.bf16.gmra.mrb[48].mxu1 %v8304_v19  ;;  %6864 = vmatmul.mubr.bf16.gmra.mrb[48].mxu0 %v8295_v10  ;;  %v7661_v10 = vld [vmem:[%s8084_s8 + $0x120] sm:$0xff]   ;;  %v7664_v19 = vld [vmem:[%s8084_s8 + $0xf0] sm:$0xff]  }
  0xa5   : > { %6771 = vmatprep.mubr.msk.bf16.mxu1 %vm8010_vm0, %v10717_v23  ;;  %6867 = vmatprep.mubr.msk.bf16.mxu0 %vm8010_vm0, %v10717_v23 }
  0xa6   : > { %7048 = vmatpush3.bf16.msra.mxu0 %v7657_v49  ;;  %6951 = vmatprep.subr.bf16.mxu1 %v10717_v23 }
  0xa7   : > { %7049 = vmatprep.subr.bf16.mxu0 %v10717_v23  ;;  %6952 = vmatpush3.bf16.msra.mxu1 %v7660_v6 }
  0xa8   : > { %6953 = vmatprep.subr.bf16.mxu1 %v10717_v23 }
  0xaa   : > { %7050 = vmatpush3.bf16.msra.mxu0 %v7659_v40  ;;  %v1010_v40 = vor.u32 %v1009_v37, %v1006_v60 }
  0xab   : > { %7051 = vmatprep.subr.bf16.mxu0 %v10717_v23  ;;  %6954 = vmatpush3.bf16.msra.mxu1 %v7662_v55  ;;  %v1390_v55 = vor.u32 %v1389_v38, %v1388_v24 }
  0xac   : > { %6772 = vmatmul.mubr.bf16.gmra.mrb[52].mxu1 %v8309_v62  ;;  %6868 = vmatmul.mubr.bf16.gmra.mrb[52].mxu0 %v8312_v29  ;;  %v7665_v62 = vld [vmem:[%s8084_s8 + $0x130] sm:$0xff]   ;;  %v7667_v29 = vld [vmem:[%s8084_s8 + $0x138] sm:$0xff]  }
  0xad   : > { %6775 = vmatprep.mubr.msk.bf16.mxu1 %vm8010_vm0, %v10717_v23  ;;  %6871 = vmatprep.mubr.msk.bf16.mxu0 %vm8010_vm0, %v10717_v23 }
  0xae   : > { %7052 = vmatpush3.bf16.msra.mxu0 %v7661_v10  ;;  %6955 = vmatprep.subr.bf16.mxu1 %v10717_v23  ;;  %v1013_v10 = vshrl.u32 %v8438_v36, 16 }
  0xaf   : > { %7053 = vmatprep.subr.bf16.mxu0 %v10717_v23  ;;  %6956 = vmatpush3.bf16.msra.mxu1 %v7664_v19  ;;  %v1016_v19 = vshll.u32 %v8438_v36, 16  ;;  %v1392_v36 = vrot.slane %v1004_v26, 3 }
  0xb0   : > { %6957 = vmatprep.subr.bf16.mxu1 %v10717_v23 }
  0xb2   : > { %7054 = vmatpush3.bf16.msra.mxu0 %v7663_v58  ;;  %v1290_v58 = vld [vmem:[#allocation2 + $0xa4] sm:$0xf] }
  0xb3   : > { %7055 = vmatprep.subr.bf16.mxu0 %v10717_v23  ;;  %6958 = vmatpush3.bf16.msra.mxu1 %v7666_v35 }
  0xb4   : > { %6776 = vmatmul.mubr.bf16.gmra.mrb[56].mxu1 %v8334_v32  ;;  %6872 = vmatmul.mubr.bf16.gmra.mrb[56].mxu0 %v8323_v42  ;;  %v7951_v42 = vld [vmem:[#allocation2 + $0x78] sm:$0xff]  }
  0xb5   : > { %6779 = vmatprep.mubr.msk.bf16.mxu1 %vm8010_vm0, %v10717_v23  ;;  %6875 = vmatprep.mubr.msk.bf16.mxu0 %vm8010_vm0, %v10717_v23  ;;  %v968_v32 = vshrl.u32 %v7951_v42, 16 }
  0xb6   : > { %7056 = vmatpush3.bf16.msra.mxu0 %v7665_v62  ;;  %7143 = vmatprep.subr.bf16.mxu1 %v10717_v23 }
  0xb7   : > { %7057 = vmatprep.subr.bf16.mxu0 %v10717_v23 }
  0xba   : > { %7058 = vmatpush3.bf16.msra.mxu0 %v7667_v29 }
  0xbb   : > { %7243 = vmatprep.subr.bf16.mxu0 %v10717_v23 }
  0xbc   : > { %6780 = vmatmul.mubr.bf16.gmra.mrb[60].mxu1 %v8345_v59  ;;  %6876 = vmatmul.mubr.bf16.gmra.mrb[60].mxu0 %v8341_v44  ;;  %v971_v44 = vshll.u32 %v7951_v42, 16  ;;  %v970_v59 = vrot.slane %v968_v32, 2 }
  0xbd   : > { %6783 = vmatprep.mubr.msk.bf16.mxu1 %vm8010_vm0, %v10717_v23  ;;  %6879 = vmatprep.mubr.msk.bf16.mxu0 %vm8010_vm0, %v10717_v23 }
  0xc4   : > { %6784 = vmatmul.mubr.bf16.gmra.mrb[64].mxu1 %v8353_v17  ;;  %6880 = vmatmul.mubr.bf16.gmra.mrb[64].mxu0 %v8348_v12  ;;  %v973_v12 = vrot.slane %v971_v44, 3 }
  0xc5   : > { %6787 = vmatprep.mubr.msk.bf16.mxu1 %vm8010_vm0, %v10717_v23  ;;  %6883 = vmatprep.mubr.msk.bf16.mxu0 %vm8010_vm0, %v10717_v23 }
  0xc6   : > { %v974_v17 = vor.u32 %v973_v12, %v970_v59  ;;  %v5895_v59 = vcombine.low %v8424_v56, %v1290_v58 }
  0xcc   : > { %6788 = vmatmul.mubr.bf16.gmra.mrb[68].mxu1 %v8369_v52  ;;  %6884 = vmatmul.mubr.bf16.gmra.mrb[68].mxu0 %v8361_v27  ;;  %v7952_v27 = vld [vmem:[#allocation2 + $0x80] sm:$0xff]  }
  0xcd   : > { %6791 = vmatprep.mubr.msk.bf16.mxu1 %vm8010_vm0, %v10717_v23  ;;  %6887 = vmatprep.mubr.msk.bf16.mxu0 %vm8010_vm0, %v10717_v23  ;;  %v977_v52 = vshrl.u32 %v7952_v27, 16 }
  0xd4   : > { %6792 = vmatmul.mubr.bf16.gmra.mrb[72].mxu1 %v8377_v53  ;;  %6888 = vmatmul.mubr.bf16.gmra.mrb[72].mxu0 %v8372_v41  ;;  %v980_v41 = vshll.u32 %v7952_v27, 16  ;;  %v975_v53 = vsel %vm832_vm2, %v8440_v15, %v974_v17  ;;  %v1015_v27 = vrot.slane %v1013_v10, 2 }
  0xd5   : > { %6795 = vmatprep.mubr.msk.bf16.mxu1 %vm8010_vm0, %v10717_v23  ;;  %6891 = vmatprep.mubr.msk.bf16.mxu0 %vm8010_vm0, %v10717_v23 }
  0xd6   : > { %v1381_v3 = vrot.slane %v980_v41, 4 }
  0xdc   : > { %6796 = vmatmul.mubr.bf16.gmra.mrb[76].mxu1 %v8387_v14  ;;  %6892 = vmatmul.mubr.bf16.gmra.mrb[76].mxu0 %v8383_v8  ;;  %v979_v8 = vrot.slane %v977_v52, 2  ;;  %v982_v14 = vrot.slane %v980_v41, 3  ;;  %v1393_v41 = vrot.slane %v1007_v28, 4 }
  0xdd   : > { %6799 = vmatprep.mubr.msk.bf16.mxu1 %vm8010_vm0, %v10717_v23  ;;  %6895 = vmatprep.mubr.msk.bf16.mxu0 %vm8010_vm0, %v10717_v23 }
  0xde   : > { %v983_v33 = vor.u32 %v982_v14, %v979_v8  ;;  %v1397_v14 = vshrl.u32 %v5895_v59, 16 }
  0xe0   : > { %v984_v5 = vsel %vm832_vm2, %v974_v17, %v983_v33 }
  0xe4   : > { %6800 = vmatmul.mubr.bf16.gmra.mrb[80].mxu1 %v8400_v31  ;;  %6896 = vmatmul.mubr.bf16.gmra.mrb[80].mxu0 %v8391_v25  ;;  %v1376_v25 = vrot.slane %v968_v32, 3  ;;  %v1377_v31 = vrot.slane %v971_v44, 4 }
  0xe5   : > { %6803 = vmatprep.mubr.msk.bf16.mxu1 %vm8010_vm0, %v10717_v23  ;;  %6899 = vmatprep.mubr.msk.bf16.mxu0 %vm8010_vm0, %v10717_v23 }
  0xe6   : > { %v1378_v61 = vor.u32 %v1377_v31, %v1376_v25  ;;  %v1400_v25 = vshll.u32 %v5895_v59, 16  ;;  %v1394_v31 = vor.u32 %v1393_v41, %v1392_v36  ;;  %v8689_v59 = vld [vmem:[#allocation2 + $0x24] sm:$0xf] }
  0xe8   : > { %v1379_v21 = vsel %vm1311_vm3, %v8457_v43, %v1378_v61  ;;  %v1395_v7 = vsel %vm1311_vm3, %v1390_v55, %v1394_v31 }
  0xec   : > { %6804 = vmatmul.mubr.bf16.gmra.mrb[84].mxu1 %v8412_v39  ;;  %6900 = vmatmul.mubr.bf16.gmra.mrb[84].mxu0 %v8409_v50  ;;  %v7953_v50 = vld [vmem:[#allocation2 + $0x88] sm:$0xff]  }
  0xed   : > { %6807 = vmatprep.mubr.msk.bf16.mxu1 %vm8010_vm0, %v10717_v23  ;;  %6903 = vmatprep.mubr.msk.bf16.mxu0 %vm8010_vm0, %v10717_v23  ;;  %v986_v39 = vshrl.u32 %v7953_v50, 16  ;;  %v989_v46 = vshll.u32 %v7953_v50, 16  ;;  %v1715_v50 = vld [vmem:[#allocation2 + $0x8] sm:$0x8] }
  0xef   : > { %v991_v2 = vrot.slane %v989_v46, 3  ;;  %v1385_v20 = vrot.slane %v989_v46, 4  ;;  %v8647_v46 = vld [vmem:[#allocation2 + $0x10] sm:$0xf] }
  0xf4   : > { %6808 = vmatmul.mubr.bf16.gmra.mrb[88].mxu1 %v8422_v1  ;;  %6904 = vmatmul.mubr.bf16.gmra.mrb[88].mxu0 %v8427_v0  ;;  %v988_v1 = vrot.slane %v986_v39, 2  ;;  %v1380_v0 = vrot.slane %v977_v52, 3  ;;  %v1018_v52 = vrot.slane %v1016_v19, 3 }
  0xf5   : > { %6811 = vmatprep.mubr.msk.bf16.mxu1 %vm8010_vm0, %v10717_v23  ;;  %6907 = vmatprep.mubr.msk.bf16.mxu0 %vm8010_vm0, %v10717_v23 }
  0xf6   : > { %v992_v22 = vor.u32 %v991_v2, %v988_v1  ;;  %v1382_v4 = vor.u32 %v1381_v3, %v1380_v0  ;;  %v1019_v56 = vor.u32 %v1018_v52, %v1015_v27  ;;  %v1399_v3 = vrot.slane %v1397_v14, 3 }
  0xf8   : > { %v993_v11 = vsel %vm832_vm2, %v983_v33, %v992_v22  ;;  %v1383_v15 = vsel %vm1311_vm3, %v1378_v61, %v1382_v4  ;;  %v8649_v33 = vld [vmem:[#allocation2 + $0x14] sm:$0xf] }
  0xfc   : > { %6812 = vmatmul.mubr.bf16.gmra.mrb[92].mxu1 %v8444_v18  ;;  %6908 = vmatmul.mubr.bf16.gmra.mrb[92].mxu0 %v8447_v57  ;;  %v1000_v18 = vrot.slane %v998_v9, 3  ;;  %v1384_v57 = vrot.slane %v986_v39, 3  ;;  %v8645_v39 = vld [vmem:[#allocation2 + $0xc] sm:$0xf] }
  0xfd   : > { %6815 = vmatprep.mubr.msk.bf16.mxu1 %vm8010_vm0, %v10717_v23  ;;  %6911 = vmatprep.mubr.msk.bf16.mxu0 %vm8010_vm0, %v10717_v23 }
  0xfe   : > { %v1001_v63 = vor.u32 %v1000_v18, %v997_v16  ;;  %v1386_v45 = vor.u32 %v1385_v20, %v1384_v57 }
 0x100   : > { %v1002_v30 = vsel %vm832_vm2, %v992_v22, %v1001_v63  ;;  %v1387_v47 = vsel %vm1311_vm3, %v1382_v4, %v1386_v45  ;;  %v1011_v32 = vsel %vm832_vm2, %v1001_v63, %v1010_v40  ;;  %v1391_v44 = vsel %vm1311_vm3, %v1386_v45, %v1390_v55  ;;  %v8668_v63 = vld [vmem:[#allocation2 + $0x18] sm:$0xf]  ;;  %v8670_v45 = vld [vmem:[#allocation2 + $0x1c] sm:$0xf] }
 0x101   : > { %v1020_v4 = vsel %vm832_vm2, %v1010_v40, %v1019_v56  ;;  %v5922_v55 = vcombine.low %v8668_v63, %v8670_v45 }
 0x104   : > { %6816 = vmatmul.mubr.bf16.gmra.mrb[96].mxu1 %v975_v53  ;;  %6912 = vmatmul.mubr.bf16.gmra.mrb[96].mxu0 %v8461_v51 }
 0x105   : > { %6819 = vmatprep.mubr.msk.bf16.mxu1 %vm8010_vm0, %v10717_v23  ;;  %6915 = vmatprep.mubr.msk.bf16.mxu0 %vm8010_vm0, %v10717_v23 }
 0x10c   : > { %6820 = vmatmul.mubr.bf16.gmra.mrb[100].mxu1 %v984_v5  ;;  %6916 = vmatmul.mubr.bf16.gmra.mrb[100].mxu0 %v1379_v21  ;;  %v1402_v5 = vrot.slane %v1400_v25, 4  ;;  %v5920_v21 = vcombine.low %v1715_v50, %v8645_v39 }
 0x10d   : > { %6823 = vmatprep.mubr.msk.bf16.mxu1 %vm8010_vm0, %v10717_v23  ;;  %6919 = vmatprep.mubr.msk.bf16.mxu0 %vm8010_vm0, %v10717_v23 }
 0x10e   : > { %v1403_v18 = vor.u32 %v1402_v5, %v1399_v3  ;;  %v1880_v57 = vshrl.u32 %v5920_v21, 16  ;;  %v1883_v20 = vshll.u32 %v5920_v21, 16 }
 0x110   : > { %v1404_v24 = vsel %vm1311_vm3, %v1394_v31, %v1403_v18  ;;  %v1882_v38 = vrot.slane %v1880_v57, 3 }
 0x114   : > { %6824 = vmatmul.mubr.bf16.gmra.mrb[104].mxu1 %v993_v11  ;;  %6920 = vmatmul.mubr.bf16.gmra.mrb[104].mxu0 %v1383_v15  ;;  %v5921_v11 = vcombine.low %v8647_v46, %v8649_v33 }
 0x115   : > { %6827 = vmatprep.mubr.msk.bf16.mxu1 %vm8010_vm0, %v10717_v23  ;;  %6923 = vmatprep.mubr.msk.bf16.mxu0 %vm8010_vm0, %v10717_v23 }
 0x116   : > { %v1888_v26 = vshrl.u32 %v5921_v11, 16  ;;  %v1891_v28 = vshll.u32 %v5921_v11, 16  ;;  %v7679_v11 = vld [vmem:[%s8084_s8 + $0x148] sm:$0xff]  }
 0x117   : > { %v8614_v13 = vpop.f32.mrb[0].mxu0  ;;  %v8616_v34 = vpop.f32.mrb[0].mxu1 }
 0x118   : > { %v6661_v43 = vpop.f32.mrb[1].mxu0  ;;  %v6705_v51 = vpop.f32.mrb[1].mxu1  ;;  %v1893_v40 = vrot.slane %v1891_v28, 4 }
 0x119   : > { %v8618_v54 = vpop.f32.mrb[2].mxu0  ;;  %v8622_v48 = vpop.f32.mrb[2].mxu1 }
 0x11a   : > { %v6662_v49 = vpop.f32.mrb[3].mxu0  ;;  %v6706_v6 = vpop.f32.mrb[3].mxu1 }
 0x11b   : > { %v1885_v49 = vrot.slane %v1883_v20, 4  ;;  %v1890_v6 = vrot.slane %v1888_v26, 3  ;;  %v5965_v20 = vcombine.low %v8645_v39, %v8647_v46 }
 0x11c   : > { %6828 = vmatmul.mubr.bf16.gmra.mrb[108].mxu1 %v1002_v30  ;;  %6924 = vmatmul.mubr.bf16.gmra.mrb[108].mxu0 %v1387_v47 }
 0x11d   : > { %6831 = vmatprep.mubr.msk.bf16.mxu1 %vm8010_vm0, %v10717_v23  ;;  %6927 = vmatprep.mubr.msk.bf16.mxu0 %vm8010_vm0, %v10717_v23  ;;  %v1886_v58 = vor.u32 %v1885_v49, %v1882_v38 }
 0x11f   : > { %v8630_v35 = vpop.f32.mrb[4].mxu0  ;;  %v8632_v62 = vpop.f32.mrb[4].mxu1 }
 0x120   : > { %v6665_v29 = vpop.f32.mrb[5].mxu0  ;;  %v6709_v42 = vpop.f32.mrb[5].mxu1 }
 0x121   : > { %v8637_v12 = vpop.f32.mrb[6].mxu0  ;;  %v8639_v17 = vpop.f32.mrb[6].mxu1  ;;  %v1894_v29 = vor.u32 %v1893_v40, %v1890_v6  ;;  %v1897_v42 = vshrl.u32 %v5922_v55, 16 }
 0x122   : > { %v6666_v53 = vpop.f32.mrb[7].mxu0  ;;  %v6710_v8 = vpop.f32.mrb[7].mxu1 }
 0x123   : > { %v1895_v8 = vsel %vm1311_vm3, %v1886_v58, %v1894_v29  ;;  %v1899_v25 = vrot.slane %v1897_v42, 3  ;;  %v8735_v58 = vld [vmem:[#allocation2 + $0x30] sm:$0xf] }
 0x124   : > { %6832 = vmatmul.mubr.bf16.gmra.mrb[112].mxu1 %v1011_v32  ;;  %6928 = vmatmul.mubr.bf16.gmra.mrb[112].mxu0 %v1391_v44  ;;  %v1900_v32 = vshll.u32 %v5922_v55, 16  ;;  %v8687_v44 = vld [vmem:[#allocation2 + $0x20] sm:$0xf]  ;;  %v7687_v55 = vld [vmem:[%s8084_s8 + $0x150] sm:$0xff]  }
 0x125   : > { %6835 = vmatprep.mubr.msk.bf16.mxu1 %vm8010_vm0, %v10717_v23  ;;  %6931 = vmatprep.mubr.msk.bf16.mxu0 %vm8010_vm0, %v10717_v23  ;;  %v5923_v31 = vcombine.low %v8687_v44, %v8689_v59 }
 0x127   : > { %v8651_v61 = vpop.f32.mrb[8].mxu0  ;;  %v8653_v1 = vpop.f32.mrb[8].mxu1  ;;  %v1906_v5 = vshrl.u32 %v5923_v31, 16  ;;  %v1909_v21 = vshll.u32 %v5923_v31, 16 }
 0x128   : > { %v6669_v2 = vpop.f32.mrb[9].mxu0  ;;  %v6713_v0 = vpop.f32.mrb[9].mxu1 }
 0x129   : > { %v8656_v22 = vpop.f32.mrb[10].mxu0  ;;  %v8660_v9 = vpop.f32.mrb[10].mxu1  ;;  %v7671_v0 = vld [vmem:[%s8084_s8 + $0x140] sm:$0xff]   ;;  %v1911_v38 = vrot.slane %v1909_v21, 4 }
 0x12a   : > { %v6670_v15 = vpop.f32.mrb[11].mxu0  ;;  %v6714_v16 = vpop.f32.mrb[11].mxu1 }
 0x12c   : > { %6836 = vmatmul.mubr.bf16.gmra.mrb[116].mxu1 %v1020_v4  ;;  %6932 = vmatmul.mubr.bf16.gmra.mrb[116].mxu0 %v1395_v7  ;;  %v8707_v4 = vld [vmem:[#allocation2 + $0x28] sm:$0xf]  ;;  %v8709_v7 = vld [vmem:[#allocation2 + $0x2c] sm:$0xf] }
 0x12d   : > { %6839 = vmatprep.mubr.msk.bf16.mxu1 %vm8010_vm0, %v10717_v23  ;;  %6935 = vmatprep.mubr.msk.bf16.mxu0 %vm8010_vm0, %v10717_v23  ;;  %v5924_v49 = vcombine.low %v8707_v4, %v8709_v7 }
 0x12f   : > { %v8672_v43 = vpop.f32.mrb[12].mxu0  ;;  %v8674_v51 = vpop.f32.mrb[12].mxu1  ;;  %v1915_v46 = vshrl.u32 %v5924_v49, 16 }
 0x130   : > { %v6673_v60 = vpop.f32.mrb[13].mxu0  ;;  %v6717_v37 = vpop.f32.mrb[13].mxu1 }
 0x131   : > { %v8677_v30 = vpop.f32.mrb[14].mxu0  ;;  %v8679_v47 = vpop.f32.mrb[14].mxu1  ;;  %v7674_v37 = vld [vmem:[%s8084_s8 + $0x180] sm:$0xff]  }
 0x132   : > { %v6674_v10 = vpop.f32.mrb[15].mxu0  ;;  %v6718_v19 = vpop.f32.mrb[15].mxu1 }
 0x133   : > { %v1918_v10 = vshll.u32 %v5924_v49, 16  ;;  %v7680_v19 = vld [vmem:[%s8084_s8 + $0x188] sm:$0xff]  }
 0x134   : > { %6840 = vmatmul.mubr.bf16.gmra.mrb[120].mxu1 %v1019_v56  ;;  %6936 = vmatmul.mubr.bf16.gmra.mrb[120].mxu0 %v1404_v24  ;;  %v1902_v56 = vrot.slane %v1900_v32, 4  ;;  %v1908_v24 = vrot.slane %v1906_v5, 3  ;;  %v7709_v49 = vld [vmem:[%s8084_s8 + $0x168] sm:$0xff]  }
 0x135   : > { %6939 = vmatprep.mubr.msk.bf16.mxu0 %vm8010_vm0, %v10717_v23  ;;  %6959 = vmatprep.mubr.msk.bf16.mxu1 %vm8010_vm0, %v10717_v23 }
 0x136   : > { %v1903_v3 = vor.u32 %v1902_v56, %v1899_v25  ;;  %v1912_v39 = vor.u32 %v1911_v38, %v1908_v24  ;;  %v5966_v25 = vcombine.low %v8649_v33, %v8668_v63  ;;  %v7688_v33 = vld [vmem:[%s8084_s8 + $0x190] sm:$0xff]   ;;  %v7701_v63 = vld [vmem:[%s8084_s8 + $0x160] sm:$0xff]  }
 0x137   : > { %v8691_v27 = vpop.f32.mrb[16].mxu0  ;;  %v8693_v52 = vpop.f32.mrb[16].mxu1 }
 0x138   : > { %10774 = vst [vmem:[#allocation3_spill] sm:$0xff] %v8693_v52  ;;  %v6677_v36 = vpop.f32.mrb[17].mxu0  ;;  %v6721_v41 = vpop.f32.mrb[17].mxu1  ;;  %v1904_v28 = vsel %vm1311_vm3, %v1894_v29, %v1903_v3  ;;  %v8737_v29 = vld [vmem:[#allocation2 + $0x34] sm:$0xf]  ;;  %v1913_v31 = vsel %vm1311_vm3, %v1903_v3, %v1912_v39 }
 0x139   : > { %v8695_v53 = vpop.f32.mrb[18].mxu0  ;;  %v8698_v14 = vpop.f32.mrb[18].mxu1  ;;  %v7693_v36 = vld [vmem:[%s8084_s8 + $0x158] sm:$0xff]   ;;  %v5925_v5 = vcombine.low %v8735_v58, %v8737_v29 }
 0x13a   : > { %10775 = vst [vmem:[#allocation4_spill] sm:$0xff] %v8698_v14  ;;  %v6678_v50 = vpop.f32.mrb[19].mxu0  ;;  %v6722_v2 = vpop.f32.mrb[19].mxu1 }
 0x13b   : > { %v1917_v2 = vrot.slane %v1915_v46, 3 }
 0x13c   : > { %6940 = vmatmul.mubr.bf16.gmra.mrb[124].mxu0 %v1403_v18  ;;  %6960 = vmatmul.mubr.bf16.vlgmr.msra.gmra.mrb[124].mxu1 %v1895_v8 }
 0x13d   : > { %6963 = vmatprep.mubr.msk.bf16.mxu1 %vm8010_vm0, %v10717_v23  ;;  %7059 = vmatprep.mubr.msk.bf16.mxu0 %vm8010_vm0, %v10717_v23 }
 0x13e   : > { %7144 = vmatpush3.bf16.msra.mxu1 %v7671_v0  ;;  %v1920_v0 = vrot.slane %v1918_v10, 4 }
 0x13f   : > { %v8712_v15 = vpop.f32.mrb[20].mxu0  ;;  %v8714_v16 = vpop.f32.mrb[20].mxu1  ;;  %7145 = vmatprep.subr.bf16.mxu1 %v10717_v23 }
 0x140   : > { %10776 = vst [vmem:[#allocation5_spill] sm:$0xff] %v8714_v16  ;;  %v6681_v18 = vpop.f32.mrb[21].mxu0  ;;  %v6725_v57 = vpop.f32.mrb[21].mxu1  ;;  %v1921_v3 = vor.u32 %v1920_v0, %v1917_v2  ;;  %v7702_v2 = vld [vmem:[%s8084_s8 + $0x1a0] sm:$0xff]  }
 0x141   : > { %v8719_v26 = vpop.f32.mrb[22].mxu0  ;;  %v8722_v60 = vpop.f32.mrb[22].mxu1  ;;  %v1924_v18 = vshrl.u32 %v5925_v5, 16  ;;  %v1927_v57 = vshll.u32 %v5925_v5, 16  ;;  %v8790_v5 = vld [vmem:[#allocation2 + $0x40] sm:$0xf] }
 0x142   : > { %10777 = vst [vmem:[#allocation6_spill] sm:$0xff] %v8722_v60  ;;  %v6682_v6 = vpop.f32.mrb[23].mxu0  ;;  %v6726_v40 = vpop.f32.mrb[23].mxu1  ;;  %7146 = vmatpush3.bf16.msra.mxu1 %v7679_v11  ;;  %v1922_v10 = vsel %vm1311_vm3, %v1912_v39, %v1921_v3 }
 0x143   : > { %7147 = vmatprep.subr.bf16.mxu1 %v10717_v23 }
 0x144   : > { %6964 = vmatmul.mubr.bf16.gmra.mrb[128].mxu1 %v1904_v28  ;;  %7060 = vmatmul.mubr.bf16.vlgmr.msra.gmra.mrb[128].mxu0 %v5965_v20  ;;  %v8761_v20 = vld [vmem:[#allocation2 + $0x38] sm:$0xf]  ;;  %v8763_v28 = vld [vmem:[#allocation2 + $0x3c] sm:$0xf] }
 0x145   : > { %7244 = vmatpush3.bf16.msra.mxu0 %v7674_v37  ;;  %6967 = vmatprep.mubr.msk.bf16.mxu1 %vm8010_vm0, %v10717_v23  ;;  %v7696_v37 = vld [vmem:[%s8084_s8 + $0x198] sm:$0xff]  }
 0x146   : > { %7063 = vmatprep.mubr.msk.bf16.mxu0 %vm8010_vm0, %v10717_v23  ;;  %7245 = vmatprep.subr.bf16.mxu0 %v10717_v23 }
 0x147   : > { %v8739_v42 = vpop.f32.mrb[24].mxu0  ;;  %v8741_v32 = vpop.f32.mrb[24].mxu1  ;;  %7148 = vmatpush3.bf16.msra.mxu1 %v7687_v55  ;;  %v5967_v55 = vcombine.low %v8670_v45, %v8687_v44  ;;  %v7715_v45 = vld [vmem:[%s8084_s8 + $0x170] sm:$0xff]  }
 0x148   : > { %10778 = vst [vmem:[#allocation7_spill] sm:$0xff] %v8741_v32  ;;  %v6685_v41 = vpop.f32.mrb[25].mxu0  ;;  %v6729_v8 = vpop.f32.mrb[25].mxu1  ;;  %7149 = vmatprep.subr.bf16.mxu1 %v10717_v23 }
 0x149   : > { %v8747_v56 = vpop.f32.mrb[26].mxu0  ;;  %v8750_v50 = vpop.f32.mrb[26].mxu1  ;;  %7246 = vmatpush3.bf16.msra.mxu0 %v7680_v19  ;;  %v1929_v41 = vrot.slane %v1927_v57, 4  ;;  %v5926_v8 = vcombine.low %v8761_v20, %v8763_v28 }
 0x14a   : > { %10779 = vst [vmem:[#allocation8_spill] sm:$0xff] %v8750_v50  ;;  %v6686_v21 = vpop.f32.mrb[27].mxu0  ;;  %v6730_v11 = vpop.f32.mrb[27].mxu1  ;;  %7247 = vmatprep.subr.bf16.mxu0 %v10717_v23 }
 0x14b   : > { %7150 = vmatpush3.bf16.msra.mxu1 %v7693_v36  ;;  %v1926_v36 = vrot.slane %v1924_v18, 3  ;;  %v1933_v39 = vshrl.u32 %v5926_v8, 16  ;;  %v1936_v0 = vshll.u32 %v5926_v8, 16  ;;  %v8792_v21 = vld [vmem:[#allocation2 + $0x44] sm:$0xf]  ;;  %v7710_v11 = vld [vmem:[%s8084_s8 + $0x1a8] sm:$0xff]  }
 0x14c   : > { %6968 = vmatmul.mubr.bf16.gmra.mrb[132].mxu1 %v1913_v31  ;;  %7064 = vmatmul.mubr.bf16.gmra.mrb[132].mxu0 %v5966_v25  ;;  %v7723_v18 = vld [vmem:[%s8084_s8 + $0x178] sm:$0xff]  }
 0x14d   : > { %6971 = vmatprep.mubr.msk.bf16.mxu1 %vm8010_vm0, %v10717_v23  ;;  %7067 = vmatprep.mubr.msk.bf16.mxu0 %vm8010_vm0, %v10717_v23  ;;  %v1930_v44 = vor.u32 %v1929_v41, %v1926_v36  ;;  %v1938_v36 = vrot.slane %v1936_v0, 4  ;;  %v5927_v41 = vcombine.low %v8790_v5, %v8792_v21 }
 0x14e   : > { %7248 = vmatpush3.bf16.msra.mxu0 %v7688_v33  ;;  %7151 = vmatprep.subr.bf16.mxu1 %v10717_v23 }
 0x14f   : > { %v8767_v24 = vpop.f32.mrb[28].mxu0  ;;  %v8769_v38 = vpop.f32.mrb[28].mxu1  ;;  %7249 = vmatprep.subr.bf16.mxu0 %v10717_v23  ;;  %7152 = vmatpush3.bf16.msra.mxu1 %v7701_v63 }
 0x150   : > { %10780 = vst [vmem:[#allocation9_spill] sm:$0xff] %v8769_v38  ;;  %v6689_v6 = vpop.f32.mrb[29].mxu0  ;;  %v6733_v40 = vpop.f32.mrb[29].mxu1  ;;  %7153 = vmatprep.subr.bf16.mxu1 %v10717_v23 }
 0x151   : > { %v8776_v46 = vpop.f32.mrb[30].mxu0  ;;  %v8779_v19 = vpop.f32.mrb[30].mxu1  ;;  %v1931_v40 = vsel %vm1311_vm3, %v1921_v3, %v1930_v44  ;;  %v1945_v3 = vshll.u32 %v5927_v41, 16 }
 0x152   : > { %10781 = vst [vmem:[#allocation10_spill] sm:$0xff] %v8779_v19  ;;  %v6690_v25 = vpop.f32.mrb[31].mxu0  ;;  %v6734_v31 = vpop.f32.mrb[31].mxu1  ;;  %7250 = vmatpush3.bf16.msra.mxu0 %v7696_v37 }
 0x153   : > { %7251 = vmatprep.subr.bf16.mxu0 %v10717_v23  ;;  %7154 = vmatpush3.bf16.msra.mxu1 %v7709_v49  ;;  %v5968_v49 = vcombine.low %v8689_v59, %v8707_v4  ;;  %v7716_v31 = vld [vmem:[%s8084_s8 + $0x1b0] sm:$0xff]   ;;  %v1942_v4 = vshrl.u32 %v5927_v41, 16  ;;  %v1947_v41 = vrot.slane %v1945_v3, 4 }
 0x154   : > { %6972 = vmatmul.mubr.bf16.gmra.mrb[136].mxu1 %v1922_v10  ;;  %7068 = vmatmul.mubr.bf16.gmra.mrb[136].mxu0 %v5967_v55  ;;  %v1935_v10 = vrot.slane %v1933_v39, 3  ;;  %v7724_v39 = vld [vmem:[%s8084_s8 + $0x1b8] sm:$0xff]   ;;  %v8843_v3 = vld [vmem:[#allocation2 + $0x54] sm:$0xf] }
 0x155   : > { %6975 = vmatprep.mubr.msk.bf16.mxu1 %vm8010_vm0, %v10717_v23  ;;  %7071 = vmatprep.mubr.msk.bf16.mxu0 %vm8010_vm0, %v10717_v23 }
 0x156   : > { %7252 = vmatpush3.bf16.msra.mxu0 %v7702_v2  ;;  %7155 = vmatprep.subr.bf16.mxu1 %v10717_v23  ;;  %v1939_v59 = vor.u32 %v1938_v36, %v1935_v10  ;;  %v8818_v2 = vld [vmem:[#allocation2 + $0x48] sm:$0xf]  ;;  %v1944_v36 = vrot.slane %v1942_v4, 3  ;;  %v8841_v4 = vld [vmem:[#allocation2 + $0x50] sm:$0xf] }
 0x157   : > { %v8796_v33 = vpop.f32.mrb[32].mxu0  ;;  %v8798_v63 = vpop.f32.mrb[32].mxu1  ;;  %7253 = vmatprep.subr.bf16.mxu0 %v10717_v23  ;;  %7156 = vmatpush3.bf16.msra.mxu1 %v7715_v45  ;;  %v8820_v45 = vld [vmem:[#allocation2 + $0x4c] sm:$0xf] }
 0x158   : > { %10782 = vst [vmem:[#allocation11_spill] sm:$0xff] %v8798_v63  ;;  %v6693_v57 = vpop.f32.mrb[33].mxu0  ;;  %v6737_v37 = vpop.f32.mrb[33].mxu1  ;;  %7157 = vmatprep.subr.bf16.mxu1 %v10717_v23 }
 0x159   : > { %v8805_v6 = vpop.f32.mrb[34].mxu0  ;;  %v8808_v55 = vpop.f32.mrb[34].mxu1  ;;  %v5969_v37 = vcombine.low %v8709_v7, %v8735_v58  ;;  %v1948_v7 = vor.u32 %v1947_v41, %v1944_v36 }
 0x15a   : > { %10783 = vst [vmem:[#allocation12_spill] sm:$0xff] %v8808_v55  ;;  %v6694_v8 = vpop.f32.mrb[35].mxu0  ;;  %v6738_v25 = vpop.f32.mrb[35].mxu1  ;;  %7254 = vmatpush3.bf16.msra.mxu0 %v7710_v11 }
 0x15b   : > { %7255 = vmatprep.subr.bf16.mxu0 %v10717_v23  ;;  %7158 = vmatpush3.bf16.msra.mxu1 %v7723_v18  ;;  %v5928_v8 = vcombine.low %v8818_v2, %v8820_v45 }
 0x15c   : > { %6976 = vmatmul.mubr.bf16.gmra.mrb[140].mxu1 %v1931_v40  ;;  %7072 = vmatmul.mubr.bf16.gmra.mrb[140].mxu0 %v5968_v49  ;;  %v1940_v40 = vsel %vm1311_vm3, %v1930_v44, %v1939_v59 }
 0x15d   : > { %6979 = vmatprep.mubr.msk.bf16.mxu1 %vm8010_vm0, %v10717_v23  ;;  %7075 = vmatprep.mubr.msk.bf16.mxu0 %vm8010_vm0, %v10717_v23  ;;  %v1951_v58 = vshrl.u32 %v5928_v8, 16  ;;  %v1954_v44 = vshll.u32 %v5928_v8, 16  ;;  %v1949_v8 = vsel %vm1311_vm3, %v1939_v59, %v1948_v7 }
 0x15e   : > { %7256 = vmatpush3.bf16.msra.mxu0 %v7716_v31  ;;  %7343 = vmatprep.subr.bf16.mxu1 %v10717_v23 }
 0x15f   : > { %v8824_v0 = vpop.f32.mrb[36].mxu0  ;;  %v8826_v11 = vpop.f32.mrb[36].mxu1  ;;  %7257 = vmatprep.subr.bf16.mxu0 %v10717_v23 }
 0x160   : > { %10784 = vst [vmem:[#allocation13_spill] sm:$0xff] %v8826_v11  ;;  %v6697_v18 = vpop.f32.mrb[37].mxu0  ;;  %v6741_v57 = vpop.f32.mrb[37].mxu1 }
 0x161   : > { %v8831_v49 = vpop.f32.mrb[38].mxu0  ;;  %v826_v10 = vpop.f32.mrb[38].mxu1 }
 0x162   : > { %v6698_v25 = vpop.f32.mrb[39].mxu0  ;;  %v6742_v31 = vpop.f32.mrb[39].mxu1  ;;  %7258 = vmatpush3.bf16.msra.mxu0 %v7724_v39  ;;  %v5970_v10 = vcombine.low %v8737_v29, %v8761_v20  ;;  %v4008_v29 = vld [vmem:[#allocation2 + $0x14] sm:$0xe]  ;;  %v10785_v20 = vmov 0.0  }
 0x163   : > { %7443 = vmatprep.subr.bf16.mxu0 %v10717_v23  ;;  %v5929_v25 = vcombine.low %v8841_v4, %v8843_v3  ;;  %v1953_v31 = vrot.slane %v1951_v58, 3  ;;  %v8862_v58 = vld [vmem:[#allocation2 + $0x58] sm:$0xf] }
 0x164   : > { %6980 = vmatmul.mubr.bf16.gmra.mrb[144].mxu1 %v1940_v40  ;;  %7076 = vmatmul.mubr.bf16.gmra.mrb[144].mxu0 %v5969_v37 }
 0x165   : > { %6983 = vmatprep.mubr.msk.bf16.mxu1 %vm8010_vm0, %v10717_v23  ;;  %7079 = vmatprep.mubr.msk.bf16.mxu0 %vm8010_vm0, %v10717_v23  ;;  %v1956_v23 = vrot.slane %v1954_v44, 4  ;;  %v8864_v44 = vld [vmem:[#allocation2 + $0x5c] sm:$0xf] }
 0x167   : > { %v8845_v18 = vpop.f32.mrb[40].mxu0  ;;  %v1124_v39 = vpop.f32.mrb[40].mxu1  ;;  %v1957_v59 = vor.u32 %v1956_v23, %v1953_v31 }
 0x168   : > { %v1125_v57 = vadd.f32 %v1124_v39, %v8614_v13  ;;  %v6701_v40 = vpop.f32.mrb[41].mxu0  ;;  %v6761_v37 = vpop.f32.mrb[41].mxu1  ;;  %v1960_v13 = vshrl.u32 %v5929_v25, 16  ;;  %v1963_v39 = vshll.u32 %v5929_v25, 16 }
 0x169   : > { %v8852_v36 = vpop.f32.mrb[42].mxu0  ;;  %v1127_v41 = vpop.f32.mrb[42].mxu1  ;;  %v8856_v40 = vld [vmem:[#allocation2 + $0x18] sm:$0xf]  ;;  %v5971_v37 = vcombine.low %v8763_v28, %v8790_v5  ;;  %v1958_v60 = vsel %vm1311_vm3, %v1948_v7, %v1957_v59  ;;  %v5972_v7 = vcombine.low %v8792_v21, %v8818_v2 }
 0x16a   : > { %v1128_v11 = vadd.f32 %v1127_v41, %v8618_v54  ;;  %v6702_v55 = vpop.f32.mrb[43].mxu0  ;;  %v6762_v63 = vpop.f32.mrb[43].mxu1  ;;  %v8867_v54 = vcombine.low %v4008_v29, %v8856_v40  ;;  %v1962_v19 = vrot.slane %v1960_v13, 3  ;;  %v1965_v38 = vrot.slane %v1963_v39, 4 }
 0x16b   : > { %v5930_v29 = vcombine.low %v8862_v58, %v8864_v44 }
 0x16c   : > { %6984 = vmatmul.mubr.bf16.gmra.mrb[148].mxu1 %v1949_v8  ;;  %7080 = vmatmul.mubr.bf16.gmra.mrb[148].mxu0 %v5970_v10  ;;  %10786 = vst [vmem:[#allocation14_spill] sm:$0xff] %v8867_v54  ;;  %v8871_v10 = vld [vmem:[#allocation2 + $0x1c] sm:$0xff]   ;;  %v4404_v25 = vshrl.u32 %v8867_v54, 16  ;;  %v4407_v41 = vshll.u32 %v8867_v54, 16 }
 0x16d   : > { %6987 = vmatprep.mubr.msk.bf16.mxu1 %vm8010_vm0, %v10785_v20  ;;  %7083 = vmatprep.mubr.msk.bf16.mxu0 %vm8010_vm0, %v10785_v20  ;;  %v10720_v13 = vshrl.u32 %v8871_v10, 16 }
 0x16e   : > { %v4406_v28 = vrot.slane %v4404_v25, 1  ;;  %v4409_v5 = vrot.slane %v4407_v41, 2 }
 0x16f   : > { %v1132_v63 = vpop.f32.mrb[44].mxu1  ;;  %v1508_v55 = vpop.f32.mrb[44].mxu0 }
 0x170   : > { %v1133_v23 = vadd.f32 %v1132_v63, %v8630_v35  ;;  %v6765_v8 = vpop.f32.mrb[45].mxu1  ;;  %v6861_v31 = vpop.f32.mrb[45].mxu0  ;;  %v8879_v16 = vadd.f32 %v1508_v55, %v1125_v57  ;;  %v10721_v35 = vshll.u32 %v8871_v10, 16  ;;  %v1966_v63 = vor.u32 %v1965_v38, %v1962_v19  ;;  %v8898_v38 = vld [vmem:[#allocation2 + $0x64] sm:$0xf] }
 0x171   : > { %v1135_v50 = vpop.f32.mrb[46].mxu1  ;;  %v1511_v32 = vpop.f32.mrb[46].mxu0  ;;  %v1969_v8 = vshrl.u32 %v5930_v29, 16  ;;  %v8886_v31 = vld [vmem:[#allocation2 + $0x24] sm:$0xff]  }
 0x172   : > { %v1136_v14 = vadd.f32 %v1135_v50, %v8637_v12  ;;  %v6862_v54 = vpop.f32.mrb[47].mxu0  ;;  %v6766_v52 = vpop.f32.mrb[47].mxu1  ;;  %v8884_v39 = vadd.f32 %v1511_v32, %v1128_v11  ;;  %v1972_v12 = vshll.u32 %v5930_v29, 16  ;;  %v4411_v50 = vrot.slane %v10720_v13, 1 }
 0x173   : > { %v4410_v52 = vor.u32 %v4409_v5, %v4406_v28  ;;  %v4412_v32 = vrot.slane %v10721_v35, 2  ;;  %v1967_v25 = vsel %vm1311_vm3, %v1957_v59, %v1966_v63  ;;  %v10723_v41 = vshll.u32 %v8886_v31, 16 }
 0x174   : > { %10787 = vst [vmem:[#allocation15_spill] sm:$0xff] %v8884_v39  ;;  %6988 = vmatmul.mubr.bf16.gmra.mrb[152].mxu1 %v1958_v60  ;;  %7084 = vmatmul.mubr.bf16.gmra.mrb[152].mxu0 %v5971_v37  ;;  %v8896_v60 = vld [vmem:[#allocation2 + $0x60] sm:$0xf]  ;;  %v1971_v13 = vrot.slane %v1969_v8, 3  ;;  %v1974_v35 = vrot.slane %v1972_v12, 4 }
 0x175   : > { %6991 = vmatprep.mubr.msk.bf16.mxu1 %vm8010_vm0, %v10785_v20  ;;  %7087 = vmatprep.mubr.msk.bf16.mxu0 %vm8010_vm0, %v10785_v20  ;;  %v8902_v57 = vor.u32 %v4412_v32, %v4411_v50  ;;  %v5931_v39 = vcombine.low %v8896_v60, %v8898_v38  ;;  %v4416_v59 = vrot.slane %v10723_v41, 2  ;;  %v8921_v8 = vld [vmem:[#allocation2 + $0x68] sm:$0xf]  ;;  %v8923_v12 = vld [vmem:[#allocation2 + $0x6c] sm:$0xf] }
 0x177   : > { %v1140_v19 = vpop.f32.mrb[48].mxu1  ;;  %v1516_v11 = vpop.f32.mrb[48].mxu0  ;;  %10788 = vst [vmem:[#allocation16_spill] sm:$0xff] %v8902_v57  ;;  %v8913_v21 = vsel %vm4402_vm4, %v4410_v52, %v8902_v57  ;;  %v1975_v52 = vor.u32 %v1974_v35, %v1971_v13 }
 0x178   : > { %v1141_v54 = vadd.f32 %v1140_v19, %v8651_v61  ;;  %v6769_v55 = vpop.f32.mrb[49].mxu1  ;;  %v6865_v37 = vpop.f32.mrb[49].mxu0  ;;  %v8907_v29 = vadd.f32 %v1516_v11, %v1133_v23  ;;  %10789 = vst [vmem:[#allocation17_spill] sm:$0xff] %v8913_v21  ;;  %v10722_v23 = vshrl.u32 %v8886_v31, 16  ;;  %v8925_v19 = vld [vmem:[#allocation2 + $0x2c] sm:$0xff]   ;;  %v1981_v11 = vshll.u32 %v5931_v39, 16 }
 0x179   : > { %v1143_v28 = vpop.f32.mrb[50].mxu1  ;;  %v1519_v5 = vpop.f32.mrb[50].mxu0 }
 0x17a   : > { %v1144_v61 = vadd.f32 %v1143_v28, %v8656_v22  ;;  %v6866_v2 = vpop.f32.mrb[51].mxu0  ;;  %v6770_v50 = vpop.f32.mrb[51].mxu1  ;;  %v8919_v32 = vadd.f32 %v1519_v5, %v1136_v14  ;;  %v4415_v22 = vrot.slane %v10722_v23, 1  ;;  %v1978_v14 = vshrl.u32 %v5931_v39, 16 }
 0x17b   : > { %v5973_v50 = vcombine.low %v8820_v45, %v8841_v4  ;;  %v10727_v23 = vshll.u32 %v8925_v19, 16  ;;  %v1976_v39 = vsel %vm1311_vm3, %v1966_v63, %v1975_v52 }
 0x17c   : > { %6992 = vmatmul.mubr.bf16.gmra.mrb[156].mxu1 %v1967_v25  ;;  %7088 = vmatmul.mubr.bf16.gmra.mrb[156].mxu0 %v5972_v7  ;;  %v8933_v55 = vor.u32 %v4416_v59, %v4415_v22  ;;  %v5932_v25 = vcombine.low %v8921_v8, %v8923_v12  ;;  %v1980_v59 = vrot.slane %v1978_v14, 3  ;;  %v1983_v22 = vrot.slane %v1981_v11, 4 }
 0x17d   : > { %6995 = vmatprep.mubr.msk.bf16.mxu1 %vm8010_vm0, %v10785_v20  ;;  %7091 = vmatprep.mubr.msk.bf16.mxu0 %vm8010_vm0, %v10785_v20 }
 0x17e   : > { %10790 = vst [vmem:[#allocation18_spill] sm:$0xff] %v8933_v55  ;;  %v1987_v4 = vshrl.u32 %v5932_v25, 16 }
 0x17f   : > { %v1148_v7 = vpop.f32.mrb[52].mxu1  ;;  %v1524_v37 = vpop.f32.mrb[52].mxu0 }
 0x180   : > { %v1149_v28 = vadd.f32 %v1148_v7, %v8672_v43  ;;  %v6773_v5 = vpop.f32.mrb[53].mxu1  ;;  %v6869_v2 = vpop.f32.mrb[53].mxu0  ;;  %v8941_v41 = vadd.f32 %v1524_v37, %v1141_v54  ;;  %v4420_v43 = vrot.slane %v10727_v23, 2  ;;  %v10726_v7 = vshrl.u32 %v8925_v19, 16  ;;  %v8950_v37 = vld [vmem:[#allocation2 + $0x34] sm:$0xff]  }
 0x181   : > { %v1151_v35 = vpop.f32.mrb[54].mxu1  ;;  %v1527_v13 = vpop.f32.mrb[54].mxu0  ;;  %v1990_v54 = vshll.u32 %v5932_v25, 16  ;;  %v5974_v25 = vcombine.low %v8843_v3, %v8862_v58  ;;  %v1989_v5 = vrot.slane %v1987_v4, 3  ;;  %v10728_v4 = vshrl.u32 %v8950_v37, 16 }
 0x182   : > { %v1152_v21 = vadd.f32 %v1151_v35, %v8677_v30  ;;  %v6870_v57 = vpop.f32.mrb[55].mxu0  ;;  %v6774_v55 = vpop.f32.mrb[55].mxu1  ;;  %v8948_v45 = vadd.f32 %v1527_v13, %v1144_v61  ;;  %v4419_v63 = vrot.slane %v10726_v7, 1  ;;  %v1984_v30 = vor.u32 %v1983_v22, %v1980_v59  ;;  %v8960_v61 = vld [vmem:[#allocation2 + $0x74] sm:$0xf] }
 0x183   : > { %v8958_v57 = vld [vmem:[#allocation2 + $0x70] sm:$0xf]  ;;  %v1992_v13 = vrot.slane %v1990_v54, 4 }
 0x184   : > { %6996 = vmatmul.mubr.bf16.gmra.mrb[160].mxu1 %v1976_v39  ;;  %7092 = vmatmul.mubr.bf16.gmra.mrb[160].mxu0 %v5973_v50  ;;  %v8962_v14 = vor.u32 %v4420_v43, %v4419_v63  ;;  %v10729_v39 = vshll.u32 %v8950_v37, 16  ;;  %v1985_v43 = vsel %vm1311_vm3, %v1975_v52, %v1984_v30  ;;  %v5933_v63 = vcombine.low %v8958_v57, %v8960_v61 }
 0x185   : > { %6999 = vmatprep.mubr.msk.bf16.mxu1 %vm8010_vm0, %v10785_v20  ;;  %7095 = vmatprep.mubr.msk.bf16.mxu0 %vm8010_vm0, %v10785_v20  ;;  %v4423_v52 = vrot.slane %v10728_v4, 1 }
 0x187   : > { %v1156_v11 = vpop.f32.mrb[56].mxu1  ;;  %v1532_v55 = vpop.f32.mrb[56].mxu0 }
 0x188   : > { %v1157_v2 = vadd.f32 %v1156_v11, %v8691_v27  ;;  %v6777_v50 = vpop.f32.mrb[57].mxu1  ;;  %v6873_v35 = vpop.f32.mrb[57].mxu0  ;;  %v8968_v59 = vadd.f32 %v1532_v55, %v1149_v28  ;;  %v4424_v27 = vrot.slane %v10729_v39, 2  ;;  %v1993_v28 = vor.u32 %v1992_v13, %v1989_v5  ;;  %v8979_v11 = vld [vmem:[#allocation2 + $0x3c] sm:$0xff]  }
 0x189   : > { %v1159_v22 = vpop.f32.mrb[58].mxu1  ;;  %v1535_v7 = vpop.f32.mrb[58].mxu0  ;;  %v1999_v55 = vshll.u32 %v5933_v63, 16  ;;  %v8987_v50 = vld [vmem:[#allocation2 + $0x78] sm:$0xf] }
 0x18a   : > { %v1160_v23 = vadd.f32 %v1159_v22, %v8695_v53  ;;  %v6874_v3 = vpop.f32.mrb[59].mxu0  ;;  %v6778_v58 = vpop.f32.mrb[59].mxu1  ;;  %v8977_v54 = vadd.f32 %v1535_v7, %v1152_v21  ;;  %v1996_v53 = vshrl.u32 %v5933_v63, 16  ;;  %v8989_v21 = vld [vmem:[#allocation2 + $0x7c] sm:$0xf]  ;;  %v8991_v7 = vor.u32 %v4424_v27, %v4423_v52 }
 0x18b   : > { %v5975_v3 = vcombine.low %v8864_v44, %v8896_v60  ;;  %v10731_v58 = vshll.u32 %v8979_v11, 16  ;;  %v5934_v27 = vcombine.low %v8987_v50, %v8989_v21  ;;  %v10730_v44 = vshrl.u32 %v8979_v11, 16 }
 0x18c   : > { %10791 = vst [vmem:[#allocation19_spill] sm:$0xff] %v8977_v54  ;;  %7000 = vmatmul.mubr.bf16.gmra.mrb[164].mxu1 %v1985_v43  ;;  %7096 = vmatmul.mubr.bf16.gmra.mrb[164].mxu0 %v5974_v25  ;;  %10792 = vst [vmem:[#allocation20_spill] sm:$0xff] %v8991_v7  ;;  %v1994_v43 = vsel %vm1311_vm3, %v1984_v30, %v1993_v28  ;;  %v1998_v39 = vrot.slane %v1996_v53, 3  ;;  %v2001_v54 = vrot.slane %v1999_v55, 4  ;;  %v9008_v53 = vld [vmem:[#allocation2 + $0x44] sm:$0xff]  }
 0x18d   : > { %7003 = vmatprep.mubr.msk.bf16.mxu1 %vm8010_vm0, %v10785_v20  ;;  %7099 = vmatprep.mubr.msk.bf16.mxu0 %vm8010_vm0, %v10785_v20  ;;  %v4428_v30 = vrot.slane %v10731_v58, 2  ;;  %v4427_v55 = vrot.slane %v10730_v44, 1  ;;  %v5976_v44 = vcombine.low %v8898_v38, %v8921_v8  ;;  %v10734_v8 = vshrl.u32 %v9008_v53, 16 }
 0x18f   : > { %v1164_v25 = vpop.f32.mrb[60].mxu1  ;;  %v1540_v5 = vpop.f32.mrb[60].mxu0 }
 0x190   : > { %v1165_v35 = vadd.f32 %v1164_v25, %v8712_v15  ;;  %v6781_v13 = vpop.f32.mrb[61].mxu1  ;;  %v6877_v22 = vpop.f32.mrb[61].mxu0  ;;  %v9000_v52 = vadd.f32 %v1540_v5, %v1157_v2  ;;  %v2005_v2 = vshrl.u32 %v5934_v27, 16  ;;  %v2008_v5 = vshll.u32 %v5934_v27, 16 }
 0x191   : > { %v1167_v63 = vpop.f32.mrb[62].mxu1  ;;  %v1543_v4 = vpop.f32.mrb[62].mxu0  ;;  %v9016_v22 = vld [vmem:[#allocation2 + $0x80] sm:$0xf] }
 0x192   : > { %10793 = vst [vmem:[#allocation21_spill] sm:$0xff] %v9000_v52  ;;  %v1168_v15 = vadd.f32 %v1167_v63, %v8719_v26  ;;  %v6878_v25 = vpop.f32.mrb[63].mxu0  ;;  %v6782_v13 = vpop.f32.mrb[63].mxu1  ;;  %v9006_v60 = vadd.f32 %v1543_v4, %v1160_v23  ;;  %v2002_v26 = vor.u32 %v2001_v54, %v1998_v39  ;;  %v9018_v23 = vld [vmem:[#allocation2 + $0x84] sm:$0xf]  ;;  %v9020_v4 = vor.u32 %v4428_v30, %v4427_v55 }
 0x193   : > { %v5935_v39 = vcombine.low %v9016_v22, %v9018_v23  ;;  %v10735_v54 = vshll.u32 %v9008_v53, 16  ;;  %v2007_v30 = vrot.slane %v2005_v2, 3  ;;  %v2010_v55 = vrot.slane %v2008_v5, 4  ;;  %v9045_v2 = vld [vmem:[#allocation2 + $0x88] sm:$0xf] }
 0x194   : > { %10794 = vst [vmem:[#allocation22_spill] sm:$0xff] %v9006_v60  ;;  %7004 = vmatmul.mubr.bf16.gmra.mrb[168].mxu1 %v1994_v43  ;;  %7100 = vmatmul.mubr.bf16.gmra.mrb[168].mxu0 %v5975_v3  ;;  %10795 = vst [vmem:[#allocation23_spill] sm:$0xff] %v9020_v4  ;;  %v2003_v60 = vsel %vm1311_vm3, %v1993_v28, %v2002_v26  ;;  %v9037_v28 = vld [vmem:[#allocation2 + $0x4c] sm:$0xff]   ;;  %v5977_v5 = vcombine.low %v8923_v12, %v8958_v57 }
 0x195   : > { %7007 = vmatprep.mubr.msk.bf16.mxu1 %vm8010_vm0, %v10785_v20  ;;  %7103 = vmatprep.mubr.msk.bf16.mxu0 %vm8010_vm0, %v10785_v20  ;;  %v4432_v38 = vrot.slane %v10735_v54, 2  ;;  %v2014_v52 = vshrl.u32 %v5935_v39, 16  ;;  %v2017_v7 = vshll.u32 %v5935_v39, 16 }
 0x197   : > { %v1172_v43 = vpop.f32.mrb[64].mxu1  ;;  %v1548_v3 = vpop.f32.mrb[64].mxu0 }
 0x198   : > { %v1173_v63 = vadd.f32 %v1172_v43, %v8739_v42  ;;  %v6785_v25 = vpop.f32.mrb[65].mxu1  ;;  %v6881_v13 = vpop.f32.mrb[65].mxu0  ;;  %v9029_v4 = vadd.f32 %v1548_v3, %v1165_v35  ;;  %v4431_v35 = vrot.slane %v10734_v8, 1  ;;  %v10738_v8 = vshll.u32 %v9037_v28, 16 }
 0x199   : > { %v1175_v27 = vpop.f32.mrb[66].mxu1  ;;  %v1551_v58 = vpop.f32.mrb[66].mxu0 }
 0x19a   : > { %v1176_v42 = vadd.f32 %v1175_v27, %v8747_v56  ;;  %v6882_v43 = vpop.f32.mrb[67].mxu0  ;;  %v6786_v25 = vpop.f32.mrb[67].mxu1  ;;  %v9035_v13 = vadd.f32 %v1551_v58, %v1168_v15  ;;  %v2011_v56 = vor.u32 %v2010_v55, %v2007_v30  ;;  %v9047_v58 = vld [vmem:[#allocation2 + $0x8c] sm:$0xf]  ;;  %v9049_v15 = vor.u32 %v4432_v38, %v4431_v35 }
 0x19b   : > { %v2016_v43 = vrot.slane %v2014_v52, 3  ;;  %v2019_v25 = vrot.slane %v2017_v7, 4  ;;  %v5936_v38 = vcombine.low %v9045_v2, %v9047_v58  ;;  %v10737_v7 = vshrl.u32 %v9037_v28, 16 }
 0x19c   : > { %7008 = vmatmul.mubr.bf16.gmra.mrb[172].mxu1 %v2003_v60  ;;  %7104 = vmatmul.mubr.bf16.gmra.mrb[172].mxu0 %v5976_v44  ;;  %10796 = vst [vmem:[#allocation24_spill] sm:$0xff] %v9049_v15  ;;  %v2012_v54 = vsel %vm1311_vm3, %v2002_v26, %v2011_v56  ;;  %v9066_v26 = vld [vmem:[#allocation2 + $0x54] sm:$0xff]  }
 0x19d   : > { %7011 = vmatprep.mubr.msk.bf16.mxu1 %vm8010_vm0, %v10785_v20  ;;  %7107 = vmatprep.mubr.msk.bf16.mxu0 %vm8010_vm0, %v10785_v20 }
 0x19f   : > { %v1180_v44 = vpop.f32.mrb[68].mxu1  ;;  %v1556_v60 = vpop.f32.mrb[68].mxu0 }
 0x1a0   : > { %v1181_v3 = vadd.f32 %v1180_v44, %v8767_v24  ;;  %v6789_v39 = vpop.f32.mrb[69].mxu1  ;;  %v6885_v27 = vpop.f32.mrb[69].mxu0  ;;  %v9058_v35 = vadd.f32 %v1556_v60, %v1173_v63  ;;  %v4436_v24 = vrot.slane %v10738_v8, 2  ;;  %v2020_v44 = vor.u32 %v2019_v25, %v2016_v43 }
 0x1a1   : > { %v1183_v30 = vpop.f32.mrb[70].mxu1  ;;  %v1559_v55 = vpop.f32.mrb[70].mxu0  ;;  %v4435_v63 = vrot.slane %v10737_v7, 1  ;;  %v2026_v60 = vshll.u32 %v5936_v38, 16  ;;  %v9074_v39 = vld [vmem:[#allocation2 + $0x90] sm:$0xf] }
 0x1a2   : > { %v1184_v15 = vadd.f32 %v1183_v30, %v8776_v46  ;;  %v6886_v12 = vpop.f32.mrb[71].mxu0  ;;  %v6790_v57 = vpop.f32.mrb[71].mxu1  ;;  %v9064_v52 = vadd.f32 %v1559_v55, %v1176_v42  ;;  %v2023_v46 = vshrl.u32 %v5936_v38, 16  ;;  %v9076_v42 = vld [vmem:[#allocation2 + $0x94] sm:$0xf]  ;;  %v2021_v55 = vsel %vm1311_vm3, %v2011_v56, %v2020_v44 }
 0x1a3   : > { %v5978_v12 = vcombine.low %v8960_v61, %v8987_v50  ;;  %v10740_v57 = vshll.u32 %v9066_v26, 16  ;;  %v10739_v61 = vshrl.u32 %v9066_v26, 16 }
 0x1a4   : > { %10797 = vst [vmem:[#allocation25_spill] sm:$0xff] %v9064_v52  ;;  %7012 = vmatmul.mubr.bf16.gmra.mrb[176].mxu1 %v2012_v54  ;;  %7108 = vmatmul.mubr.bf16.gmra.mrb[176].mxu0 %v5977_v5  ;;  %v9078_v54 = vor.u32 %v4436_v24, %v4435_v63  ;;  %v2025_v8 = vrot.slane %v2023_v46, 3  ;;  %v2028_v52 = vrot.slane %v2026_v60, 4  ;;  %v5937_v24 = vcombine.low %v9074_v39, %v9076_v42  ;;  %v9095_v46 = vld [vmem:[#allocation2 + $0x5c] sm:$0xff]  }
 0x1a5   : > { %7015 = vmatprep.mubr.msk.bf16.mxu1 %vm8010_vm0, %v10785_v20  ;;  %7111 = vmatprep.mubr.msk.bf16.mxu0 %vm8010_vm0, %v10785_v20  ;;  %v4440_v56 = vrot.slane %v10740_v57, 2  ;;  %v4439_v60 = vrot.slane %v10739_v61, 1  ;;  %v5979_v61 = vcombine.low %v8989_v21, %v9016_v22  ;;  %v10743_v22 = vshrl.u32 %v9095_v46, 16 }
 0x1a6   : > { %10798 = vst [vmem:[#allocation26_spill] sm:$0xff] %v9078_v54 }
 0x1a7   : > { %v1188_v5 = vpop.f32.mrb[72].mxu1  ;;  %v1564_v27 = vpop.f32.mrb[72].mxu0 }
 0x1a8   : > { %v1189_v43 = vadd.f32 %v1188_v5, %v8796_v33  ;;  %v6793_v25 = vpop.f32.mrb[73].mxu1  ;;  %v6889_v30 = vpop.f32.mrb[73].mxu0  ;;  %v9087_v63 = vadd.f32 %v1564_v27, %v1181_v3  ;;  %v2032_v3 = vshrl.u32 %v5937_v24, 16  ;;  %v2035_v27 = vshll.u32 %v5937_v24, 16 }
 0x1a9   : > { %v1191_v38 = vpop.f32.mrb[74].mxu1  ;;  %v1567_v7 = vpop.f32.mrb[74].mxu0  ;;  %v9103_v30 = vld [vmem:[#allocation2 + $0x98] sm:$0xf] }
 0x1aa   : > { %10799 = vst [vmem:[#allocation27_spill] sm:$0xff] %v9087_v63  ;;  %v1192_v33 = vadd.f32 %v1191_v38, %v8805_v6  ;;  %v6890_v5 = vpop.f32.mrb[75].mxu0  ;;  %v6794_v25 = vpop.f32.mrb[75].mxu1  ;;  %v9093_v50 = vadd.f32 %v1567_v7, %v1184_v15  ;;  %v2029_v6 = vor.u32 %v2028_v52, %v2025_v8  ;;  %v9105_v15 = vld [vmem:[#allocation2 + $0x9c] sm:$0xf]  ;;  %v9107_v7 = vor.u32 %v4440_v56, %v4439_v60 }
 0x1ab   : > { %v5938_v8 = vcombine.low %v9103_v30, %v9105_v15  ;;  %v10744_v52 = vshll.u32 %v9095_v46, 16  ;;  %v2034_v56 = vrot.slane %v2032_v3, 3  ;;  %v2037_v60 = vrot.slane %v2035_v27, 4  ;;  %v9132_v3 = vld [vmem:[#allocation2 + $0xa0] sm:$0xf] }
 0x1ac   : > { %10800 = vst [vmem:[#allocation28_spill] sm:$0xff] %v9093_v50  ;;  %7016 = vmatmul.mubr.bf16.gmra.mrb[180].mxu1 %v2021_v55  ;;  %7112 = vmatmul.mubr.bf16.gmra.mrb[180].mxu0 %v5978_v12  ;;  %10801 = vst [vmem:[#allocation29_spill] sm:$0xff] %v9107_v7  ;;  %v2030_v50 = vsel %vm1311_vm3, %v2020_v44, %v2029_v6  ;;  %v9124_v44 = vld [vmem:[#allocation2 + $0x64] sm:$0xff]   ;;  %v5980_v27 = vcombine.low %v9018_v23, %v9045_v2 }
 0x1ad   : > { %7019 = vmatprep.mubr.msk.bf16.mxu1 %vm8010_vm0, %v10785_v20  ;;  %7115 = vmatprep.mubr.msk.bf16.mxu0 %vm8010_vm0, %v10785_v20  ;;  %v4444_v21 = vrot.slane %v10744_v52, 2  ;;  %v2041_v63 = vshrl.u32 %v5938_v8, 16  ;;  %v2044_v54 = vshll.u32 %v5938_v8, 16 }
 0x1af   : > { %v1196_v55 = vpop.f32.mrb[76].mxu1  ;;  %v1572_v12 = vpop.f32.mrb[76].mxu0 }
 0x1b0   : > { %v1197_v38 = vadd.f32 %v1196_v55, %v8824_v0  ;;  %v6797_v5 = vpop.f32.mrb[77].mxu1  ;;  %v6893_v25 = vpop.f32.mrb[77].mxu0  ;;  %v9116_v7 = vadd.f32 %v1572_v12, %v1189_v43  ;;  %v4443_v43 = vrot.slane %v10743_v22, 1  ;;  %v9140_v12 = vld [vmem:[#allocation2 + $0x6c] sm:$0xff]   ;;  %v2046_v22 = vrot.slane %v2044_v54, 4 }
 0x1b1   : > { %v1199_v24 = vpop.f32.mrb[78].mxu1  ;;  %v1575_v57 = vpop.f32.mrb[78].mxu0  ;;  %v10747_v54 = vshrl.u32 %v9124_v44, 16 }
 0x1b2   : > { %v1200_v0 = vadd.f32 %v1199_v24, %v8831_v49  ;;  %v6894_v55 = vpop.f32.mrb[79].mxu0  ;;  %v6798_v5 = vpop.f32.mrb[79].mxu1  ;;  %v9122_v25 = vadd.f32 %v1575_v57, %v1192_v33  ;;  %v2038_v49 = vor.u32 %v2037_v60, %v2034_v56  ;;  %v9134_v57 = vld [vmem:[#allocation2 + $0xa4] sm:$0xf]  ;;  %v9136_v33 = vor.u32 %v4444_v21, %v4443_v43 }
 0x1b3   : > { %v2043_v5 = vrot.slane %v2041_v63, 3  ;;  %v10748_v56 = vshll.u32 %v9124_v44, 16  ;;  %v5939_v43 = vcombine.low %v9132_v3, %v9134_v57  ;;  %v10746_v63 = vshll.u32 %v9140_v12, 16 }
 0x1b4   : > { %10802 = vst [vmem:[#allocation30_spill] sm:$0xff] %v9122_v25  ;;  %7020 = vmatmul.mubr.bf16.gmra.mrb[184].mxu1 %v2030_v50  ;;  %7116 = vmatmul.mubr.bf16.gmra.mrb[184].mxu0 %v5979_v61  ;;  %10803 = vst [vmem:[#allocation31_spill] sm:$0xff] %v9136_v33  ;;  %v2039_v21 = vsel %vm1311_vm3, %v2029_v6, %v2038_v49 }
 0x1b5   : > { %7023 = vmatprep.mubr.msk.bf16.mxu1 %vm8010_vm0, %v10785_v20  ;;  %7119 = vmatprep.mubr.msk.bf16.mxu0 %vm8010_vm0, %v10785_v20  ;;  %v2047_v6 = vor.u32 %v2046_v22, %v2043_v5 }
 0x1b7   : > { %v1204_v61 = vpop.f32.mrb[80].mxu1  ;;  %v1580_v50 = vpop.f32.mrb[80].mxu0 }
 0x1b8   : > { %v1205_v8 = vadd.f32 %v1204_v61, %v8845_v18  ;;  %v6801_v24 = vpop.f32.mrb[81].mxu1  ;;  %v6897_v55 = vpop.f32.mrb[81].mxu0  ;;  %v9147_v33 = vadd.f32 %v1580_v50, %v1197_v38  ;;  %v4448_v18 = vrot.slane %v10748_v56, 2  ;;  %v4447_v38 = vrot.slane %v10747_v54, 1  ;;  %v9167_v50 = vld [vmem:[#allocation2 + $0xac] sm:$0xf] }
 0x1b9   : > { %v1207_v60 = vpop.f32.mrb[82].mxu1  ;;  %v1583_v52 = vpop.f32.mrb[82].mxu0  ;;  %v10749_v24 = vshrl.u32 %v9140_v12, 16 }
 0x1ba   : > { %v1208_v23 = vadd.f32 %v1207_v60, %v8852_v36  ;;  %v6898_v2 = vpop.f32.mrb[83].mxu0  ;;  %v6802_v25 = vpop.f32.mrb[83].mxu1  ;;  %v9154_v61 = vadd.f32 %v1583_v52, %v1200_v0  ;;  %v2050_v36 = vshrl.u32 %v5939_v43, 16  ;;  %v4452_v52 = vrot.slane %v10746_v63, 2  ;;  %v9165_v0 = vld [vmem:[#allocation2 + $0xa8] sm:$0xf] }
 0x1bb   : > { %v2053_v25 = vshll.u32 %v5939_v43, 16  ;;  %v9169_v22 = vor.u32 %v4448_v18, %v4447_v38  ;;  %v2048_v43 = vsel %vm1311_vm3, %v2038_v49, %v2047_v6  ;;  %v5981_v63 = vcombine.low %v9047_v58, %v9074_v39 }
 0x1bc   : > { %10804 = vst [vmem:[#allocation32_spill] sm:$0xff] %v9154_v61  ;;  %7024 = vmatmul.mubr.bf16.gmra.mrb[188].mxu1 %v2039_v21  ;;  %7120 = vmatmul.mubr.bf16.gmra.mrb[188].mxu0 %v5980_v27  ;;  %v4451_v27 = vrot.slane %v10749_v24, 1  ;;  %v2052_v18 = vrot.slane %v2050_v36, 3  ;;  %v5940_v24 = vcombine.low %v9165_v0, %v9167_v50 }
 0x1bd   : > { %7027 = vmatprep.mubr.msk.bf16.mxu1 %vm8010_vm0, %v10785_v20  ;;  %7123 = vmatprep.mubr.msk.bf16.mxu0 %vm8010_vm0, %v10785_v20  ;;  %10805 = vst [vmem:[#allocation33_spill] sm:$0xff] %v9169_v22  ;;  %v2055_v38 = vrot.slane %v2053_v25, 4 }
 0x1be   : > { %v9177_v54 = vor.u32 %v4452_v52, %v4451_v27  ;;  %v2059_v39 = vshrl.u32 %v5940_v24, 16  ;;  %v2062_v49 = vshll.u32 %v5940_v24, 16 }
 0x1bf   : > { %v1212_v55 = vpop.f32.mrb[84].mxu1  ;;  %v1588_v5 = vpop.f32.mrb[84].mxu0  ;;  %v2056_v58 = vor.u32 %v2055_v38, %v2052_v18 }
 0x1c0   : > { %v1213_v60 = vadd.f32 %v1212_v55, %v8616_v34  ;;  %v6805_v21 = vpop.f32.mrb[85].mxu1  ;;  %v6901_v2 = vpop.f32.mrb[85].mxu0  ;;  %v9181_v22 = vadd.f32 %v1588_v5, %v1205_v8  ;;  %v2061_v27 = vrot.slane %v2059_v39, 3  ;;  %v2064_v5 = vrot.slane %v2062_v49, 4 }
 0x1c1   : > { %v1215_v56 = vpop.f32.mrb[86].mxu1  ;;  %v1591_v61 = vpop.f32.mrb[86].mxu0  ;;  %v2057_v52 = vsel %vm1311_vm3, %v2047_v6, %v2056_v58 }
 0x1c2   : > { %v1216_v34 = vadd.f32 %v1215_v56, %v8622_v48  ;;  %v6902_v55 = vpop.f32.mrb[87].mxu0  ;;  %v6806_v21 = vpop.f32.mrb[87].mxu1  ;;  %v9184_v2 = vadd.f32 %v1591_v61, %v1208_v23  ;;  %v5982_v23 = vcombine.low %v9076_v42, %v9103_v30 }
 0x1c4   : > { %7028 = vmatmul.mubr.bf16.gmra.mrb[192].mxu1 %v2048_v43  ;;  %7124 = vmatmul.mubr.bf16.gmra.mrb[192].mxu0 %v5981_v63 }
 0x1c5   : > { %7031 = vmatprep.mubr.msk.bf16.mxu1 %vm8010_vm0, %v10785_v20  ;;  %7127 = vmatprep.mubr.msk.bf16.mxu0 %vm8010_vm0, %v10785_v20 }
 0x1c7   : > { %v1220_v36 = vpop.f32.mrb[88].mxu1  ;;  %v1596_v8 = vpop.f32.mrb[88].mxu0 }
 0x1c8   : > { %v1221_v25 = vadd.f32 %v1220_v36, %v8632_v62  ;;  %v6809_v48 = vpop.f32.mrb[89].mxu1  ;;  %v6905_v56 = vpop.f32.mrb[89].mxu0  ;;  %v9194_v43 = vadd.f32 %v1596_v8, %v1213_v60  ;;  %v2065_v62 = vor.u32 %v2064_v5, %v2061_v27  ;;  %v7727_v36 = vld [vmem:[#allocation2 + $0xc] sm:$0xff]   ;;  %v5984_v27 = vcombine.low %v9134_v57, %v9165_v0 }
 0x1c9   : > { %v1223_v61 = vpop.f32.mrb[90].mxu1  ;;  %v1599_v63 = vpop.f32.mrb[90].mxu0  ;;  %v2891_v5 = vshrl.u32 %v7727_v36, 16 }
 0x1ca   : > { %v1224_v18 = vadd.f32 %v1223_v61, %v8639_v17  ;;  %v6906_v24 = vpop.f32.mrb[91].mxu0  ;;  %v6810_v38 = vpop.f32.mrb[91].mxu1  ;;  %v9197_v55 = vadd.f32 %v1599_v63, %v1216_v34  ;;  %v5983_v17 = vcombine.low %v9105_v15, %v9132_v3  ;;  %v2066_v49 = vsel %vm1311_vm3, %v2056_v58, %v2065_v62  ;;  %v3367_v3 = vld [vmem:[#allocation2 + $0x14] sm:$0xf] }
 0x1cb   : > { %v2893_v15 = vshll.u32 %v7727_v36, 16 }
 0x1cc   : > { %7032 = vmatmul.mubr.bf16.gmra.mrb[196].mxu1 %v2057_v52  ;;  %7128 = vmatmul.mubr.bf16.gmra.mrb[196].mxu0 %v5982_v23 }
 0x1cd   : > { %7035 = vmatprep.mubr.msk.bf16.mxu1 %vm8010_vm0, %v10785_v20  ;;  %7131 = vmatprep.mubr.msk.bf16.mxu0 %vm8010_vm0, %v10785_v20  ;;  %v2895_v38 = vrot.slane %v2893_v15, 1 }
 0x1cf   : > { %v1228_v42 = vpop.f32.mrb[92].mxu1  ;;  %v1604_v30 = vpop.f32.mrb[92].mxu0  ;;  %v2896_v57 = vor.u32 %v2895_v38, %v2891_v5  ;;  %v10807_v5 = vld [vmem:[#allocation4_spill] sm:$0xff] }
 0x1d0   : > { %v1229_v6 = vadd.f32 %v1228_v42, %v8653_v1  ;;  %v6813_v60 = vpop.f32.mrb[93].mxu1  ;;  %v6909_v21 = vpop.f32.mrb[93].mxu0  ;;  %v9207_v8 = vadd.f32 %v1604_v30, %v1221_v25  ;;  %v7728_v1 = vld [vmem:[#allocation2 + $0x14] sm:$0xff]   ;;  %v6055_v30 = vcombine.low %v3367_v3, %v8856_v40 }
 0x1d1   : > { %v1231_v34 = vpop.f32.mrb[94].mxu1  ;;  %v1607_v39 = vpop.f32.mrb[94].mxu0  ;;  %v2898_v42 = vshll.u32 %v7728_v1, 16 }
 0x1d2   : > { %v1232_v48 = vadd.f32 %v1231_v34, %v8660_v9  ;;  %v6910_v56 = vpop.f32.mrb[95].mxu0  ;;  %v6814_v23 = vpop.f32.mrb[95].mxu1  ;;  %v9210_v61 = vadd.f32 %v1607_v39, %v1224_v18  ;;  %v3534_v0 = vshll.u32 %v6055_v30, 16 }
 0x1d3   : > { %v2900_v40 = vrot.slane %v2898_v42, 1  ;;  %v5985_v56 = vcombine.low %v9167_v50, %v9167_v50  ;;  %v2902_v23 = vshrl.u32 %v7728_v1, 16  ;;  %v7729_v42 = vld [vmem:[%s8084_s8 + $0x1c0] sm:$0xff]  }
 0x1d4   : > { %7036 = vmatmul.mubr.bf16.gmra.mrb[200].mxu1 %v2066_v49  ;;  %7132 = vmatmul.mubr.bf16.gmra.mrb[200].mxu0 %v5983_v17  ;;  %v10806_v49 = vld [vmem:[#allocation3_spill] sm:$0xff] }
 0x1d5   : > { %7039 = vmatprep.mubr.msk.bf16.mxu1 %vm8010_vm0, %v10785_v20  ;;  %7135 = vmatprep.mubr.msk.bf16.mxu0 %vm8010_vm0, %v10785_v20  ;;  %v2904_v50 = vor.u32 %v2902_v23, %v2900_v40 }
 0x1d7   : > { %v1236_v58 = vpop.f32.mrb[96].mxu1  ;;  %v1612_v25 = vpop.f32.mrb[96].mxu0 }
 0x1d8   : > { %v1237_v63 = vadd.f32 %v1236_v58, %v8674_v51  ;;  %v6817_v9 = vpop.f32.mrb[97].mxu1  ;;  %v6913_v52 = vpop.f32.mrb[97].mxu0  ;;  %v9220_v60 = vadd.f32 %v1612_v25, %v1229_v6  ;;  %v9225_v51 = vld [vmem:[#allocation2 + $0x1c] sm:$0xff]   ;;  %v2901_v25 = vsel %vm2889_vm5, %v2896_v57, %v2900_v40  ;;  %v9248_v57 = vld [vmem:[#allocation2 + $0x24] sm:$0xff]   ;;  %v10809_v40 = vld [vmem:[#allocation5_spill] sm:$0xff] }
 0x1d9   : > { %v1239_v18 = vpop.f32.mrb[98].mxu1  ;;  %v1615_v24 = vpop.f32.mrb[98].mxu0  ;;  %v2906_v15 = vshll.u32 %v9225_v51, 16  ;;  %v3532_v9 = vshrl.u32 %v6055_v30, 16  ;;  %v3536_v52 = vrot.slane %v3534_v0, 1  ;;  %v10808_v30 = vshll.u32 %v8871_v10, 16 }
 0x1da   : > { %v1240_v21 = vadd.f32 %v1239_v18, %v8679_v47  ;;  %v6914_v17 = vpop.f32.mrb[99].mxu0  ;;  %v6818_v34 = vpop.f32.mrb[99].mxu1  ;;  %v9223_v39 = vadd.f32 %v1615_v24, %v1232_v48 }
 0x1db   : > { %v2908_v1 = vrot.slane %v2906_v15, 1  ;;  %v3541_v34 = vrot.slane %v10808_v30, 1  ;;  %v10811_v30 = vshrl.u32 %v8871_v10, 16  ;;  %v2918_v10 = vshrl.u32 %v9248_v57, 16 }
 0x1dc   : > { %7040 = vmatmul.mubr.bf16.gmra.mrb[204].mxu1 %v2065_v62  ;;  %7136 = vmatmul.mubr.bf16.gmra.mrb[204].mxu0 %v5984_v27 }
 0x1dd   : > { %7139 = vmatprep.mubr.msk.bf16.mxu0 %vm8010_vm0, %v10785_v20  ;;  %7159 = vmatprep.mubr.msk.bf16.mxu1 %vm8010_vm0, %v10785_v20 }
 0x1df   : > { %v1244_v6 = vpop.f32.mrb[100].mxu1  ;;  %v1620_v47 = vpop.f32.mrb[100].mxu0 }
 0x1e0   : > { %v1245_v36 = vadd.f32 %v1244_v6, %v10806_v49  ;;  %v6821_v48 = vpop.f32.mrb[101].mxu1  ;;  %v6917_v62 = vpop.f32.mrb[101].mxu0  ;;  %v9236_v27 = vadd.f32 %v1620_v47, %v1237_v63  ;;  %v3537_v63 = vor.u32 %v3536_v52, %v3532_v9  ;;  %v10810_v52 = vld [vmem:[#allocation6_spill] sm:$0xff] }
 0x1e1   : > { %v1247_v3 = vpop.f32.mrb[102].mxu1  ;;  %v1623_v58 = vpop.f32.mrb[102].mxu0  ;;  %v2909_v62 = vsel %vm2889_vm5, %v2904_v50, %v2908_v1 }
 0x1e2   : > { %v1248_v18 = vadd.f32 %v1247_v3, %v10807_v5  ;;  %v6918_v24 = vpop.f32.mrb[103].mxu0  ;;  %v6822_v38 = vpop.f32.mrb[103].mxu1  ;;  %v9240_v17 = vadd.f32 %v1623_v58, %v1240_v21  ;;  %v7739_v21 = vld [vmem:[%s8084_s8 + $0x1c8] sm:$0xff]   ;;  %v3542_v15 = vsel %vm2889_vm5, %v3537_v63, %v3541_v34  ;;  %v7734_v3 = vld [vmem:[%s8084_s8 + $0x200] sm:$0xff]   ;;  %v2910_v58 = vshrl.u32 %v9225_v51, 16 }
 0x1e3   : > { %v9265_v63 = vld [vmem:[#allocation2 + $0x2c] sm:$0xff]  }
 0x1e4   : > { %7140 = vmatmul.mubr.bf16.gmra.mrb[208].mxu0 %v5985_v56  ;;  %7160 = vmatmul.mubr.bf16.vlgmr.msra.gmra.mrb[208].mxu1 %v2901_v25  ;;  %v2914_v25 = vshll.u32 %v9248_v57, 16  ;;  %v2912_v51 = vor.u32 %v2910_v58, %v2908_v1  ;;  %v7748_v57 = vld [vmem:[%s8084_s8 + $0x210] sm:$0xff]  }
 0x1e5   : > { %7163 = vmatprep.mubr.msk.bf16.mxu1 %vm8010_vm0, %v10785_v20  ;;  %7259 = vmatprep.mubr.msk.bf16.mxu0 %vm8010_vm0, %v10785_v20 }
 0x1e6   : > { %7344 = vmatpush3.bf16.msra.mxu1 %v7729_v42  ;;  %v7747_v42 = vld [vmem:[%s8084_s8 + $0x1d0] sm:$0xff]  }
 0x1e7   : > { %v1252_v0 = vpop.f32.mrb[104].mxu1  ;;  %v1628_v6 = vpop.f32.mrb[104].mxu0  ;;  %7345 = vmatprep.subr.bf16.mxu1 %v10785_v20 }
 0x1e8   : > { %v1253_v47 = vadd.f32 %v1252_v0, %v10809_v40  ;;  %v6825_v49 = vpop.f32.mrb[105].mxu1  ;;  %v6921_v48 = vpop.f32.mrb[105].mxu0  ;;  %v9258_v9 = vadd.f32 %v1628_v6, %v1245_v36  ;;  %v2916_v36 = vrot.slane %v2914_v25, 1  ;;  %v3545_v0 = vor.u32 %v10811_v30, %v3541_v34  ;;  %v7740_v40 = vld [vmem:[%s8084_s8 + $0x208] sm:$0xff]  }
 0x1e9   : > { %v1255_v56 = vpop.f32.mrb[106].mxu1  ;;  %v1631_v23 = vpop.f32.mrb[106].mxu0  ;;  %v7753_v48 = vld [vmem:[%s8084_s8 + $0x1d8] sm:$0xff]   ;;  %v2922_v34 = vshll.u32 %v9265_v63, 16 }
 0x1ea   : > { %v1256_v5 = vadd.f32 %v1255_v56, %v10810_v52  ;;  %v6922_v24 = vpop.f32.mrb[107].mxu0  ;;  %v6826_v38 = vpop.f32.mrb[107].mxu1  ;;  %7346 = vmatpush3.bf16.msra.mxu1 %v7739_v21  ;;  %v9263_v50 = vadd.f32 %v1631_v23, %v1248_v18  ;;  %v10812_v21 = vshll.u32 %v8886_v31, 16  ;;  %v2917_v58 = vsel %vm2889_vm5, %v2912_v51, %v2916_v36 }
 0x1eb   : > { %7347 = vmatprep.subr.bf16.mxu1 %v10785_v20  ;;  %v10814_v24 = vld [vmem:[#allocation8_spill] sm:$0xff]  ;;  %v2920_v51 = vor.u32 %v2918_v10, %v2916_v36  ;;  %v10817_v10 = vld [vmem:[#allocation9_spill] sm:$0xff] }
 0x1ec   : > { %7164 = vmatmul.mubr.bf16.gmra.mrb[212].mxu1 %v2909_v62  ;;  %7260 = vmatmul.mubr.bf16.vlgmr.msra.gmra.mrb[212].mxu0 %v3542_v15  ;;  %v3549_v6 = vrot.slane %v10812_v21, 1  ;;  %v10813_v62 = vld [vmem:[#allocation7_spill] sm:$0xff] }
 0x1ed   : > { %7444 = vmatpush3.bf16.msra.mxu0 %v7734_v3  ;;  %7167 = vmatprep.mubr.msk.bf16.mxu1 %vm8010_vm0, %v10785_v20  ;;  %v7761_v21 = vld [vmem:[%s8084_s8 + $0x1e0] sm:$0xff]  }
 0x1ee   : > { %7263 = vmatprep.mubr.msk.bf16.mxu0 %vm8010_vm0, %v10785_v20  ;;  %7445 = vmatprep.subr.bf16.mxu0 %v10785_v20  ;;  %v3550_v25 = vsel %vm2889_vm5, %v3545_v0, %v3549_v6  ;;  %v2924_v0 = vrot.slane %v2922_v34, 1 }
 0x1ef   : > { %v1260_v18 = vpop.f32.mrb[108].mxu1  ;;  %v1636_v49 = vpop.f32.mrb[108].mxu0  ;;  %7348 = vmatpush3.bf16.msra.mxu1 %v7747_v42 }
 0x1f0   : > { %v1261_v56 = vadd.f32 %v1260_v18, %v10813_v62  ;;  %v6829_v1 = vpop.f32.mrb[109].mxu1  ;;  %v6925_v23 = vpop.f32.mrb[109].mxu0  ;;  %7349 = vmatprep.subr.bf16.mxu1 %v10785_v20  ;;  %v9284_v52 = vadd.f32 %v1636_v49, %v1253_v47  ;;  %v10815_v47 = vshrl.u32 %v8886_v31, 16  ;;  %v10816_v49 = vshll.u32 %v8925_v19, 16  ;;  %v9300_v62 = vld [vmem:[#allocation2 + $0x34] sm:$0xff]  }
 0x1f1   : > { %v1263_v15 = vpop.f32.mrb[110].mxu1  ;;  %v1639_v3 = vpop.f32.mrb[110].mxu0  ;;  %7446 = vmatpush3.bf16.msra.mxu0 %v7740_v40  ;;  %v7769_v23 = vld [vmem:[%s8084_s8 + $0x1e8] sm:$0xff]  }
 0x1f2   : > { %v1264_v38 = vadd.f32 %v1263_v15, %v10814_v24  ;;  %v6926_v42 = vpop.f32.mrb[111].mxu0  ;;  %v6830_v30 = vpop.f32.mrb[111].mxu1  ;;  %7447 = vmatprep.subr.bf16.mxu0 %v10785_v20  ;;  %v9290_v18 = vadd.f32 %v1639_v3, %v1256_v5  ;;  %v3553_v40 = vor.u32 %v10815_v47, %v3549_v6  ;;  %v7756_v5 = vld [vmem:[%s8084_s8 + $0x218] sm:$0xff]   ;;  %v2925_v15 = vsel %vm2889_vm5, %v2920_v51, %v2924_v0  ;;  %v7775_v51 = vld [vmem:[%s8084_s8 + $0x1f0] sm:$0xff]  }
 0x1f3   : > { %7350 = vmatpush3.bf16.msra.mxu1 %v7753_v48  ;;  %v3557_v48 = vrot.slane %v10816_v49, 1  ;;  %v2926_v24 = vshrl.u32 %v9265_v63, 16  ;;  %v2930_v42 = vshll.u32 %v9300_v62, 16 }
 0x1f4   : > { %7168 = vmatmul.mubr.bf16.gmra.mrb[216].mxu1 %v2917_v58  ;;  %7264 = vmatmul.mubr.bf16.gmra.mrb[216].mxu0 %v3550_v25 }
 0x1f5   : > { %7171 = vmatprep.mubr.msk.bf16.mxu1 %vm8010_vm0, %v10785_v20  ;;  %7267 = vmatprep.mubr.msk.bf16.mxu0 %vm8010_vm0, %v10785_v20  ;;  %v3558_v25 = vsel %vm2889_vm5, %v3553_v40, %v3557_v48  ;;  %v2928_v63 = vor.u32 %v2926_v24, %v2924_v0  ;;  %v10820_v40 = vshrl.u32 %v8925_v19, 16  ;;  %v10822_v0 = vld [vmem:[#allocation11_spill] sm:$0xff] }
 0x1f6   : > { %7448 = vmatpush3.bf16.msra.mxu0 %v7748_v57  ;;  %7351 = vmatprep.subr.bf16.mxu1 %v10785_v20  ;;  %v10818_v57 = vld [vmem:[#allocation10_spill] sm:$0xff] }
 0x1f7   : > { %v1268_v36 = vpop.f32.mrb[112].mxu1  ;;  %v1644_v1 = vpop.f32.mrb[112].mxu0  ;;  %7449 = vmatprep.subr.bf16.mxu0 %v10785_v20  ;;  %7352 = vmatpush3.bf16.msra.mxu1 %v7761_v21 }
 0x1f8   : > { %v1269_v34 = vadd.f32 %v1268_v36, %v10817_v10  ;;  %v6833_v31 = vpop.f32.mrb[113].mxu1  ;;  %v6929_v6 = vpop.f32.mrb[113].mxu0  ;;  %7353 = vmatprep.subr.bf16.mxu1 %v10785_v20  ;;  %v9312_v30 = vadd.f32 %v1644_v1, %v1261_v56  ;;  %v7762_v36 = vld [vmem:[%s8084_s8 + $0x220] sm:$0xff]   ;;  %v2932_v56 = vrot.slane %v2930_v42, 1  ;;  %v10821_v1 = vshll.u32 %v8950_v37, 16 }
 0x1f9   : > { %v1271_v3 = vpop.f32.mrb[114].mxu1  ;;  %v1647_v58 = vpop.f32.mrb[114].mxu0  ;;  %v9328_v31 = vld [vmem:[#allocation2 + $0x3c] sm:$0xff]  }
 0x1fa   : > { %v1272_v21 = vadd.f32 %v1271_v3, %v10818_v57  ;;  %v6930_v47 = vpop.f32.mrb[115].mxu0  ;;  %v6834_v49 = vpop.f32.mrb[115].mxu1  ;;  %7450 = vmatpush3.bf16.msra.mxu0 %v7756_v5  ;;  %v9318_v10 = vadd.f32 %v1647_v58, %v1264_v38  ;;  %v3561_v5 = vor.u32 %v10820_v40, %v3557_v48  ;;  %v7770_v38 = vld [vmem:[%s8084_s8 + $0x228] sm:$0xff]   ;;  %v7783_v3 = vld [vmem:[%s8084_s8 + $0x1f8] sm:$0xff]   ;;  %v2933_v57 = vsel %vm2889_vm5, %v2928_v63, %v2932_v56 }
 0x1fb   : > { %7451 = vmatprep.subr.bf16.mxu0 %v10785_v20  ;;  %7354 = vmatpush3.bf16.msra.mxu1 %v7769_v23  ;;  %v3565_v23 = vrot.slane %v10821_v1, 1  ;;  %v2934_v49 = vshrl.u32 %v9300_v62, 16  ;;  %v10826_v63 = vshrl.u32 %v8950_v37, 16 }
 0x1fc   : > { %10819 = vst [vmem:[#allocation3_spill] sm:$0xff] %v9318_v10  ;;  %7172 = vmatmul.mubr.bf16.gmra.mrb[220].mxu1 %v2925_v15  ;;  %7268 = vmatmul.mubr.bf16.gmra.mrb[220].mxu0 %v3558_v25 }
 0x1fd   : > { %7175 = vmatprep.mubr.msk.bf16.mxu1 %vm8010_vm0, %v10785_v20  ;;  %7271 = vmatprep.mubr.msk.bf16.mxu0 %vm8010_vm0, %v10785_v20  ;;  %v3566_v47 = vsel %vm2889_vm5, %v3561_v5, %v3565_v23  ;;  %v2936_v62 = vor.u32 %v2934_v49, %v2932_v56  ;;  %v3569_v5 = vor.u32 %v10826_v63, %v3565_v23  ;;  %v10829_v49 = vld [vmem:[#allocation13_spill] sm:$0xff] }
 0x1fe   : > { %7452 = vmatpush3.bf16.msra.mxu0 %v7762_v36  ;;  %7355 = vmatprep.subr.bf16.mxu1 %v10785_v20  ;;  %v2938_v36 = vshll.u32 %v9328_v31, 16 }
 0x1ff   : > { %v1276_v6 = vpop.f32.mrb[116].mxu1  ;;  %v1652_v15 = vpop.f32.mrb[116].mxu0  ;;  %7453 = vmatprep.subr.bf16.mxu0 %v10785_v20  ;;  %7356 = vmatpush3.bf16.msra.mxu1 %v7775_v51  ;;  %v10824_v51 = vld [vmem:[#allocation12_spill] sm:$0xff] }
 0x200   : > { %v1277_v58 = vadd.f32 %v1276_v6, %v10822_v0  ;;  %v6837_v19 = vpop.f32.mrb[117].mxu1  ;;  %v6933_v48 = vpop.f32.mrb[117].mxu0  ;;  %7357 = vmatprep.subr.bf16.mxu1 %v10785_v20  ;;  %v9336_v25 = vadd.f32 %v1652_v15, %v1269_v34  ;;  %v7776_v0 = vld [vmem:[%s8084_s8 + $0x230] sm:$0xff]   ;;  %v2940_v34 = vrot.slane %v2938_v36, 1  ;;  %v7745_v15 = vld [vmem:[#allocation2 + $0x44] sm:$0xff]  }
 0x201   : > { %v1279_v24 = vpop.f32.mrb[118].mxu1  ;;  %v1655_v42 = vpop.f32.mrb[118].mxu0  ;;  %v7784_v48 = vld [vmem:[%s8084_s8 + $0x238] sm:$0xff]  }
 0x202   : > { %10823 = vst [vmem:[#allocation4_spill] sm:$0xff] %v9336_v25  ;;  %v1280_v40 = vadd.f32 %v1279_v24, %v10824_v51  ;;  %v6934_v1 = vpop.f32.mrb[119].mxu0  ;;  %v6838_v6 = vpop.f32.mrb[119].mxu1  ;;  %7454 = vmatpush3.bf16.msra.mxu0 %v7770_v38  ;;  %v9344_v19 = vadd.f32 %v1655_v42, %v1272_v21  ;;  %v10827_v38 = vshll.u32 %v8979_v11, 16  ;;  %v10828_v42 = vld [vmem:[#allocation14_spill] sm:$0xff] }
 0x203   : > { %7455 = vmatprep.subr.bf16.mxu0 %v10785_v20  ;;  %7358 = vmatpush3.bf16.msra.mxu1 %v7783_v3  ;;  %v2941_v6 = vsel %vm2889_vm5, %v2936_v62, %v2940_v34 }
 0x204   : > { %10825 = vst [vmem:[#allocation5_spill] sm:$0xff] %v9344_v19  ;;  %7176 = vmatmul.mubr.bf16.gmra.mrb[224].mxu1 %v2933_v57  ;;  %7272 = vmatmul.mubr.bf16.gmra.mrb[224].mxu0 %v3566_v47  ;;  %v3573_v21 = vrot.slane %v10827_v38, 1  ;;  %v4030_v57 = vrot.slane %v10828_v42, 1  ;;  %v9358_v47 = vld [vmem:[#allocation2 + $0x1c] sm:$0xff]   ;;  %v2942_v38 = vshrl.u32 %v9328_v31, 16  ;;  %v2946_v19 = vshll.u32 %v7745_v15, 16 }
 0x205   : > { %7179 = vmatprep.mubr.msk.bf16.mxu1 %vm8010_vm0, %v10785_v20  ;;  %7275 = vmatprep.mubr.msk.bf16.mxu0 %vm8010_vm0, %v10785_v20  ;;  %v10751_v56 = vrot.slane %v9358_v47, 1 }
 0x206   : > { %7456 = vmatpush3.bf16.msra.mxu0 %v7776_v0  ;;  %v3574_v0 = vsel %vm2889_vm5, %v3569_v5, %v3573_v21  ;;  %v2944_v31 = vor.u32 %v2942_v38, %v2940_v34  ;;  %v2948_v62 = vrot.slane %v2946_v19, 1  ;;  %v10831_v5 = vshll.u32 %v9008_v53, 16 }
 0x207   : > { %v1284_v3 = vpop.f32.mrb[120].mxu1  ;;  %v1660_v24 = vpop.f32.mrb[120].mxu0  ;;  %7457 = vmatprep.subr.bf16.mxu0 %v10785_v20 }
 0x208   : > { %v1285_v36 = vadd.f32 %v1284_v3, %v10829_v49  ;;  %v6937_v37 = vpop.f32.mrb[121].mxu0  ;;  %v6841_v23 = vpop.f32.mrb[121].mxu1  ;;  %v9362_v51 = vadd.f32 %v1660_v24, %v1277_v58  ;;  %v9372_v58 = vsel %vm4029_vm6, %v4030_v57, %v10751_v56  ;;  %v7749_v3 = vld [vmem:[#allocation2 + $0x4c] sm:$0xff]   ;;  %v2949_v34 = vsel %vm2889_vm5, %v2944_v31, %v2948_v62 }
 0x209   : > { %v1663_v1 = vpop.f32.mrb[122].mxu0  ;;  %v1287_v63 = vpop.f32.mrb[122].mxu1  ;;  %v10833_v31 = vshrl.u32 %v9008_v53, 16  ;;  %v2958_v53 = vshrl.u32 %v7749_v3, 16 }
 0x20a   : > { %v6938_v42 = vpop.f32.mrb[123].mxu0  ;;  %v6842_v25 = vpop.f32.mrb[123].mxu1  ;;  %7458 = vmatpush3.bf16.msra.mxu0 %v7784_v48  ;;  %v9367_v10 = vadd.f32 %v1663_v1, %v1280_v40  ;;  %v3581_v48 = vrot.slane %v10831_v5, 1  ;;  %v10832_v63 = vld [vmem:[#allocation15_spill] sm:$0xff] }
 0x20b   : > { %v10830_v25 = vshrl.u32 %v8979_v11, 16  ;;  %v2950_v11 = vshrl.u32 %v7745_v15, 16  ;;  %v10834_v15 = vshll.u32 %v9037_v28, 16 }
 0x20c   : > { %7180 = vmatmul.mubr.bf16.gmra.mrb[228].mxu1 %v2941_v6  ;;  %7276 = vmatmul.mubr.bf16.gmra.mrb[228].mxu0 %v3574_v0  ;;  %v3585_v5 = vor.u32 %v10833_v31, %v3581_v48 }
 0x20d   : > { %7183 = vmatprep.mubr.msk.bf16.mxu1 %vm8010_vm0, %v10785_v20  ;;  %7279 = vmatprep.mubr.msk.bf16.mxu0 %vm8010_vm0, %v10785_v20  ;;  %v3577_v40 = vor.u32 %v10830_v25, %v3573_v21  ;;  %v2954_v21 = vshll.u32 %v7749_v3, 16 }
 0x20f   : > { %v1668_v24 = vpop.f32.mrb[124].mxu0  ;;  %v2170_v49 = vpop.f32.mrb[124].mxu1  ;;  %v3582_v19 = vsel %vm2889_vm5, %v3577_v40, %v3581_v48  ;;  %v3589_v40 = vrot.slane %v10834_v15, 1 }
 0x210   : > { %v9382_v37 = vadd.f32 %v1668_v24, %v1285_v36  ;;  %v2336_v57 = vadd.f32 %v2170_v49, %v8879_v16  ;;  %v6941_v23 = vpop.f32.mrb[125].mxu0  ;;  %v6961_v1 = vpop.f32.mrb[125].mxu1  ;;  %v2952_v16 = vor.u32 %v2950_v11, %v2948_v62  ;;  %v2956_v36 = vrot.slane %v2954_v21, 1  ;;  %v7751_v24 = vld [vmem:[#allocation2 + $0x54] sm:$0xff]  }
 0x211   : > { %v1671_v6 = vpop.f32.mrb[126].mxu0  ;;  %v2173_v0 = vpop.f32.mrb[126].mxu1  ;;  %v3590_v11 = vsel %vm2889_vm5, %v3585_v5, %v3589_v40  ;;  %v2962_v48 = vshll.u32 %v7751_v24, 16  ;;  %v10838_v5 = vshll.u32 %v9066_v26, 16 }
 0x212   : > { %v2337_v38 = vadd.f32 %v2173_v0, %v10832_v63  ;;  %v6942_v42 = vpop.f32.mrb[127].mxu0  ;;  %v6962_v25 = vpop.f32.mrb[127].mxu1  ;;  %v2957_v62 = vsel %vm2889_vm5, %v2952_v16, %v2956_v36  ;;  %v2960_v3 = vor.u32 %v2958_v53, %v2956_v36 }
 0x213   : > { %v2964_v16 = vrot.slane %v2962_v48, 1 }
 0x214   : > { %7184 = vmatmul.mubr.bf16.gmra.mrb[232].mxu1 %v2949_v34  ;;  %7280 = vmatmul.mubr.bf16.gmra.mrb[232].mxu0 %v3582_v19 }
 0x215   : > { %7187 = vmatprep.mubr.msk.bf16.mxu1 %vm8010_vm0, %v10785_v20  ;;  %7283 = vmatprep.mubr.msk.bf16.mxu0 %vm8010_vm0, %v10785_v20  ;;  %v2965_v36 = vsel %vm2889_vm5, %v2960_v3, %v2964_v16  ;;  %v10840_v3 = vshll.u32 %v9095_v46, 16 }
 0x217   : > { %v2178_v49 = vpop.f32.mrb[128].mxu1  ;;  %v2518_v23 = vpop.f32.mrb[128].mxu0 }
 0x218   : > { %v2338_v1 = vadd.f32 %v2178_v49, %v8907_v29  ;;  %v9397_v6 = vadd.f32 %v2518_v23, %v2336_v57  ;;  %v6965_v0 = vpop.f32.mrb[129].mxu1  ;;  %v7061_v34 = vpop.f32.mrb[129].mxu0  ;;  %v10835_v29 = vld [vmem:[#allocation18_spill] sm:$0xff]  ;;  %v10836_v57 = vld [vmem:[#allocation16_spill] sm:$0xff]  ;;  %v3597_v49 = vrot.slane %v10838_v5, 1  ;;  %v7754_v23 = vld [vmem:[#allocation2 + $0x5c] sm:$0xff]  }
 0x219   : > { %v2181_v19 = vpop.f32.mrb[130].mxu1  ;;  %v2521_v63 = vpop.f32.mrb[130].mxu0  ;;  %v9407_v15 = vsel %vm4402_vm4, %v10836_v57, %v10835_v29 }
 0x21a   : > { %v2339_v21 = vadd.f32 %v2181_v19, %v8919_v32  ;;  %v9402_v42 = vadd.f32 %v2521_v63, %v2337_v38  ;;  %v7062_v25 = vpop.f32.mrb[131].mxu0  ;;  %v6966_v31 = vpop.f32.mrb[131].mxu1  ;;  %v10837_v32 = vshrl.u32 %v9037_v28, 16  ;;  %v2966_v28 = vshrl.u32 %v7751_v24, 16 }
 0x21c   : > { %7188 = vmatmul.mubr.bf16.gmra.mrb[236].mxu1 %v2957_v62  ;;  %7284 = vmatmul.mubr.bf16.gmra.mrb[236].mxu0 %v3590_v11  ;;  %v3593_v38 = vor.u32 %v10837_v32, %v3589_v40  ;;  %v2970_v40 = vshll.u32 %v7754_v23, 16  ;;  %v2968_v24 = vor.u32 %v2966_v28, %v2964_v16 }
 0x21d   : > { %7191 = vmatprep.mubr.msk.bf16.mxu1 %vm8010_vm0, %v10785_v20  ;;  %7287 = vmatprep.mubr.msk.bf16.mxu0 %vm8010_vm0, %v10785_v20 }
 0x21e   : > { %v3598_v53 = vsel %vm2889_vm5, %v3593_v38, %v3597_v49  ;;  %v3605_v38 = vrot.slane %v10840_v3, 1 }
 0x21f   : > { %v2186_v0 = vpop.f32.mrb[132].mxu1  ;;  %v2526_v34 = vpop.f32.mrb[132].mxu0 }
 0x220   : > { %v2340_v19 = vadd.f32 %v2186_v0, %v8941_v41  ;;  %v9418_v63 = vadd.f32 %v2526_v34, %v2338_v1  ;;  %v6969_v62 = vpop.f32.mrb[133].mxu1  ;;  %v7065_v11 = vpop.f32.mrb[133].mxu0  ;;  %v9428_v41 = vsel %vm4402_vm4, %v10835_v29, %v8962_v14  ;;  %v2972_v1 = vrot.slane %v2970_v40, 1  ;;  %v7757_v0 = vld [vmem:[#allocation2 + $0x64] sm:$0xff]   ;;  %v10841_v40 = vld [vmem:[#allocation19_spill] sm:$0xff] }
 0x221   : > { %v2189_v25 = vpop.f32.mrb[134].mxu1  ;;  %v2529_v31 = vpop.f32.mrb[134].mxu0 }
 0x222   : > { %v2341_v48 = vadd.f32 %v2189_v25, %v8948_v45  ;;  %v9423_v57 = vadd.f32 %v2529_v31, %v2339_v21  ;;  %v7066_v32 = vpop.f32.mrb[135].mxu0  ;;  %v6970_v5 = vpop.f32.mrb[135].mxu1  ;;  %v10839_v45 = vshrl.u32 %v9066_v26, 16  ;;  %v2973_v16 = vsel %vm2889_vm5, %v2968_v24, %v2972_v1 }
 0x223   : > { %v2974_v26 = vshrl.u32 %v7754_v23, 16 }
 0x224   : > { %7192 = vmatmul.mubr.bf16.gmra.mrb[240].mxu1 %v2965_v36  ;;  %7288 = vmatmul.mubr.bf16.gmra.mrb[240].mxu0 %v3598_v53  ;;  %v3601_v21 = vor.u32 %v10839_v45, %v3597_v49  ;;  %v2978_v49 = vshll.u32 %v7757_v0, 16 }
 0x225   : > { %7195 = vmatprep.mubr.msk.bf16.mxu1 %vm8010_vm0, %v10785_v20  ;;  %7291 = vmatprep.mubr.msk.bf16.mxu0 %vm8010_vm0, %v10785_v20  ;;  %v2976_v23 = vor.u32 %v2974_v26, %v2972_v1 }
 0x226   : > { %v3606_v28 = vsel %vm2889_vm5, %v3601_v21, %v3605_v38  ;;  %v2980_v24 = vrot.slane %v2978_v49, 1  ;;  %v10848_v49 = vld [vmem:[#allocation22_spill] sm:$0xff] }
 0x227   : > { %v2194_v34 = vpop.f32.mrb[136].mxu1  ;;  %v2534_v62 = vpop.f32.mrb[136].mxu0 }
 0x228   : > { %v2342_v29 = vadd.f32 %v2194_v34, %v8968_v59  ;;  %v9439_v11 = vadd.f32 %v2534_v62, %v2340_v19  ;;  %v6973_v25 = vpop.f32.mrb[137].mxu1  ;;  %v7069_v31 = vpop.f32.mrb[137].mxu0  ;;  %v10843_v59 = vld [vmem:[#allocation20_spill] sm:$0xff]  ;;  %v10845_v34 = vshll.u32 %v9124_v44, 16  ;;  %v2981_v1 = vsel %vm2889_vm5, %v2976_v23, %v2980_v24 }
 0x229   : > { %v2197_v36 = vpop.f32.mrb[138].mxu1  ;;  %v2537_v53 = vpop.f32.mrb[138].mxu0  ;;  %v9449_v19 = vsel %vm4402_vm4, %v8962_v14, %v10843_v59  ;;  %v7759_v25 = vld [vmem:[#allocation2 + $0x6c] sm:$0xff]  }
 0x22a   : > { %v2343_v32 = vadd.f32 %v2197_v36, %v10841_v40  ;;  %v9444_v5 = vadd.f32 %v2537_v53, %v2341_v48  ;;  %v7070_v45 = vpop.f32.mrb[139].mxu0  ;;  %v6974_v3 = vpop.f32.mrb[139].mxu1  ;;  %v10844_v48 = vshrl.u32 %v9095_v46, 16  ;;  %v3613_v62 = vrot.slane %v10845_v34, 1  ;;  %v10846_v53 = vld [vmem:[#allocation21_spill] sm:$0xff] }
 0x22b   : > { %v2982_v46 = vshrl.u32 %v7757_v0, 16 }
 0x22c   : > { %10842 = vst [vmem:[#allocation6_spill] sm:$0xff] %v9444_v5  ;;  %7196 = vmatmul.mubr.bf16.gmra.mrb[244].mxu1 %v2973_v16  ;;  %7292 = vmatmul.mubr.bf16.gmra.mrb[244].mxu0 %v3606_v28  ;;  %v3609_v21 = vor.u32 %v10844_v48, %v3605_v38  ;;  %v2986_v38 = vshll.u32 %v7759_v25, 16 }
 0x22d   : > { %7199 = vmatprep.mubr.msk.bf16.mxu1 %vm8010_vm0, %v10785_v20  ;;  %7295 = vmatprep.mubr.msk.bf16.mxu0 %vm8010_vm0, %v10785_v20  ;;  %v2984_v0 = vor.u32 %v2982_v46, %v2980_v24 }
 0x22e   : > { %v3614_v26 = vsel %vm2889_vm5, %v3609_v21, %v3613_v62  ;;  %v10853_v21 = vshll.u32 %v9140_v12, 16 }
 0x22f   : > { %v2202_v31 = vpop.f32.mrb[140].mxu1  ;;  %v2542_v36 = vpop.f32.mrb[140].mxu0 }
 0x230   : > { %v2344_v14 = vadd.f32 %v2202_v31, %v10846_v53  ;;  %v9460_v16 = vadd.f32 %v2542_v36, %v2342_v29  ;;  %v6977_v28 = vpop.f32.mrb[141].mxu1  ;;  %v7073_v40 = vpop.f32.mrb[141].mxu0  ;;  %v9467_v29 = vld [vmem:[#allocation2 + $0x74] sm:$0xff]   ;;  %v10851_v36 = vld [vmem:[#allocation23_spill] sm:$0xff]  ;;  %v3621_v53 = vrot.slane %v10853_v21, 1 }
 0x231   : > { %v2205_v45 = vpop.f32.mrb[142].mxu1  ;;  %v2545_v3 = vpop.f32.mrb[142].mxu0  ;;  %v9469_v31 = vld [vmem:[#allocation2 + $0x74] sm:$0xff]   ;;  %v9474_v23 = vsel %vm4402_vm4, %v10843_v59, %v10851_v36 }
 0x232   : > { %10847 = vst [vmem:[#allocation7_spill] sm:$0xff] %v9460_v16  ;;  %v2345_v48 = vadd.f32 %v2205_v45, %v10848_v49  ;;  %v9465_v34 = vadd.f32 %v2545_v3, %v2343_v32  ;;  %v7074_v56 = vpop.f32.mrb[143].mxu0  ;;  %v6978_v5 = vpop.f32.mrb[143].mxu1  ;;  %10850 = vst [vmem:[#allocation9_spill] sm:$0xff] %v9469_v31  ;;  %v10852_v32 = vshrl.u32 %v9124_v44, 16  ;;  %v2990_v45 = vshrl.u32 %v7759_v25, 16 }
 0x233   : > { %v2988_v56 = vrot.slane %v2986_v38, 1  ;;  %v2994_v49 = vshll.u32 %v9467_v29, 16  ;;  %v10752_v24 = vshll.u32 %v9469_v31, 16 }
 0x234   : > { %10849 = vst [vmem:[#allocation8_spill] sm:$0xff] %v9465_v34  ;;  %7200 = vmatmul.mubr.bf16.gmra.mrb[248].mxu1 %v2981_v1  ;;  %7296 = vmatmul.mubr.bf16.gmra.mrb[248].mxu0 %v3614_v26  ;;  %v3617_v5 = vor.u32 %v10852_v32, %v3613_v62 }
 0x235   : > { %7203 = vmatprep.mubr.msk.bf16.mxu1 %vm8010_vm0, %v10785_v20  ;;  %7299 = vmatprep.mubr.msk.bf16.mxu0 %vm8010_vm0, %v10785_v20  ;;  %v2989_v44 = vsel %vm2889_vm5, %v2984_v0, %v2988_v56 }
 0x236   : > { %v3622_v62 = vsel %vm2889_vm5, %v3617_v5, %v3621_v53 }
 0x237   : > { %v2210_v28 = vpop.f32.mrb[144].mxu1  ;;  %v2550_v40 = vpop.f32.mrb[144].mxu0 }
 0x238   : > { %v2346_v59 = vadd.f32 %v2210_v28, %v9029_v4  ;;  %v9485_v3 = vadd.f32 %v2550_v40, %v2344_v14  ;;  %v6981_v1 = vpop.f32.mrb[145].mxu1  ;;  %v7077_v26 = vpop.f32.mrb[145].mxu0  ;;  %v2992_v14 = vor.u32 %v2990_v45, %v2988_v56  ;;  %v10856_v28 = vshrl.u32 %v9140_v12, 16 }
 0x239   : > { %v2213_v46 = vpop.f32.mrb[146].mxu1  ;;  %v2553_v38 = vpop.f32.mrb[146].mxu0  ;;  %v2996_v1 = vrot.slane %v2994_v49, 1  ;;  %v3629_v26 = vrot.slane %v10752_v24, 1  ;;  %v10860_v24 = vld [vmem:[#allocation25_spill] sm:$0xff] }
 0x23a   : > { %10854 = vst [vmem:[#allocation10_spill] sm:$0xff] %v9485_v3  ;;  %v2347_v32 = vadd.f32 %v2213_v46, %v9035_v13  ;;  %v9492_v21 = vadd.f32 %v2553_v38, %v2345_v48  ;;  %v7078_v25 = vpop.f32.mrb[147].mxu0  ;;  %v6982_v4 = vpop.f32.mrb[147].mxu1  ;;  %v3625_v40 = vor.u32 %v10856_v28, %v3621_v53  ;;  %v10857_v3 = vld [vmem:[#allocation24_spill] sm:$0xff]  ;;  %v7765_v13 = vld [vmem:[#allocation2 + $0x7c] sm:$0xff]  }
 0x23b   : > { %v9501_v0 = vsel %vm4402_vm4, %v10851_v36, %v10857_v3  ;;  %v9507_v48 = vld [vmem:[#allocation2 + $0x7c] sm:$0xff]   ;;  %v2997_v36 = vsel %vm2889_vm5, %v2992_v14, %v2996_v1  ;;  %v3002_v25 = vshll.u32 %v7765_v13, 16  ;;  %v10753_v4 = vshrl.u32 %v9469_v31, 16  ;;  %v9522_v14 = vld [vmem:[#allocation2 + $0x84] sm:$0xff]  }
 0x23c   : > { %10855 = vst [vmem:[#allocation11_spill] sm:$0xff] %v9492_v21  ;;  %7204 = vmatmul.mubr.bf16.gmra.mrb[252].mxu1 %v2989_v44  ;;  %7300 = vmatmul.mubr.bf16.gmra.mrb[252].mxu0 %v3622_v62  ;;  %10858 = vst [vmem:[#allocation12_spill] sm:$0xff] %v9507_v48  ;;  %v3630_v46 = vsel %vm2889_vm5, %v3625_v40, %v3629_v26  ;;  %v2998_v62 = vshrl.u32 %v9467_v29, 16  ;;  %v10754_v28 = vshll.u32 %v9507_v48, 16  ;;  %v10863_v40 = vld [vmem:[#allocation26_spill] sm:$0xff]  ;;  %v10866_v31 = vld [vmem:[#allocation28_spill] sm:$0xff] }
 0x23d   : > { %7207 = vmatprep.mubr.msk.bf16.mxu1 %vm8010_vm0, %v10785_v20  ;;  %7303 = vmatprep.mubr.msk.bf16.mxu0 %vm8010_vm0, %v10785_v20  ;;  %10862 = vst [vmem:[#allocation15_spill] sm:$0xff] %v9522_v14  ;;  %v9527_v29 = vsel %vm4402_vm4, %v10857_v3, %v10863_v40 }
 0x23f   : > { %v2218_v12 = vpop.f32.mrb[148].mxu1  ;;  %v2558_v56 = vpop.f32.mrb[148].mxu0 }
 0x240   : > { %v2348_v5 = vadd.f32 %v2218_v12, %v9058_v35  ;;  %v9510_v53 = vadd.f32 %v2558_v56, %v2346_v59  ;;  %v6985_v45 = vpop.f32.mrb[149].mxu1  ;;  %v7081_v49 = vpop.f32.mrb[149].mxu0  ;;  %v9520_v56 = vld [vmem:[#allocation2 + $0x84] sm:$0xff]  }
 0x241   : > { %v2221_v38 = vpop.f32.mrb[150].mxu1  ;;  %v2561_v44 = vpop.f32.mrb[150].mxu0  ;;  %v3633_v45 = vor.u32 %v10753_v4, %v3629_v26  ;;  %v3637_v49 = vrot.slane %v10754_v28, 1  ;;  %v3010_v3 = vshll.u32 %v9520_v56, 16 }
 0x242   : > { %10859 = vst [vmem:[#allocation14_spill] sm:$0xff] %v9510_v53  ;;  %v2349_v21 = vadd.f32 %v2221_v38, %v10860_v24  ;;  %v9518_v35 = vadd.f32 %v2561_v44, %v2347_v32  ;;  %v7082_v59 = vpop.f32.mrb[151].mxu0  ;;  %v6986_v12 = vpop.f32.mrb[151].mxu1  ;;  %v3000_v24 = vor.u32 %v2998_v62, %v2996_v1  ;;  %v3004_v32 = vrot.slane %v3002_v25, 1  ;;  %v10864_v44 = vld [vmem:[#allocation27_spill] sm:$0xff] }
 0x243   : > { %v3006_v38 = vshrl.u32 %v7765_v13, 16  ;;  %v10758_v1 = vshrl.u32 %v9507_v48, 16  ;;  %v10757_v62 = vshll.u32 %v9522_v14, 16  ;;  %v3638_v28 = vsel %vm2889_vm5, %v3633_v45, %v3637_v49 }
 0x244   : > { %10861 = vst [vmem:[#allocation13_spill] sm:$0xff] %v9518_v35  ;;  %7208 = vmatmul.mubr.bf16.gmra.mrb[0].mxu1 %v2997_v36  ;;  %7304 = vmatmul.mubr.bf16.gmra.mrb[0].mxu0 %v3630_v46  ;;  %v3005_v4 = vsel %vm2889_vm5, %v3000_v24, %v3004_v32 }
 0x245   : > { %7211 = vmatprep.mubr.msk.bf16.mxu1 %vm8010_vm0, %v10785_v20  ;;  %7307 = vmatprep.mubr.msk.bf16.mxu0 %vm8010_vm0, %v10785_v20 }
 0x247   : > { %v2226_v36 = vpop.f32.mrb[152].mxu1  ;;  %v2566_v46 = vpop.f32.mrb[152].mxu0 }
 0x248   : > { %v2350_v59 = vadd.f32 %v2226_v36, %v10864_v44  ;;  %v9539_v12 = vadd.f32 %v2566_v46, %v2348_v5  ;;  %v6989_v35 = vpop.f32.mrb[153].mxu1  ;;  %v7085_v53 = vpop.f32.mrb[153].mxu0  ;;  %v3008_v5 = vor.u32 %v3006_v38, %v3004_v32  ;;  %v3645_v46 = vrot.slane %v10757_v62, 1  ;;  %v10868_v44 = vld [vmem:[#allocation29_spill] sm:$0xff] }
 0x249   : > { %v2229_v25 = vpop.f32.mrb[154].mxu1  ;;  %v2569_v26 = vpop.f32.mrb[154].mxu0  ;;  %v3012_v53 = vrot.slane %v3010_v3, 1  ;;  %v3641_v35 = vor.u32 %v10758_v1, %v3637_v49  ;;  %v9555_v24 = vsel %vm4402_vm4, %v10863_v40, %v10868_v44  ;;  %v10759_v62 = vshrl.u32 %v9522_v14, 16 }
 0x24a   : > { %10865 = vst [vmem:[#allocation18_spill] sm:$0xff] %v9539_v12  ;;  %v2351_v13 = vadd.f32 %v2229_v25, %v10866_v31  ;;  %v9546_v34 = vadd.f32 %v2569_v26, %v2349_v21  ;;  %v7086_v16 = vpop.f32.mrb[155].mxu0  ;;  %v6990_v36 = vpop.f32.mrb[155].mxu1  ;;  %v9561_v31 = vld [vmem:[#allocation2 + $0x8c] sm:$0xff]   ;;  %v3014_v26 = vshrl.u32 %v9520_v56, 16 }
 0x24b   : > { %v7771_v16 = vld [vmem:[#allocation2 + $0x8c] sm:$0xff]   ;;  %v3013_v40 = vsel %vm2889_vm5, %v3008_v5, %v3012_v53  ;;  %v3646_v38 = vsel %vm2889_vm5, %v3641_v35, %v3645_v46  ;;  %v10760_v1 = vshll.u32 %v9561_v31, 16  ;;  %v9576_v5 = vld [vmem:[#allocation2 + $0x94] sm:$0xff]   ;;  %v10872_v35 = vld [vmem:[#allocation31_spill] sm:$0xff] }
 0x24c   : > { %10867 = vst [vmem:[#allocation16_spill] sm:$0xff] %v9546_v34  ;;  %7212 = vmatmul.mubr.bf16.gmra.mrb[4].mxu1 %v3005_v4  ;;  %7308 = vmatmul.mubr.bf16.gmra.mrb[4].mxu0 %v3638_v28  ;;  %v3018_v36 = vshll.u32 %v7771_v16, 16  ;;  %v10870_v34 = vld [vmem:[#allocation30_spill] sm:$0xff]  ;;  %v9581_v56 = vsel %vm4402_vm4, %v10868_v44, %v10872_v35 }
 0x24d   : > { %7215 = vmatprep.mubr.msk.bf16.mxu1 %vm8010_vm0, %v10785_v20  ;;  %7311 = vmatprep.mubr.msk.bf16.mxu0 %vm8010_vm0, %v10785_v20 }
 0x24f   : > { %v2234_v21 = vpop.f32.mrb[156].mxu1  ;;  %v2574_v4 = vpop.f32.mrb[156].mxu0 }
 0x250   : > { %v2352_v28 = vadd.f32 %v2234_v21, %v9116_v7  ;;  %v9564_v32 = vadd.f32 %v2574_v4, %v2350_v59  ;;  %v6993_v45 = vpop.f32.mrb[157].mxu1  ;;  %v7089_v49 = vpop.f32.mrb[157].mxu0  ;;  %v9574_v4 = vld [vmem:[#allocation2 + $0x94] sm:$0xff]  }
 0x251   : > { %v2237_v3 = vpop.f32.mrb[158].mxu1  ;;  %v2577_v25 = vpop.f32.mrb[158].mxu0  ;;  %v3649_v45 = vor.u32 %v10759_v62, %v3645_v46  ;;  %v3653_v49 = vrot.slane %v10760_v1, 1  ;;  %v3026_v44 = vshll.u32 %v9574_v4, 16 }
 0x252   : > { %10869 = vst [vmem:[#allocation19_spill] sm:$0xff] %v9564_v32  ;;  %v2353_v12 = vadd.f32 %v2237_v3, %v10870_v34  ;;  %v9572_v7 = vadd.f32 %v2577_v25, %v2351_v13  ;;  %v7090_v59 = vpop.f32.mrb[159].mxu0  ;;  %v6994_v21 = vpop.f32.mrb[159].mxu1  ;;  %v3016_v34 = vor.u32 %v3014_v26, %v3012_v53  ;;  %v3020_v13 = vrot.slane %v3018_v36, 1  ;;  %v10873_v32 = vld [vmem:[#allocation32_spill] sm:$0xff] }
 0x253   : > { %v3022_v3 = vshrl.u32 %v7771_v16, 16  ;;  %v10766_v53 = vshrl.u32 %v9561_v31, 16  ;;  %v10765_v26 = vshll.u32 %v9576_v5, 16  ;;  %v3654_v1 = vsel %vm2889_vm5, %v3649_v45, %v3653_v49 }
 0x254   : > { %10871 = vst [vmem:[#allocation20_spill] sm:$0xff] %v9572_v7  ;;  %7216 = vmatmul.mubr.bf16.gmra.mrb[8].mxu1 %v3013_v40  ;;  %7312 = vmatmul.mubr.bf16.gmra.mrb[8].mxu0 %v3646_v38  ;;  %v3021_v62 = vsel %vm2889_vm5, %v3016_v34, %v3020_v13 }
 0x255   : > { %7219 = vmatprep.mubr.msk.bf16.mxu1 %vm8010_vm0, %v10785_v20  ;;  %7315 = vmatprep.mubr.msk.bf16.mxu0 %vm8010_vm0, %v10785_v20 }
 0x257   : > { %v2242_v40 = vpop.f32.mrb[160].mxu1  ;;  %v2582_v38 = vpop.f32.mrb[160].mxu0 }
 0x258   : > { %v2354_v25 = vadd.f32 %v2242_v40, %v9147_v33  ;;  %v9593_v59 = vadd.f32 %v2582_v38, %v2352_v28  ;;  %v6997_v21 = vpop.f32.mrb[161].mxu1  ;;  %v7093_v7 = vpop.f32.mrb[161].mxu0  ;;  %v3024_v28 = vor.u32 %v3022_v3, %v3020_v13  ;;  %v3657_v40 = vor.u32 %v10766_v53, %v3653_v49 }
 0x259   : > { %v2245_v36 = vpop.f32.mrb[162].mxu1  ;;  %v2585_v46 = vpop.f32.mrb[162].mxu0  ;;  %v3028_v7 = vrot.slane %v3026_v44, 1  ;;  %v3661_v38 = vrot.slane %v10765_v26, 1  ;;  %v10875_v21 = vld [vmem:[#allocation33_spill] sm:$0xff]  ;;  %v10768_v26 = vshrl.u32 %v9576_v5, 16 }
 0x25a   : > { %v2355_v16 = vadd.f32 %v2245_v36, %v10873_v32  ;;  %v9600_v14 = vadd.f32 %v2585_v46, %v2353_v12  ;;  %v7094_v48 = vpop.f32.mrb[163].mxu0  ;;  %v6998_v33 = vpop.f32.mrb[163].mxu1  ;;  %v9609_v34 = vsel %vm4402_vm4, %v10872_v35, %v10875_v21  ;;  %v9615_v12 = vld [vmem:[#allocation2 + $0x9c] sm:$0xff]   ;;  %v3030_v46 = vshrl.u32 %v9574_v4, 16 }
 0x25b   : > { %v7777_v48 = vld [vmem:[#allocation2 + $0x9c] sm:$0xff]   ;;  %v3029_v35 = vsel %vm2889_vm5, %v3024_v28, %v3028_v7  ;;  %v3662_v3 = vsel %vm2889_vm5, %v3657_v40, %v3661_v38  ;;  %v10767_v53 = vshll.u32 %v9615_v12, 16  ;;  %v7779_v28 = vld [vmem:[#allocation2 + $0xa4] sm:$0xff]   ;;  %v9631_v40 = vsel %vm4402_vm4, %v10875_v21, %v9177_v54 }
 0x25c   : > { %10874 = vst [vmem:[#allocation21_spill] sm:$0xff] %v9600_v14  ;;  %7220 = vmatmul.mubr.bf16.gmra.mrb[12].mxu1 %v3021_v62  ;;  %7316 = vmatmul.mubr.bf16.gmra.mrb[12].mxu0 %v3654_v1  ;;  %v3034_v33 = vshll.u32 %v7777_v48, 16  ;;  %v3032_v4 = vor.u32 %v3030_v46, %v3028_v7 }
 0x25d   : > { %7223 = vmatprep.mubr.msk.bf16.mxu1 %vm8010_vm0, %v10785_v20  ;;  %7319 = vmatprep.mubr.msk.bf16.mxu0 %vm8010_vm0, %v10785_v20 }
 0x25f   : > { %v2250_v1 = vpop.f32.mrb[164].mxu1  ;;  %v2590_v62 = vpop.f32.mrb[164].mxu0 }
 0x260   : > { %v2356_v32 = vadd.f32 %v2250_v1, %v9181_v22  ;;  %v9618_v13 = vadd.f32 %v2590_v62, %v2354_v25  ;;  %v7001_v45 = vpop.f32.mrb[165].mxu1  ;;  %v7097_v49 = vpop.f32.mrb[165].mxu0  ;;  %v3669_v62 = vrot.slane %v10767_v53, 1  ;;  %v10770_v53 = vshrl.u32 %v9615_v12, 16 }
 0x261   : > { %v2253_v44 = vpop.f32.mrb[166].mxu1  ;;  %v2593_v36 = vpop.f32.mrb[166].mxu0  ;;  %v9641_v45 = vld [vmem:[#allocation2 + $0xa4] sm:$0xff]  }
 0x262   : > { %10876 = vst [vmem:[#allocation22_spill] sm:$0xff] %v9618_v13  ;;  %v2357_v14 = vadd.f32 %v2253_v44, %v9184_v2  ;;  %v9626_v22 = vadd.f32 %v2593_v36, %v2355_v16  ;;  %v7098_v25 = vpop.f32.mrb[167].mxu0  ;;  %v7002_v1 = vpop.f32.mrb[167].mxu1  ;;  %v3036_v2 = vrot.slane %v3034_v33, 1  ;;  %v3665_v16 = vor.u32 %v10768_v26, %v3661_v38 }
 0x263   : > { %v3038_v25 = vshrl.u32 %v7777_v48, 16  ;;  %v3042_v1 = vshll.u32 %v7779_v28, 16  ;;  %v10769_v26 = vshll.u32 %v9641_v45, 16 }
 0x264   : > { %10877 = vst [vmem:[#allocation23_spill] sm:$0xff] %v9626_v22  ;;  %7224 = vmatmul.mubr.bf16.gmra.mrb[16].mxu1 %v3029_v35  ;;  %7320 = vmatmul.mubr.bf16.gmra.mrb[16].mxu0 %v3662_v3  ;;  %v3037_v33 = vsel %vm2889_vm5, %v3032_v4, %v3036_v2  ;;  %v3670_v38 = vsel %vm2889_vm5, %v3665_v16, %v3669_v62  ;;  %v9661_v16 = vld [vmem:[#allocation2 + $0xac] sm:$0xff]  }
 0x265   : > { %7227 = vmatprep.mubr.msk.bf16.mxu1 %vm8010_vm0, %v10785_v20  ;;  %7323 = vmatprep.mubr.msk.bf16.mxu0 %vm8010_vm0, %v10785_v20  ;;  %v3040_v48 = vor.u32 %v3038_v25, %v3036_v2  ;;  %v3673_v4 = vor.u32 %v10770_v53, %v3669_v62 }
 0x267   : > { %v2258_v49 = vpop.f32.mrb[168].mxu1  ;;  %v2598_v35 = vpop.f32.mrb[168].mxu0 }
 0x268   : > { %v2358_v21 = vadd.f32 %v2258_v49, %v9194_v43  ;;  %v9644_v3 = vadd.f32 %v2598_v35, %v2356_v32  ;;  %v7005_v44 = vpop.f32.mrb[169].mxu1  ;;  %v7101_v36 = vpop.f32.mrb[169].mxu0  ;;  %v3044_v49 = vrot.slane %v3042_v1, 1 }
 0x269   : > { %v2261_v7 = vpop.f32.mrb[170].mxu1  ;;  %v2601_v46 = vpop.f32.mrb[170].mxu0 }
 0x26a   : > { %v2359_v22 = vadd.f32 %v2261_v7, %v9197_v55  ;;  %v9651_v13 = vadd.f32 %v2601_v46, %v2357_v14  ;;  %v7102_v43 = vpop.f32.mrb[171].mxu0  ;;  %v7006_v32 = vpop.f32.mrb[171].mxu1  ;;  %v3677_v55 = vrot.slane %v10769_v26, 1  ;;  %v7781_v14 = vld [vmem:[#allocation2 + $0xac] sm:$0x1f]   ;;  %v3045_v7 = vsel %vm2889_vm5, %v3040_v48, %v3044_v49 }
 0x26b   : > { %v3046_v46 = vshrl.u32 %v7779_v28, 16  ;;  %v3050_v43 = vshll.u32 %v7781_v14, 16  ;;  %v10772_v32 = vshrl.u32 %v9641_v45, 16  ;;  %v10771_v26 = vshll.u32 %v9661_v16, 16 }
 0x26c   : > { %10878 = vst [vmem:[#allocation24_spill] sm:$0xff] %v9651_v13  ;;  %7228 = vmatmul.mubr.bf16.gmra.mrb[20].mxu1 %v3037_v33  ;;  %7324 = vmatmul.mubr.bf16.gmra.mrb[20].mxu0 %v3670_v38  ;;  %v3678_v62 = vsel %vm2889_vm5, %v3673_v4, %v3677_v55 }
 0x26d   : > { %7231 = vmatprep.mubr.msk.bf16.mxu1 %vm8010_vm0, %v10785_v20  ;;  %7327 = vmatprep.mubr.msk.bf16.mxu0 %vm8010_vm0, %v10785_v20  ;;  %v3048_v28 = vor.u32 %v3046_v46, %v3044_v49  ;;  %v3052_v48 = vrot.slane %v3050_v43, 1 }
 0x26f   : > { %v2266_v35 = vpop.f32.mrb[172].mxu1  ;;  %v2606_v44 = vpop.f32.mrb[172].mxu0  ;;  %v3053_v43 = vsel %vm2889_vm5, %v3048_v28, %v3052_v48 }
 0x270   : > { %v2360_v2 = vadd.f32 %v2266_v35, %v9207_v8  ;;  %v9664_v36 = vadd.f32 %v2606_v44, %v2358_v21  ;;  %v7009_v25 = vpop.f32.mrb[173].mxu1  ;;  %v7105_v1 = vpop.f32.mrb[173].mxu0  ;;  %v9673_v35 = vld [vmem:[#allocation2 + $0xb4] sm:$0xf]  ;;  %v3408_v44 = vld [vmem:[#allocation2 + $0xb8] sm:$0x1] }
 0x271   : > { %v2269_v33 = vpop.f32.mrb[174].mxu1  ;;  %v2609_v38 = vpop.f32.mrb[174].mxu0  ;;  %v9684_v4 = vcombine.low %v9673_v35, %v3408_v44 }
 0x272   : > { %v2361_v53 = vadd.f32 %v2269_v33, %v9210_v61  ;;  %v9671_v13 = vadd.f32 %v2609_v38, %v2359_v22  ;;  %v7106_v8 = vpop.f32.mrb[175].mxu0  ;;  %v7010_v21 = vpop.f32.mrb[175].mxu1  ;;  %v3681_v61 = vor.u32 %v10772_v32, %v3677_v55  ;;  %v3685_v22 = vrot.slane %v10771_v26, 1 }
 0x273   : > { %v10773_v8 = vshrl.u32 %v9661_v16, 16  ;;  %v3691_v21 = vshll.u32 %v9684_v4, 16 }
 0x274   : > { %7232 = vmatmul.mubr.bf16.gmra.mrb[24].mxu1 %v3045_v7  ;;  %7328 = vmatmul.mubr.bf16.gmra.mrb[24].mxu0 %v3678_v62  ;;  %v3686_v55 = vsel %vm2889_vm5, %v3681_v61, %v3685_v22 }
 0x275   : > { %7235 = vmatprep.mubr.msk.bf16.mxu1 %vm8010_vm0, %v10785_v20  ;;  %7331 = vmatprep.mubr.msk.bf16.mxu0 %vm8010_vm0, %v10785_v20  ;;  %v3689_v28 = vor.u32 %v10773_v8, %v3685_v22  ;;  %v3693_v61 = vrot.slane %v3691_v21, 1  ;;  %v3695_v21 = vshrl.u32 %v9684_v4, 16 }
 0x277   : > { %v2274_v25 = vpop.f32.mrb[176].mxu1  ;;  %v2614_v1 = vpop.f32.mrb[176].mxu0 }
 0x278   : > { %v2362_v49 = vadd.f32 %v2274_v25, %v9220_v60  ;;  %v9687_v7 = vadd.f32 %v2614_v1, %v2360_v2  ;;  %v7013_v46 = vpop.f32.mrb[177].mxu1  ;;  %v7109_v33 = vpop.f32.mrb[177].mxu0  ;;  %v3054_v2 = vshrl.u32 %v7781_v14, 16 }
 0x279   : > { %v2277_v38 = vpop.f32.mrb[178].mxu1  ;;  %v2617_v62 = vpop.f32.mrb[178].mxu0 }
 0x27a   : > { %v2363_v44 = vadd.f32 %v2277_v38, %v9223_v39  ;;  %v9694_v26 = vadd.f32 %v2617_v62, %v2361_v53  ;;  %v7110_v32 = vpop.f32.mrb[179].mxu0  ;;  %v7014_v60 = vpop.f32.mrb[179].mxu1  ;;  %v3056_v39 = vor.u32 %v3054_v2, %v3052_v48  ;;  %v3694_v62 = vsel %vm2889_vm5, %v3689_v28, %v3693_v61 }
 0x27c   : > { %7236 = vmatmul.mubr.bf16.gmra.mrb[28].mxu1 %v3053_v43  ;;  %7332 = vmatmul.mubr.bf16.gmra.mrb[28].mxu0 %v3686_v55 }
 0x27d   : > { %7239 = vmatprep.mubr.msk.bf16.mxu1 %vm8010_vm0, %v10785_v20  ;;  %7335 = vmatprep.mubr.msk.bf16.mxu0 %vm8010_vm0, %v10785_v20 }
 0x27f   : > { %v2282_v25 = vpop.f32.mrb[180].mxu1  ;;  %v2622_v1 = vpop.f32.mrb[180].mxu0 }
 0x280   : > { %v2364_v53 = vadd.f32 %v2282_v25, %v9236_v27  ;;  %v9703_v32 = vadd.f32 %v2622_v1, %v2362_v49  ;;  %v7017_v14 = vpop.f32.mrb[181].mxu1  ;;  %v7113_v46 = vpop.f32.mrb[181].mxu0  ;;  %v3697_v49 = vor.u32 %v3695_v21, %v3693_v61 }
 0x281   : > { %v2285_v33 = vpop.f32.mrb[182].mxu1  ;;  %v2625_v38 = vpop.f32.mrb[182].mxu0 }
 0x282   : > { %v2365_v43 = vadd.f32 %v2285_v33, %v9240_v17  ;;  %v9707_v55 = vadd.f32 %v2625_v38, %v2363_v44  ;;  %v7114_v60 = vpop.f32.mrb[183].mxu0  ;;  %v7018_v22 = vpop.f32.mrb[183].mxu1 }
 0x284   : > { %7240 = vmatmul.mubr.bf16.gmra.mrb[32].mxu1 %v3056_v39  ;;  %7336 = vmatmul.mubr.bf16.gmra.mrb[32].mxu0 %v3694_v62 }
 0x285   : > { %7339 = vmatprep.mubr.msk.bf16.mxu0 %vm8010_vm0, %v10785_v20  ;;  %7359 = vmatprep.mubr.msk.bf16.mxu1 %vm8010_vm0, %v10785_v20 }
 0x287   : > { %v2290_v27 = vpop.f32.mrb[184].mxu1  ;;  %v2630_v48 = vpop.f32.mrb[184].mxu0 }
 0x288   : > { %v2366_v2 = vadd.f32 %v2290_v27, %v9258_v9  ;;  %v9715_v17 = vadd.f32 %v2630_v48, %v2364_v53  ;;  %v7021_v44 = vpop.f32.mrb[185].mxu1  ;;  %v7117_v28 = vpop.f32.mrb[185].mxu0  ;;  %v7955_v9 = vld [vmem:[#allocation2 + $0x24] sm:$0xff]  }
 0x289   : > { %v2293_v25 = vpop.f32.mrb[186].mxu1  ;;  %v2633_v1 = vpop.f32.mrb[186].mxu0  ;;  %v4033_v61 = vrot.slane %v7955_v9, 1 }
 0x28a   : > { %v2367_v39 = vadd.f32 %v2293_v25, %v9263_v50  ;;  %v9718_v14 = vadd.f32 %v2633_v1, %v2365_v43  ;;  %v7118_v46 = vpop.f32.mrb[187].mxu0  ;;  %v7022_v33 = vpop.f32.mrb[187].mxu1  ;;  %v10880_v25 = vld [vmem:[#allocation17_spill] sm:$0xff] }
 0x28c   : > { %7340 = vmatmul.mubr.bf16.gmra.mrb[36].mxu0 %v3697_v49  ;;  %7360 = vmatmul.mubr.bf16.vlgmr.msra.gmra.mrb[36].mxu1 %v9372_v58  ;;  %v10879_v58 = vrot.slane %v9358_v47, 1 }
 0x28d   : > { %7363 = vmatprep.mubr.msk.bf16.mxu1 %vm8010_vm0, %v10785_v20  ;;  %7459 = vmatprep.mubr.msk.bf16.mxu0 %vm8010_vm0, %v10785_v20 }
 0x28e   : > { %v4034_v27 = vsel %vm4029_vm6, %v10879_v58, %v4033_v61 }
 0x28f   : > { %v2298_v53 = vpop.f32.mrb[188].mxu1  ;;  %v2638_v38 = vpop.f32.mrb[188].mxu0 }
 0x290   : > { %v2368_v62 = vadd.f32 %v2298_v53, %v9284_v52  ;;  %v9726_v50 = vadd.f32 %v2638_v38, %v2366_v2  ;;  %v7025_v43 = vpop.f32.mrb[189].mxu1  ;;  %v7121_v60 = vpop.f32.mrb[189].mxu0  ;;  %v7956_v52 = vld [vmem:[#allocation2 + $0x2c] sm:$0xff]  }
 0x291   : > { %v2301_v22 = vpop.f32.mrb[190].mxu1  ;;  %v2641_v21 = vpop.f32.mrb[190].mxu0  ;;  %v4035_v2 = vrot.slane %v7956_v52, 1  ;;  %v10881_v43 = vld [vmem:[#allocation3_spill] sm:$0xff] }
 0x292   : > { %v2369_v48 = vadd.f32 %v2301_v22, %v9290_v18  ;;  %v9732_v49 = vadd.f32 %v2641_v21, %v2367_v39  ;;  %v7122_v44 = vpop.f32.mrb[191].mxu0  ;;  %v7026_v28 = vpop.f32.mrb[191].mxu1 }
 0x293   : > { %v4036_v38 = vsel %vm4029_vm6, %v4033_v61, %v4035_v2  ;;  %v10882_v61 = vld [vmem:[#allocation4_spill] sm:$0xff] }
 0x294   : > { %7364 = vmatmul.mubr.bf16.gmra.mrb[40].mxu1 %v4034_v27  ;;  %7460 = vmatmul.mubr.bf16.vlgmr.msra.gmra.mrb[40].mxu0 %v10880_v25 }
 0x295   : > { %7367 = vmatprep.mubr.msk.bf16.mxu1 %vm8010_vm0, %v10785_v20  ;;  %7463 = vmatprep.mubr.msk.bf16.mxu0 %vm8010_vm0, %v10785_v20 }
 0x297   : > { %v2306_v47 = vpop.f32.mrb[192].mxu1  ;;  %v2646_v1 = vpop.f32.mrb[192].mxu0 }
 0x298   : > { %v2370_v46 = vadd.f32 %v2306_v47, %v9312_v30  ;;  %v9740_v18 = vadd.f32 %v2646_v1, %v2368_v62  ;;  %v7029_v39 = vpop.f32.mrb[193].mxu1  ;;  %v7125_v33 = vpop.f32.mrb[193].mxu0  ;;  %v7957_v30 = vld [vmem:[#allocation2 + $0x34] sm:$0xff]  }
 0x299   : > { %v2309_v9 = vpop.f32.mrb[194].mxu1  ;;  %v2649_v53 = vpop.f32.mrb[194].mxu0  ;;  %v4037_v62 = vrot.slane %v7957_v30, 1  ;;  %v10883_v39 = vld [vmem:[#allocation5_spill] sm:$0xff] }
 0x29a   : > { %v2371_v60 = vadd.f32 %v2309_v9, %v10881_v43  ;;  %v9744_v22 = vadd.f32 %v2649_v53, %v2369_v48  ;;  %v7126_v21 = vpop.f32.mrb[195].mxu0  ;;  %v7030_v58 = vpop.f32.mrb[195].mxu1 }
 0x29c   : > { %7368 = vmatmul.mubr.bf16.gmra.mrb[44].mxu1 %v4036_v38  ;;  %7464 = vmatmul.mubr.bf16.gmra.mrb[44].mxu0 %v9407_v15  ;;  %v4038_v15 = vsel %vm4029_vm6, %v4035_v2, %v4037_v62 }
 0x29d   : > { %7371 = vmatprep.mubr.msk.bf16.mxu1 %vm8010_vm0, %v10785_v20  ;;  %7467 = vmatprep.mubr.msk.bf16.mxu0 %vm8010_vm0, %v10785_v20 }
 0x29f   : > { %v2314_v27 = vpop.f32.mrb[196].mxu1  ;;  %v2654_v44 = vpop.f32.mrb[196].mxu0 }
 0x2a0   : > { %v2372_v28 = vadd.f32 %v2314_v27, %v10882_v61  ;;  %v9752_v25 = vadd.f32 %v2654_v44, %v2370_v46  ;;  %v7033_v48 = vpop.f32.mrb[197].mxu1  ;;  %v7129_v52 = vpop.f32.mrb[197].mxu0  ;;  %v7958_v46 = vld [vmem:[#allocation2 + $0x3c] sm:$0xff]  }
 0x2a1   : > { %v2317_v47 = vpop.f32.mrb[198].mxu1  ;;  %v2657_v1 = vpop.f32.mrb[198].mxu0  ;;  %v4039_v43 = vrot.slane %v7958_v46, 1 }
 0x2a2   : > { %v2373_v33 = vadd.f32 %v2317_v47, %v10883_v39  ;;  %v9756_v9 = vadd.f32 %v2657_v1, %v2371_v60  ;;  %v7130_v53 = vpop.f32.mrb[199].mxu0  ;;  %v7034_v38 = vpop.f32.mrb[199].mxu1 }
 0x2a4   : > { %7372 = vmatmul.mubr.bf16.gmra.mrb[48].mxu1 %v4038_v15  ;;  %7468 = vmatmul.mubr.bf16.gmra.mrb[48].mxu0 %v9428_v41  ;;  %v4040_v41 = vsel %vm4029_vm6, %v4037_v62, %v4039_v43 }
 0x2a5   : > { %7375 = vmatprep.mubr.msk.bf16.mxu1 %vm8010_vm0, %v10785_v20  ;;  %7471 = vmatprep.mubr.msk.bf16.mxu0 %vm8010_vm0, %v10785_v20 }
 0x2a7   : > { %v2322_v21 = vpop.f32.mrb[200].mxu1  ;;  %v2662_v58 = vpop.f32.mrb[200].mxu0 }
 0x2a8   : > { %v2374_v2 = vadd.f32 %v2322_v21, %v9362_v51  ;;  %v9764_v30 = vadd.f32 %v2662_v58, %v2372_v28  ;;  %v7037_v60 = vpop.f32.mrb[201].mxu1  ;;  %v7133_v27 = vpop.f32.mrb[201].mxu0  ;;  %v7959_v51 = vld [vmem:[#allocation2 + $0x44] sm:$0xff]  }
 0x2a9   : > { %v2325_v44 = vpop.f32.mrb[202].mxu1  ;;  %v2665_v61 = vpop.f32.mrb[202].mxu0  ;;  %v4041_v28 = vrot.slane %v7959_v51, 1 }
 0x2aa   : > { %v2375_v48 = vadd.f32 %v2325_v44, %v9367_v10  ;;  %v9768_v52 = vadd.f32 %v2665_v61, %v2373_v33  ;;  %v7134_v47 = vpop.f32.mrb[203].mxu0  ;;  %v7038_v1 = vpop.f32.mrb[203].mxu1 }
 0x2ab   : > { %v4042_v46 = vsel %vm4029_vm6, %v4039_v43, %v4041_v28 }
 0x2ac   : > { %7376 = vmatmul.mubr.bf16.gmra.mrb[52].mxu1 %v4040_v41  ;;  %7472 = vmatmul.mubr.bf16.gmra.mrb[52].mxu0 %v9449_v19 }
 0x2ad   : > { %7379 = vmatprep.mubr.msk.bf16.mxu1 %vm8010_vm0, %v10785_v20  ;;  %7475 = vmatprep.mubr.msk.bf16.mxu0 %vm8010_vm0, %v10785_v20 }
 0x2af   : > { %v2330_v15 = vpop.f32.mrb[204].mxu1  ;;  %v2670_v39 = vpop.f32.mrb[204].mxu0 }
 0x2b0   : > { %v2376_v62 = vadd.f32 %v2330_v15, %v9382_v37  ;;  %v9776_v10 = vadd.f32 %v2670_v39, %v2374_v2  ;;  %v7137_v33 = vpop.f32.mrb[205].mxu0  ;;  %v7041_v53 = vpop.f32.mrb[205].mxu1  ;;  %v7960_v37 = vld [vmem:[#allocation2 + $0x4c] sm:$0xff]  }
 0x2b1   : > { %v2673_v38 = vpop.f32.mrb[206].mxu0  ;;  %v2333_v19 = vpop.f32.mrb[206].mxu1  ;;  %v4043_v2 = vrot.slane %v7960_v37, 1 }
 0x2b2   : > { %v9779_v21 = vadd.f32 %v2673_v38, %v2375_v48  ;;  %v7138_v58 = vpop.f32.mrb[207].mxu0  ;;  %v7042_v60 = vpop.f32.mrb[207].mxu1 }
 0x2b4   : > { %7380 = vmatmul.mubr.bf16.gmra.mrb[56].mxu1 %v4042_v46  ;;  %7476 = vmatmul.mubr.bf16.gmra.mrb[56].mxu0 %v9474_v23  ;;  %v4044_v23 = vsel %vm4029_vm6, %v4041_v28, %v4043_v2 }
 0x2b5   : > { %7383 = vmatprep.mubr.msk.bf16.mxu1 %vm8010_vm0, %v10785_v20  ;;  %7479 = vmatprep.mubr.msk.bf16.mxu0 %vm8010_vm0, %v10785_v20 }
 0x2b7   : > { %v2678_v27 = vpop.f32.mrb[208].mxu0  ;;  %v3160_v44 = vpop.f32.mrb[208].mxu1 }
 0x2b8   : > { %v9786_v61 = vadd.f32 %v2678_v27, %v2376_v62  ;;  %v3326_v43 = vadd.f32 %v3160_v44, %v9397_v6  ;;  %v7141_v41 = vpop.f32.mrb[209].mxu0  ;;  %v7161_v48 = vpop.f32.mrb[209].mxu1  ;;  %v7961_v6 = vld [vmem:[#allocation2 + $0x54] sm:$0xff]  }
 0x2b9   : > { %v2681_v47 = vpop.f32.mrb[210].mxu0  ;;  %v3163_v1 = vpop.f32.mrb[210].mxu1  ;;  %v4045_v62 = vrot.slane %v7961_v6, 1 }
 0x2ba   : > { %v3327_v51 = vadd.f32 %v3163_v1, %v9402_v42  ;;  %v7142_v15 = vpop.f32.mrb[211].mxu0  ;;  %v7162_v39 = vpop.f32.mrb[211].mxu1 }
 0x2bb   : > { %v10884_v15 = vld [vmem:[#allocation6_spill] sm:$0xff] }
 0x2bc   : > { %7384 = vmatmul.mubr.bf16.gmra.mrb[60].mxu1 %v4044_v23  ;;  %7480 = vmatmul.mubr.bf16.gmra.mrb[60].mxu0 %v9501_v0  ;;  %v4046_v0 = vsel %vm4029_vm6, %v4043_v2, %v4045_v62 }
 0x2bd   : > { %7387 = vmatprep.mubr.msk.bf16.mxu1 %vm8010_vm0, %v10785_v20  ;;  %7483 = vmatprep.mubr.msk.bf16.mxu0 %vm8010_vm0, %v10785_v20 }
 0x2bf   : > { %v3168_v33 = vpop.f32.mrb[212].mxu1  ;;  %v3801_v53 = vpop.f32.mrb[212].mxu0 }
 0x2c0   : > { %v3328_v38 = vadd.f32 %v3168_v33, %v9418_v63  ;;  %v9797_v28 = vadd.f32 %v3801_v53, %v3326_v43  ;;  %v7165_v42 = vpop.f32.mrb[213].mxu1  ;;  %v7261_v46 = vpop.f32.mrb[213].mxu0  ;;  %v7962_v63 = vld [vmem:[#allocation2 + $0x5c] sm:$0xff]  }
 0x2c1   : > { %v3171_v19 = vpop.f32.mrb[214].mxu1  ;;  %v3804_v58 = vpop.f32.mrb[214].mxu0  ;;  %v4047_v43 = vrot.slane %v7962_v63, 1  ;;  %v10886_v63 = vld [vmem:[#allocation8_spill] sm:$0xff] }
 0x2c2   : > { %v3329_v60 = vadd.f32 %v3171_v19, %v9423_v57  ;;  %v9801_v37 = vadd.f32 %v3804_v58, %v3327_v51  ;;  %v7262_v27 = vpop.f32.mrb[215].mxu0  ;;  %v7166_v44 = vpop.f32.mrb[215].mxu1 }
 0x2c4   : > { %7388 = vmatmul.mubr.bf16.gmra.mrb[64].mxu1 %v4046_v0  ;;  %7484 = vmatmul.mubr.bf16.gmra.mrb[64].mxu0 %v9527_v29  ;;  %v4048_v29 = vsel %vm4029_vm6, %v4045_v62, %v4047_v43  ;;  %v10885_v62 = vld [vmem:[#allocation7_spill] sm:$0xff] }
 0x2c5   : > { %7391 = vmatprep.mubr.msk.bf16.mxu1 %vm8010_vm0, %v10785_v20  ;;  %7487 = vmatprep.mubr.msk.bf16.mxu0 %vm8010_vm0, %v10785_v20 }
 0x2c7   : > { %v3176_v41 = vpop.f32.mrb[216].mxu1  ;;  %v3809_v48 = vpop.f32.mrb[216].mxu0 }
 0x2c8   : > { %v3330_v2 = vadd.f32 %v3176_v41, %v9439_v11  ;;  %v9809_v57 = vadd.f32 %v3809_v48, %v3328_v38  ;;  %v7169_v47 = vpop.f32.mrb[217].mxu1  ;;  %v7265_v1 = vpop.f32.mrb[217].mxu0  ;;  %v7963_v11 = vld [vmem:[#allocation2 + $0x64] sm:$0xff]  }
 0x2c9   : > { %v3179_v23 = vpop.f32.mrb[218].mxu1  ;;  %v3812_v51 = vpop.f32.mrb[218].mxu0  ;;  %v4049_v38 = vrot.slane %v7963_v11, 1 }
 0x2ca   : > { %v3331_v39 = vadd.f32 %v3179_v23, %v10884_v15  ;;  %v9813_v6 = vadd.f32 %v3812_v51, %v3329_v60  ;;  %v7266_v33 = vpop.f32.mrb[219].mxu0  ;;  %v7170_v53 = vpop.f32.mrb[219].mxu1 }
 0x2cc   : > { %7392 = vmatmul.mubr.bf16.gmra.mrb[68].mxu1 %v4048_v29  ;;  %7488 = vmatmul.mubr.bf16.gmra.mrb[68].mxu0 %v9555_v24  ;;  %v4050_v24 = vsel %vm4029_vm6, %v4047_v43, %v4049_v38  ;;  %v10887_v43 = vld [vmem:[#allocation10_spill] sm:$0xff] }
 0x2cd   : > { %7395 = vmatprep.mubr.msk.bf16.mxu1 %vm8010_vm0, %v10785_v20  ;;  %7491 = vmatprep.mubr.msk.bf16.mxu0 %vm8010_vm0, %v10785_v20 }
 0x2cf   : > { %v3184_v42 = vpop.f32.mrb[220].mxu1  ;;  %v3817_v46 = vpop.f32.mrb[220].mxu0 }
 0x2d0   : > { %v3332_v19 = vadd.f32 %v3184_v42, %v10885_v62  ;;  %v9821_v58 = vadd.f32 %v3817_v46, %v3330_v2  ;;  %v7173_v0 = vpop.f32.mrb[221].mxu1  ;;  %v7269_v60 = vpop.f32.mrb[221].mxu0  ;;  %v7964_v2 = vld [vmem:[#allocation2 + $0x6c] sm:$0xff]   ;;  %v10888_v46 = vld [vmem:[#allocation11_spill] sm:$0xff] }
 0x2d1   : > { %v3187_v27 = vpop.f32.mrb[222].mxu1  ;;  %v3820_v44 = vpop.f32.mrb[222].mxu0  ;;  %v4051_v23 = vrot.slane %v7964_v2, 1 }
 0x2d2   : > { %v3333_v41 = vadd.f32 %v3187_v27, %v10886_v63  ;;  %v9825_v48 = vadd.f32 %v3820_v44, %v3331_v39  ;;  %v7270_v47 = vpop.f32.mrb[223].mxu0  ;;  %v7174_v1 = vpop.f32.mrb[223].mxu1 }
 0x2d4   : > { %7396 = vmatmul.mubr.bf16.gmra.mrb[72].mxu1 %v4050_v24  ;;  %7492 = vmatmul.mubr.bf16.gmra.mrb[72].mxu0 %v9581_v56  ;;  %v4052_v56 = vsel %vm4029_vm6, %v4049_v38, %v4051_v23  ;;  %v10890_v38 = vld [vmem:[#allocation14_spill] sm:$0xff] }
 0x2d5   : > { %7399 = vmatprep.mubr.msk.bf16.mxu1 %vm8010_vm0, %v10785_v20  ;;  %7495 = vmatprep.mubr.msk.bf16.mxu0 %vm8010_vm0, %v10785_v20 }
 0x2d7   : > { %v3192_v51 = vpop.f32.mrb[224].mxu1  ;;  %v3825_v29 = vpop.f32.mrb[224].mxu0 }
 0x2d8   : > { %v3334_v15 = vadd.f32 %v3192_v51, %v10887_v43  ;;  %v9833_v33 = vadd.f32 %v3825_v29, %v3332_v19  ;;  %v7177_v39 = vpop.f32.mrb[225].mxu1  ;;  %v7273_v53 = vpop.f32.mrb[225].mxu0  ;;  %v10889_v19 = vld [vmem:[#allocation9_spill] sm:$0xff] }
 0x2d9   : > { %v3195_v11 = vpop.f32.mrb[226].mxu1  ;;  %v3828_v42 = vpop.f32.mrb[226].mxu0  ;;  %v4053_v44 = vrot.slane %v10889_v19, 1  ;;  %v10891_v43 = vshrl.u32 %v10889_v19, 16  ;;  %v10892_v53 = vshll.u32 %v10889_v19, 16 }
 0x2da   : > { %v3335_v62 = vadd.f32 %v3195_v11, %v10888_v46  ;;  %v9837_v0 = vadd.f32 %v3828_v42, %v3333_v41  ;;  %v7274_v60 = vpop.f32.mrb[227].mxu0  ;;  %v7178_v27 = vpop.f32.mrb[227].mxu1  ;;  %v10893_v42 = vld [vmem:[#allocation13_spill] sm:$0xff] }
 0x2db   : > { %v4455_v39 = vrot.slane %v10891_v43, 1  ;;  %v4456_v11 = vrot.slane %v10892_v53, 2 }
 0x2dc   : > { %7400 = vmatmul.mubr.bf16.gmra.mrb[76].mxu1 %v4052_v56  ;;  %7496 = vmatmul.mubr.bf16.gmra.mrb[76].mxu0 %v9609_v34  ;;  %v4054_v34 = vsel %vm4029_vm6, %v4051_v23, %v4053_v44  ;;  %v10894_v23 = vld [vmem:[#allocation12_spill] sm:$0xff] }
 0x2dd   : > { %7403 = vmatprep.mubr.msk.bf16.mxu1 %vm8010_vm0, %v10785_v20  ;;  %7499 = vmatprep.mubr.msk.bf16.mxu0 %vm8010_vm0, %v10785_v20  ;;  %v10897_v53 = vshrl.u32 %v10894_v23, 16 }
 0x2df   : > { %v3200_v24 = vpop.f32.mrb[228].mxu1  ;;  %v3833_v63 = vpop.f32.mrb[228].mxu0 }
 0x2e0   : > { %v3336_v47 = vadd.f32 %v3200_v24, %v10890_v38  ;;  %v9846_v1 = vadd.f32 %v3833_v63, %v3334_v15  ;;  %v7181_v41 = vpop.f32.mrb[229].mxu1  ;;  %v7277_v2 = vpop.f32.mrb[229].mxu0  ;;  %v4055_v15 = vrot.slane %v10894_v23, 1  ;;  %v4457_v24 = vor.u32 %v4456_v11, %v4455_v39  ;;  %v10895_v38 = vld [vmem:[#allocation18_spill] sm:$0xff] }
 0x2e1   : > { %v3203_v51 = vpop.f32.mrb[230].mxu1  ;;  %v3836_v29 = vpop.f32.mrb[230].mxu0  ;;  %v10898_v39 = vshll.u32 %v10894_v23, 16 }
 0x2e2   : > { %v3337_v56 = vadd.f32 %v3203_v51, %v10893_v42  ;;  %v9854_v46 = vadd.f32 %v3836_v29, %v3335_v62  ;;  %v7278_v60 = vpop.f32.mrb[231].mxu0  ;;  %v7182_v27 = vpop.f32.mrb[231].mxu1  ;;  %v4458_v43 = vsel %vm4402_vm4, %v9177_v54, %v4457_v24  ;;  %v4459_v42 = vrot.slane %v10897_v53, 1  ;;  %v10901_v54 = vld [vmem:[#allocation15_spill] sm:$0xff] }
 0x2e3   : > { %v4460_v11 = vrot.slane %v10898_v39, 2  ;;  %v10899_v60 = vld [vmem:[#allocation16_spill] sm:$0xff]  ;;  %v10904_v8 = vshll.u32 %v10901_v54, 16 }
 0x2e4   : > { %7404 = vmatmul.mubr.bf16.gmra.mrb[80].mxu1 %v4054_v34  ;;  %7500 = vmatmul.mubr.bf16.gmra.mrb[80].mxu0 %v9631_v40  ;;  %v4056_v40 = vsel %vm4029_vm6, %v4053_v44, %v4055_v15  ;;  %v4057_v44 = vrot.slane %v10901_v54, 1 }
 0x2e5   : > { %7407 = vmatprep.mubr.msk.bf16.mxu1 %vm8010_vm0, %v10785_v20  ;;  %7503 = vmatprep.mubr.msk.bf16.mxu0 %vm8010_vm0, %v10785_v20 }
 0x2e7   : > { %v3208_v19 = vpop.f32.mrb[232].mxu1  ;;  %v3841_v63 = vpop.f32.mrb[232].mxu0 }
 0x2e8   : > { %v3338_v41 = vadd.f32 %v3208_v19, %v10895_v38  ;;  %v9863_v62 = vadd.f32 %v3841_v63, %v3336_v47  ;;  %v7185_v2 = vpop.f32.mrb[233].mxu1  ;;  %v7281_v51 = vpop.f32.mrb[233].mxu0  ;;  %v4461_v38 = vor.u32 %v4460_v11, %v4459_v42  ;;  %v4464_v42 = vrot.slane %v10904_v8, 2  ;;  %v10905_v11 = vld [vmem:[#allocation20_spill] sm:$0xff] }
 0x2e9   : > { %v3211_v29 = vpop.f32.mrb[234].mxu1  ;;  %v3844_v34 = vpop.f32.mrb[234].mxu0  ;;  %v10902_v51 = vld [vmem:[#allocation19_spill] sm:$0xff] }
 0x2ea   : > { %10896 = vst [vmem:[#allocation25_spill] sm:$0xff] %v9863_v62  ;;  %v3339_v27 = vadd.f32 %v3211_v29, %v10899_v60  ;;  %v9873_v19 = vadd.f32 %v3844_v34, %v3337_v56  ;;  %v7282_v47 = vpop.f32.mrb[235].mxu0  ;;  %v7186_v63 = vpop.f32.mrb[235].mxu1  ;;  %v4462_v60 = vsel %vm4402_vm4, %v4457_v24, %v4461_v38 }
 0x2eb   : > { %v10903_v47 = vshrl.u32 %v10901_v54, 16 }
 0x2ec   : > { %10900 = vst [vmem:[#allocation26_spill] sm:$0xff] %v9873_v19  ;;  %7408 = vmatmul.mubr.bf16.gmra.mrb[84].mxu1 %v4056_v40  ;;  %7504 = vmatmul.mubr.bf16.gmra.mrb[84].mxu0 %v4458_v43  ;;  %v4058_v43 = vsel %vm4029_vm6, %v4055_v15, %v4057_v44  ;;  %v4059_v15 = vrot.slane %v9561_v31, 1 }
 0x2ed   : > { %7411 = vmatprep.mubr.msk.bf16.mxu1 %vm8010_vm0, %v10785_v20  ;;  %7507 = vmatprep.mubr.msk.bf16.mxu0 %vm8010_vm0, %v10785_v20  ;;  %v4463_v63 = vrot.slane %v10903_v47, 1 }
 0x2ef   : > { %v3216_v2 = vpop.f32.mrb[236].mxu1  ;;  %v3849_v23 = vpop.f32.mrb[236].mxu0  ;;  %v4465_v24 = vor.u32 %v4464_v42, %v4463_v63  ;;  %v10908_v42 = vld [vmem:[#allocation21_spill] sm:$0xff] }
 0x2f0   : > { %v3340_v53 = vadd.f32 %v3216_v2, %v10902_v51  ;;  %v9881_v29 = vadd.f32 %v3849_v23, %v3338_v41  ;;  %v7189_v56 = vpop.f32.mrb[237].mxu1  ;;  %v7285_v34 = vpop.f32.mrb[237].mxu0 }
 0x2f1   : > { %v3219_v39 = vpop.f32.mrb[238].mxu1  ;;  %v3852_v40 = vpop.f32.mrb[238].mxu0 }
 0x2f2   : > { %v3341_v19 = vadd.f32 %v3219_v39, %v10905_v11  ;;  %v9890_v62 = vadd.f32 %v3852_v40, %v3339_v27  ;;  %v7286_v41 = vpop.f32.mrb[239].mxu0  ;;  %v7190_v2 = vpop.f32.mrb[239].mxu1  ;;  %v4060_v40 = vsel %vm4029_vm6, %v4057_v44, %v4059_v15  ;;  %v10907_v11 = vshll.u32 %v9561_v31, 16 }
 0x2f3   : > { %v4061_v44 = vrot.slane %v9576_v5, 1 }
 0x2f4   : > { %7412 = vmatmul.mubr.bf16.gmra.mrb[88].mxu1 %v4058_v43  ;;  %7508 = vmatmul.mubr.bf16.gmra.mrb[88].mxu0 %v4462_v60  ;;  %v4466_v43 = vsel %vm4402_vm4, %v4461_v38, %v4465_v24  ;;  %v10906_v60 = vshrl.u32 %v9561_v31, 16  ;;  %v4468_v63 = vrot.slane %v10907_v11, 2  ;;  %v10911_v11 = vshrl.u32 %v9576_v5, 16 }
 0x2f5   : > { %7415 = vmatprep.mubr.msk.bf16.mxu1 %vm8010_vm0, %v10785_v20  ;;  %7511 = vmatprep.mubr.msk.bf16.mxu0 %vm8010_vm0, %v10785_v20 }
 0x2f6   : > { %v4467_v47 = vrot.slane %v10906_v60, 1 }
 0x2f7   : > { %v3224_v23 = vpop.f32.mrb[240].mxu1  ;;  %v3857_v54 = vpop.f32.mrb[240].mxu0 }
 0x2f8   : > { %v3342_v8 = vadd.f32 %v3224_v23, %v9593_v59  ;;  %v9898_v51 = vadd.f32 %v3857_v54, %v3340_v53  ;;  %v7193_v27 = vpop.f32.mrb[241].mxu1  ;;  %v7289_v56 = vpop.f32.mrb[241].mxu0  ;;  %v4469_v38 = vor.u32 %v4468_v63, %v4467_v47  ;;  %v10910_v54 = vld [vmem:[#allocation22_spill] sm:$0xff]  ;;  %v10913_v63 = vld [vmem:[#allocation23_spill] sm:$0xff] }
 0x2f9   : > { %v3227_v34 = vpop.f32.mrb[242].mxu1  ;;  %v3860_v39 = vpop.f32.mrb[242].mxu0 }
 0x2fa   : > { %v3343_v41 = vadd.f32 %v3227_v34, %v10908_v42  ;;  %v9907_v2 = vadd.f32 %v3860_v39, %v3341_v19  ;;  %v7290_v59 = vpop.f32.mrb[243].mxu0  ;;  %v7194_v53 = vpop.f32.mrb[243].mxu1  ;;  %v4470_v60 = vsel %vm4402_vm4, %v4465_v24, %v4469_v38  ;;  %v4471_v42 = vrot.slane %v10911_v11, 1 }
 0x2fb   : > { %v10912_v59 = vshll.u32 %v9576_v5, 16  ;;  %v10914_v11 = vshrl.u32 %v9615_v12, 16 }
 0x2fc   : > { %10909 = vst [vmem:[#allocation27_spill] sm:$0xff] %v9907_v2  ;;  %7416 = vmatmul.mubr.bf16.gmra.mrb[92].mxu1 %v4060_v40  ;;  %7512 = vmatmul.mubr.bf16.gmra.mrb[92].mxu0 %v4466_v43  ;;  %v4062_v43 = vsel %vm4029_vm6, %v4059_v15, %v4061_v44  ;;  %v4063_v15 = vrot.slane %v9615_v12, 1 }
 0x2fd   : > { %7419 = vmatprep.mubr.msk.bf16.mxu1 %vm8010_vm0, %v10785_v20  ;;  %7515 = vmatprep.mubr.msk.bf16.mxu0 %vm8010_vm0, %v10785_v20  ;;  %v4472_v47 = vrot.slane %v10912_v59, 2  ;;  %v4475_v59 = vrot.slane %v10914_v11, 1  ;;  %v10917_v11 = vshrl.u32 %v9641_v45, 16 }
 0x2ff   : > { %v3232_v23 = vpop.f32.mrb[244].mxu1  ;;  %v3865_v31 = vpop.f32.mrb[244].mxu0  ;;  %v4473_v24 = vor.u32 %v4472_v47, %v4471_v42  ;;  %v10916_v47 = vld [vmem:[#allocation24_spill] sm:$0xff] }
 0x300   : > { %v3344_v27 = vadd.f32 %v3232_v23, %v10910_v54  ;;  %v9915_v56 = vadd.f32 %v3865_v31, %v3342_v8  ;;  %v7197_v19 = vpop.f32.mrb[245].mxu1  ;;  %v7293_v34 = vpop.f32.mrb[245].mxu0 }
 0x301   : > { %v3235_v39 = vpop.f32.mrb[246].mxu1  ;;  %v3868_v40 = vpop.f32.mrb[246].mxu0 }
 0x302   : > { %v3345_v53 = vadd.f32 %v3235_v39, %v10913_v63  ;;  %v9924_v2 = vadd.f32 %v3868_v40, %v3343_v41  ;;  %v7294_v8 = vpop.f32.mrb[247].mxu0  ;;  %v7198_v23 = vpop.f32.mrb[247].mxu1  ;;  %v10915_v63 = vshll.u32 %v9615_v12, 16 }
 0x304   : > { %7420 = vmatmul.mubr.bf16.gmra.mrb[96].mxu1 %v4062_v43  ;;  %7516 = vmatmul.mubr.bf16.gmra.mrb[96].mxu0 %v4470_v60  ;;  %v4064_v43 = vsel %vm4029_vm6, %v4061_v44, %v4063_v15  ;;  %v4474_v60 = vsel %vm4402_vm4, %v4469_v38, %v4473_v24  ;;  %v4476_v42 = vrot.slane %v10915_v63, 2  ;;  %v4065_v44 = vrot.slane %v9641_v45, 1 }
 0x305   : > { %7423 = vmatprep.mubr.msk.bf16.mxu1 %vm8010_vm0, %v10785_v20  ;;  %7519 = vmatprep.mubr.msk.bf16.mxu0 %vm8010_vm0, %v10785_v20  ;;  %v4479_v63 = vrot.slane %v10917_v11, 1 }
 0x306   : > { %v4477_v38 = vor.u32 %v4476_v42, %v4475_v59 }
 0x307   : > { %v3240_v31 = vpop.f32.mrb[248].mxu1  ;;  %v3873_v5 = vpop.f32.mrb[248].mxu0 }
 0x308   : > { %v3346_v54 = vadd.f32 %v3240_v31, %v9644_v3  ;;  %v9932_v19 = vadd.f32 %v3873_v5, %v3344_v27  ;;  %v7201_v41 = vpop.f32.mrb[249].mxu1  ;;  %v7297_v34 = vpop.f32.mrb[249].mxu0 }
 0x309   : > { %v3243_v39 = vpop.f32.mrb[250].mxu1  ;;  %v3876_v40 = vpop.f32.mrb[250].mxu0 }
 0x30a   : > { %v3347_v8 = vadd.f32 %v3243_v39, %v10916_v47  ;;  %v9941_v23 = vadd.f32 %v3876_v40, %v3345_v53  ;;  %v7298_v3 = vpop.f32.mrb[251].mxu0  ;;  %v7202_v27 = vpop.f32.mrb[251].mxu1  ;;  %v10918_v47 = vshll.u32 %v9641_v45, 16 }
 0x30b   : > { %v4067_v27 = vrot.slane %v9661_v16, 1 }
 0x30c   : > { %7424 = vmatmul.mubr.bf16.gmra.mrb[100].mxu1 %v4064_v43  ;;  %7520 = vmatmul.mubr.bf16.gmra.mrb[100].mxu0 %v4474_v60  ;;  %v4066_v43 = vsel %vm4029_vm6, %v4063_v15, %v4065_v44  ;;  %v4478_v60 = vsel %vm4402_vm4, %v4473_v24, %v4477_v38  ;;  %v4480_v59 = vrot.slane %v10918_v47, 2  ;;  %v4381_v24 = vld [vmem:[#allocation2 + $0xb8] sm:$0x3] }
 0x30d   : > { %7427 = vmatprep.mubr.msk.bf16.mxu1 %vm8010_vm0, %v10785_v20  ;;  %7523 = vmatprep.mubr.msk.bf16.mxu0 %vm8010_vm0, %v10785_v20 }
 0x30e   : > { %v4481_v15 = vor.u32 %v4480_v59, %v4479_v63  ;;  %v10920_v63 = vshll.u32 %v9661_v16, 16  ;;  %v6125_v59 = vcombine.low %v9673_v35, %v4381_v24 }
 0x30f   : > { %v3248_v31 = vpop.f32.mrb[252].mxu1  ;;  %v3881_v12 = vpop.f32.mrb[252].mxu0 }
 0x310   : > { %v3348_v5 = vadd.f32 %v3248_v31, %v9664_v36  ;;  %v9949_v41 = vadd.f32 %v3881_v12, %v3346_v54  ;;  %v7205_v53 = vpop.f32.mrb[253].mxu1  ;;  %v7301_v34 = vpop.f32.mrb[253].mxu0  ;;  %v4484_v47 = vrot.slane %v10920_v63, 2 }
 0x311   : > { %v3251_v39 = vpop.f32.mrb[254].mxu1  ;;  %v3884_v40 = vpop.f32.mrb[254].mxu0  ;;  %v4068_v34 = vsel %vm4029_vm6, %v4065_v44, %v4067_v27  ;;  %v4069_v44 = vrot.slane %v9684_v4, 1 }
 0x312   : > { %v3349_v42 = vadd.f32 %v3251_v39, %v9671_v13  ;;  %v9958_v3 = vadd.f32 %v3884_v40, %v3347_v8  ;;  %v7302_v36 = vpop.f32.mrb[255].mxu0  ;;  %v7206_v54 = vpop.f32.mrb[255].mxu1 }
 0x314   : > { %7428 = vmatmul.mubr.bf16.gmra.mrb[104].mxu1 %v4066_v43  ;;  %7524 = vmatmul.mubr.bf16.gmra.mrb[104].mxu0 %v4478_v60  ;;  %v4482_v43 = vsel %vm4402_vm4, %v4477_v38, %v4481_v15  ;;  %v10919_v60 = vshrl.u32 %v9661_v16, 16  ;;  %v4488_v38 = vshrl.u32 %v6125_v59, 16 }
 0x315   : > { %7431 = vmatprep.mubr.msk.bf16.mxu1 %vm8010_vm0, %v10785_v20  ;;  %7527 = vmatprep.mubr.msk.bf16.mxu0 %vm8010_vm0, %v10785_v20 }
 0x316   : > { %v4483_v11 = vrot.slane %v10919_v60, 1 }
 0x317   : > { %v3256_v45 = vpop.f32.mrb[0].mxu1  ;;  %v3889_v31 = vpop.f32.mrb[0].mxu0 }
 0x318   : > { %v3350_v13 = vadd.f32 %v3256_v45, %v9687_v7  ;;  %v9966_v8 = vadd.f32 %v3889_v31, %v3348_v5  ;;  %v7209_v12 = vpop.f32.mrb[1].mxu1  ;;  %v7305_v53 = vpop.f32.mrb[1].mxu0  ;;  %v4485_v16 = vor.u32 %v4484_v47, %v4483_v11  ;;  %v4491_v45 = vshll.u32 %v6125_v59, 16 }
 0x319   : > { %v3259_v39 = vpop.f32.mrb[2].mxu1  ;;  %v3892_v40 = vpop.f32.mrb[2].mxu0 }
 0x31a   : > { %v3351_v7 = vadd.f32 %v3259_v39, %v9694_v26  ;;  %v9976_v5 = vadd.f32 %v3892_v40, %v3349_v42  ;;  %v7306_v36 = vpop.f32.mrb[3].mxu0  ;;  %v7210_v54 = vpop.f32.mrb[3].mxu1  ;;  %v4070_v39 = vsel %vm4029_vm6, %v4067_v27, %v4069_v44  ;;  %v4486_v40 = vsel %vm4402_vm4, %v4481_v15, %v4485_v16 }
 0x31b   : > { %v4493_v60 = vrot.slane %v4491_v45, 2 }
 0x31c   : > { %7432 = vmatmul.mubr.bf16.gmra.mrb[108].mxu1 %v4068_v34  ;;  %7528 = vmatmul.mubr.bf16.gmra.mrb[108].mxu0 %v4482_v43  ;;  %v4490_v43 = vrot.slane %v4488_v38, 1 }
 0x31d   : > { %7435 = vmatprep.mubr.msk.bf16.mxu1 %vm8010_vm0, %v10785_v20  ;;  %7531 = vmatprep.mubr.msk.bf16.mxu0 %vm8010_vm0, %v10785_v20 }
 0x31f   : > { %v3264_v35 = vpop.f32.mrb[4].mxu1  ;;  %v3897_v24 = vpop.f32.mrb[4].mxu0 }
 0x320   : > { %v3352_v26 = vadd.f32 %v3264_v35, %v9703_v32  ;;  %v9984_v42 = vadd.f32 %v3897_v24, %v3350_v13  ;;  %v7213_v31 = vpop.f32.mrb[5].mxu1  ;;  %v7309_v12 = vpop.f32.mrb[5].mxu0  ;;  %v4494_v32 = vor.u32 %v4493_v60, %v4490_v43 }
 0x321   : > { %v3267_v53 = vpop.f32.mrb[6].mxu1  ;;  %v3900_v34 = vpop.f32.mrb[6].mxu0 }
 0x322   : > { %v3353_v4 = vadd.f32 %v3267_v53, %v9707_v55  ;;  %v9989_v11 = vadd.f32 %v3900_v34, %v3351_v7  ;;  %v7310_v63 = vpop.f32.mrb[7].mxu0  ;;  %v7214_v47 = vpop.f32.mrb[7].mxu1  ;;  %v4495_v38 = vsel %vm4402_vm4, %v4485_v16, %v4494_v32 }
 0x324   : > { %7436 = vmatmul.mubr.bf16.gmra.mrb[112].mxu1 %v4070_v39  ;;  %7532 = vmatmul.mubr.bf16.gmra.mrb[112].mxu0 %v4486_v40 }
 0x325   : > { %7439 = vmatprep.mubr.msk.bf16.mxu1 %vm8010_vm0, %v10785_v20  ;;  %7535 = vmatprep.mubr.msk.bf16.mxu0 %vm8010_vm0, %v10785_v20 }
 0x327   : > { %v3272_v27 = vpop.f32.mrb[8].mxu1  ;;  %v3905_v13 = vpop.f32.mrb[8].mxu0 }
 0x328   : > { %v3354_v15 = vadd.f32 %v3272_v27, %v9715_v17  ;;  %v9996_v59 = vadd.f32 %v3905_v13, %v3352_v26  ;;  %v7217_v55 = vpop.f32.mrb[9].mxu1  ;;  %v7313_v7 = vpop.f32.mrb[9].mxu0 }
 0x329   : > { %v3275_v36 = vpop.f32.mrb[10].mxu1  ;;  %v3908_v54 = vpop.f32.mrb[10].mxu0 }
 0x32a   : > { %v3355_v45 = vadd.f32 %v3275_v36, %v9718_v14  ;;  %v10000_v35 = vadd.f32 %v3908_v54, %v3353_v4  ;;  %v7314_v24 = vpop.f32.mrb[11].mxu0  ;;  %v7218_v31 = vpop.f32.mrb[11].mxu1 }
 0x32c   : > { %7440 = vmatmul.mubr.bf16.gmra.mrb[116].mxu1 %v4069_v44  ;;  %7536 = vmatmul.mubr.bf16.gmra.mrb[116].mxu0 %v4495_v38 }
 0x32d   : > { %7539 = vmatprep.mubr.msk.bf16.mxu0 %vm8010_vm0, %v10785_v20 }
 0x32f   : > { %v3280_v17 = vpop.f32.mrb[12].mxu1  ;;  %v3913_v26 = vpop.f32.mrb[12].mxu0 }
 0x330   : > { %v3356_v12 = vadd.f32 %v3280_v17, %v9726_v50  ;;  %v10005_v53 = vadd.f32 %v3913_v26, %v3354_v15  ;;  %v7221_v34 = vpop.f32.mrb[13].mxu1  ;;  %v7317_v39 = vpop.f32.mrb[13].mxu0 }
 0x331   : > { %v3283_v16 = vpop.f32.mrb[14].mxu1  ;;  %v3916_v40 = vpop.f32.mrb[14].mxu0 }
 0x332   : > { %v3357_v14 = vadd.f32 %v3283_v16, %v9732_v49  ;;  %v10008_v43 = vadd.f32 %v3916_v40, %v3355_v45  ;;  %v7318_v60 = vpop.f32.mrb[15].mxu0  ;;  %v7222_v44 = vpop.f32.mrb[15].mxu1 }
 0x334   : > { %7540 = vmatmul.mubr.bf16.gmra.mrb[120].mxu0 %v4494_v32 }
 0x337   : > { %v3288_v4 = vpop.f32.mrb[16].mxu1  ;;  %v3921_v63 = vpop.f32.mrb[16].mxu0 }
 0x338   : > { %v3358_v20 = vadd.f32 %v3288_v4, %v9740_v18  ;;  %v10011_v47 = vadd.f32 %v3921_v63, %v3356_v12  ;;  %v7225_v50 = vpop.f32.mrb[17].mxu1  ;;  %v7321_v27 = vpop.f32.mrb[17].mxu0 }
 0x339   : > { %v3291_v13 = vpop.f32.mrb[18].mxu1  ;;  %v3924_v15 = vpop.f32.mrb[18].mxu0 }
 0x33a   : > { %v3359_v55 = vadd.f32 %v3291_v13, %v9744_v22  ;;  %v10014_v7 = vadd.f32 %v3924_v15, %v3357_v14  ;;  %v7322_v49 = vpop.f32.mrb[19].mxu0  ;;  %v7226_v36 = vpop.f32.mrb[19].mxu1 }
 0x33f   : > { %v3296_v54 = vpop.f32.mrb[20].mxu1  ;;  %v3929_v38 = vpop.f32.mrb[20].mxu0 }
 0x340   : > { %v3360_v32 = vadd.f32 %v3296_v54, %v9752_v25  ;;  %v10017_v45 = vadd.f32 %v3929_v38, %v3358_v20  ;;  %v7229_v24 = vpop.f32.mrb[21].mxu1  ;;  %v7325_v18 = vpop.f32.mrb[21].mxu0 }
 0x341   : > { %v3299_v31 = vpop.f32.mrb[22].mxu1  ;;  %v3932_v17 = vpop.f32.mrb[22].mxu0 }
 0x342   : > { %v3361_v26 = vadd.f32 %v3299_v31, %v9756_v9  ;;  %v10020_v12 = vadd.f32 %v3932_v17, %v3359_v55  ;;  %v7326_v34 = vpop.f32.mrb[23].mxu0  ;;  %v7230_v22 = vpop.f32.mrb[23].mxu1 }
 0x347   : > { %v3304_v39 = vpop.f32.mrb[24].mxu1  ;;  %v3937_v16 = vpop.f32.mrb[24].mxu0 }
 0x348   : > { %v3362_v40 = vadd.f32 %v3304_v39, %v9764_v30  ;;  %v10023_v14 = vadd.f32 %v3937_v16, %v3360_v32  ;;  %v7233_v60 = vpop.f32.mrb[25].mxu1  ;;  %v7329_v25 = vpop.f32.mrb[25].mxu0 }
 0x349   : > { %v3307_v44 = vpop.f32.mrb[26].mxu1  ;;  %v3940_v4 = vpop.f32.mrb[26].mxu0 }
 0x34a   : > { %v3363_v63 = vadd.f32 %v3307_v44, %v9768_v52  ;;  %v10026_v20 = vadd.f32 %v3940_v4, %v3361_v26  ;;  %v7330_v50 = vpop.f32.mrb[27].mxu0  ;;  %v7234_v9 = vpop.f32.mrb[27].mxu1 }
 0x34f   : > { %v3312_v27 = vpop.f32.mrb[28].mxu1  ;;  %v3945_v13 = vpop.f32.mrb[28].mxu0 }
 0x350   : > { %v3364_v15 = vadd.f32 %v3312_v27, %v9776_v10  ;;  %v10029_v55 = vadd.f32 %v3945_v13, %v3362_v40  ;;  %v7237_v49 = vpop.f32.mrb[29].mxu1  ;;  %v7333_v30 = vpop.f32.mrb[29].mxu0 }
 0x351   : > { %v3315_v36 = vpop.f32.mrb[30].mxu1  ;;  %v3948_v54 = vpop.f32.mrb[30].mxu0 }
 0x352   : > { %v3365_v38 = vadd.f32 %v3315_v36, %v9779_v21  ;;  %v10032_v32 = vadd.f32 %v3948_v54, %v3363_v63  ;;  %v7334_v24 = vpop.f32.mrb[31].mxu0  ;;  %v7238_v52 = vpop.f32.mrb[31].mxu1  ;;  %v10044_v36 = vld [vmem:[%s8074_s27] ss:$0 sm:$0xff] }
 0x357   : > { %v3320_v18 = vpop.f32.mrb[32].mxu1  ;;  %v3953_v31 = vpop.f32.mrb[32].mxu0 }
 0x358   : > { %v3366_v17 = vadd.f32 %v3320_v18, %v9786_v61  ;;  %v10035_v26 = vadd.f32 %v3953_v31, %v3364_v15  ;;  %v7337_v34 = vpop.f32.mrb[33].mxu0  ;;  %v7241_v10 = vpop.f32.mrb[33].mxu1 }
 0x359   : > { %v3956_v22 = vpop.f32.mrb[34].mxu0  ;;  %v3323_v39 = vpop.f32.mrb[34].mxu1 }
 0x35a   : > { %v10037_v16 = vadd.f32 %v3956_v22, %v3365_v38  ;;  %v7338_v40 = vpop.f32.mrb[35].mxu0  ;;  %v7242_v60 = vpop.f32.mrb[35].mxu1 }
 0x35f   : > { %v3961_v21 = vpop.f32.mrb[36].mxu0  ;;  %v4174_v25 = vpop.f32.mrb[36].mxu1 }
 0x360   : > { %v10039_v44 = vadd.f32 %v3961_v21, %v3366_v17  ;;  %v4340_v4 = vadd.f32 %v4174_v25, %v9797_v28  ;;  %v7341_v63 = vpop.f32.mrb[37].mxu0  ;;  %v7361_v50 = vpop.f32.mrb[37].mxu1 }
 0x361   : > { %v3964_v61 = vpop.f32.mrb[38].mxu0  ;;  %v4177_v9 = vpop.f32.mrb[38].mxu1 }
 0x362   : > { %v4341_v27 = vadd.f32 %v4177_v9, %v9801_v37  ;;  %v7342_v13 = vpop.f32.mrb[39].mxu0  ;;  %v7362_v15 = vpop.f32.mrb[39].mxu1 }
 0x367   : > { %v4182_v49 = vpop.f32.mrb[40].mxu1  ;;  %v4599_v30 = vpop.f32.mrb[40].mxu0 }
 0x368   : > { %v4342_v54 = vadd.f32 %v4182_v49, %v9809_v57  ;;  %v4765_v38 = vadd.f32 %v4599_v30, %v4340_v4  ;;  %v7365_v24 = vpop.f32.mrb[41].mxu1  ;;  %v7461_v52 = vpop.f32.mrb[41].mxu0 }
 0x369   : > { %v4185_v18 = vpop.f32.mrb[42].mxu1  ;;  %v4602_v31 = vpop.f32.mrb[42].mxu0 }
 0x36a   : > { %v10048_v28 = vadd.f32 %v10044_v36, %v4765_v38  ;;  %v4343_v17 = vadd.f32 %v4185_v18, %v9813_v6  ;;  %v4766_v34 = vadd.f32 %v4602_v31, %v4341_v27  ;;  %v7462_v37 = vpop.f32.mrb[43].mxu0  ;;  %v7366_v10 = vpop.f32.mrb[43].mxu1 }
 0x36c   : > { %v6135_v22 = vmul.f32 -1.442695, %v10048_v28  ;;  %v10053_v39 = vadd.f32 %v10044_v36, %v4766_v34 }
 0x36e   : > { %7787 = vpow2.f32 %v6135_v22  ;;  %v6136_v57 = vmul.f32 -1.442695, %v10053_v39 }
 0x36f   : > { %v4190_v40 = vpop.f32.mrb[44].mxu1  ;;  %v4607_v60 = vpop.f32.mrb[44].mxu0 }
 0x370   : > { %7789 = vpow2.f32 %v6136_v57  ;;  %v4344_v21 = vadd.f32 %v4190_v40, %v9821_v58  ;;  %v4767_v25 = vadd.f32 %v4607_v60, %v4342_v54  ;;  %v7369_v6 = vpop.f32.mrb[45].mxu1  ;;  %v7465_v4 = vpop.f32.mrb[45].mxu0 }
 0x371   : > { %v4193_v63 = vpop.f32.mrb[46].mxu1  ;;  %v4610_v50 = vpop.f32.mrb[46].mxu0 }
 0x372   : > { %v10058_v61 = vadd.f32 %v10044_v36, %v4767_v25  ;;  %v4345_v9 = vadd.f32 %v4193_v63, %v9825_v48  ;;  %v4768_v27 = vadd.f32 %v4610_v50, %v4343_v17  ;;  %v7466_v13 = vpop.f32.mrb[47].mxu0  ;;  %v7370_v15 = vpop.f32.mrb[47].mxu1 }
 0x374   : > { %v6137_v49 = vmul.f32 -1.442695, %v10058_v61  ;;  %v10065_v30 = vadd.f32 %v10044_v36, %v4768_v27 }
 0x376   : > { %7791 = vpow2.f32 %v6137_v49  ;;  %v6138_v58 = vmul.f32 -1.442695, %v10065_v30 }
 0x377   : > { %v4198_v54 = vpop.f32.mrb[48].mxu1  ;;  %v4615_v38 = vpop.f32.mrb[48].mxu0 }
 0x378   : > { %v7788_v24 = vpop.eup %7787  ;;  %7793 = vpow2.f32 %v6138_v58  ;;  %v4346_v48 = vadd.f32 %v4198_v54, %v9833_v33  ;;  %v4769_v52 = vadd.f32 %v4615_v38, %v4344_v21  ;;  %v7373_v18 = vpop.f32.mrb[49].mxu1 }
 0x379   : > { %v7469_v31 = vpop.f32.mrb[49].mxu0  ;;  %v4980_v17 = vadd.f32 1.0, %v7788_v24  ;;  %v4201_v34 = vpop.f32.mrb[50].mxu1 }
 0x37a   : > { %v4618_v37 = vpop.f32.mrb[50].mxu0  ;;  %v7790_v10 = vpop.eup %7789  ;;  %v10074_v22 = vadd.f32 %v10044_v36, %v4769_v52  ;;  %v4347_v57 = vadd.f32 %v4201_v34, %v9837_v0  ;;  %v10084_v0 = vstv %s5144_s13 }
 0x37b   : > { %v4770_v40 = vadd.f32 %v4618_v37, %v4345_v9  ;;  %v7470_v60 = vpop.f32.mrb[51].mxu0  ;;  %v7374_v25 = vpop.f32.mrb[51].mxu1  ;;  %7795 = vrcp.f32 %v4980_v17  ;;  %v4981_v6 = vadd.f32 1.0, %v7790_v10  ;;  %vm5146_vm7 = vcmp.eq.s32.totalorder %v10084_v0, 1  ;;  %v5195_v0 = vld [vmem:[%s10715_s3 + $0x18] sm:$0xff] (!%p6176_p11) }
 0x37c   : > { %v6139_v33 = vmul.f32 -1.442695, %v10074_v22 }
 0x37d   : > { %v10081_v21 = vadd.f32 %v10044_v36, %v4770_v40  ;;  %7797 = vrcp.f32 %v4981_v6 }
 0x37e   : > { %7799 = vpow2.f32 %v6139_v33 }
 0x37f   : > { %v6140_v4 = vmul.f32 -1.442695, %v10081_v21  ;;  %v4206_v63 = vpop.f32.mrb[52].mxu1  ;;  %v4623_v50 = vpop.f32.mrb[52].mxu0 }
 0x380   : > { %v7792_v27 = vpop.eup %7791  ;;  %v4348_v9 = vadd.f32 %v4206_v63, %v9846_v1  ;;  %v4771_v13 = vadd.f32 %v4623_v50, %v4346_v48  ;;  %v7377_v15 = vpop.f32.mrb[53].mxu1  ;;  %v5103_v1 = vmax.f32 %v10048_v28, 0.0  ;;  %v10922_v63 = vld [vmem:[#allocation25_spill] sm:$0xff] }
 0x381   : > { %7801 = vpow2.f32 %v6140_v4  ;;  %v7473_v49 = vpop.f32.mrb[53].mxu0  ;;  %v4982_v58 = vadd.f32 1.0, %v7792_v27  ;;  %v4209_v54 = vpop.f32.mrb[54].mxu1 }
 0x382   : > { %v4626_v38 = vpop.f32.mrb[54].mxu0  ;;  %v7794_v24 = vpop.eup %7793  ;;  %v10088_v52 = vadd.f32 %v10044_v36, %v4771_v13  ;;  %v4349_v18 = vadd.f32 %v4209_v54, %v9854_v46  ;;  %v5104_v46 = vmax.f32 %v10053_v39, 0.0 }
 0x383   : > { %v4772_v31 = vadd.f32 %v4626_v38, %v4347_v57  ;;  %v7474_v17 = vpop.f32.mrb[55].mxu0  ;;  %v7378_v34 = vpop.f32.mrb[55].mxu1  ;;  %7803 = vrcp.f32 %v4982_v58  ;;  %v4983_v37 = vadd.f32 1.0, %v7794_v24  ;;  %v10923_v24 = vld [vmem:[#allocation26_spill] sm:$0xff] }
 0x384   : > { %v6141_v48 = vmul.f32 -1.442695, %v10088_v52 }
 0x385   : > { %v10095_v10 = vadd.f32 %v10044_v36, %v4772_v31  ;;  %v7796_v40 = vpop.eup %7795  ;;  %7805 = vrcp.f32 %v4983_v37 }
 0x386   : > { %v10099_v60 = vsel %vm5146_vm7, %v7796_v40, %v5103_v1  ;;  %7807 = vpow2.f32 %v6141_v48  ;;  %v5105_v48 = vmax.f32 %v10058_v61, 0.0 }
 0x387   : > { %v6142_v57 = vmul.f32 -1.442695, %v10095_v10  ;;  %v7798_v25 = vpop.eup %7797  ;;  %v4214_v6 = vpop.f32.mrb[56].mxu1 }
 0x388   : > { %v4631_v33 = vpop.f32.mrb[56].mxu0  ;;  %v7800_v28 = vpop.eup %7799  ;;  %v10105_v4 = vsel %vm5146_vm7, %v7798_v25, %v5104_v46  ;;  %v4350_v50 = vadd.f32 %v4214_v6, %v10922_v63  ;;  %v5106_v25 = vmax.f32 %v10065_v30, 0.0 }
 0x389   : > { %7809 = vpow2.f32 %v6142_v57  ;;  %v4773_v27 = vadd.f32 %v4631_v33, %v4348_v9  ;;  %v7381_v13 = vpop.f32.mrb[57].mxu1  ;;  %v7477_v15 = vpop.f32.mrb[57].mxu0  ;;  %v4984_v49 = vadd.f32 1.0, %v7800_v28 }
 0x38a   : > { %v4217_v58 = vpop.f32.mrb[58].mxu1  ;;  %v4634_v39 = vpop.f32.mrb[58].mxu0 }
 0x38b   : > { %v7802_v54 = vpop.eup %7801  ;;  %v10109_v38 = vadd.f32 %v10044_v36, %v4773_v27  ;;  %v4351_v31 = vadd.f32 %v4217_v58, %v10923_v24  ;;  %v4774_v17 = vadd.f32 %v4634_v39, %v4349_v18  ;;  %v7478_v34 = vpop.f32.mrb[59].mxu0  ;;  %7811 = vrcp.f32 %v4984_v49 }
 0x38c   : > { %v7382_v37 = vpop.f32.mrb[59].mxu1  ;;  %v4985_v1 = vadd.f32 1.0, %v7802_v54 }
 0x38d   : > { %v6143_v9 = vmul.f32 -1.442695, %v10109_v38  ;;  %v10115_v40 = vadd.f32 %v10044_v36, %v4774_v17  ;;  %v7804_v46 = vpop.eup %7803 }
 0x38e   : > { %7813 = vrcp.f32 %v4985_v1  ;;  %v10119_v57 = vsel %vm5146_vm7, %v7804_v46, %v5105_v48 }
 0x38f   : > { %7815 = vpow2.f32 %v6143_v9  ;;  %v6144_v18 = vmul.f32 -1.442695, %v10115_v40  ;;  %v7806_v6 = vpop.eup %7805  ;;  %v4222_v33 = vpop.f32.mrb[60].mxu1  ;;  %v5107_v9 = vmax.f32 %v10074_v22, 0.0 }
 0x390   : > { %v4639_v28 = vpop.f32.mrb[60].mxu0  ;;  %v7808_v61 = vpop.eup %7807  ;;  %v10125_v63 = vsel %vm5146_vm7, %v7806_v6, %v5106_v25  ;;  %v4352_v27 = vadd.f32 %v4222_v33, %v9881_v29 }
 0x391   : > { %7817 = vpow2.f32 %v6144_v18  ;;  %v4775_v13 = vadd.f32 %v4639_v28, %v4350_v50  ;;  %v7385_v15 = vpop.f32.mrb[61].mxu1  ;;  %v7481_v49 = vpop.f32.mrb[61].mxu0  ;;  %v4986_v58 = vadd.f32 1.0, %v7808_v61 }
 0x392   : > { %v4225_v39 = vpop.f32.mrb[62].mxu1  ;;  %v4642_v30 = vpop.f32.mrb[62].mxu0 }
 0x393   : > { %v7810_v54 = vpop.eup %7809  ;;  %v10129_v24 = vadd.f32 %v10044_v36, %v4775_v13  ;;  %v4353_v17 = vadd.f32 %v4225_v39, %v9890_v62  ;;  %v4776_v34 = vadd.f32 %v4642_v30, %v4351_v31  ;;  %v7482_v37 = vpop.f32.mrb[63].mxu0  ;;  %7819 = vrcp.f32 %v4986_v58 }
 0x394   : > { %v7386_v1 = vpop.f32.mrb[63].mxu1  ;;  %v4987_v48 = vadd.f32 1.0, %v7810_v54  ;;  %v5108_v62 = vmax.f32 %v10081_v21, 0.0 }
 0x395   : > { %v6145_v29 = vmul.f32 -1.442695, %v10129_v24  ;;  %v10135_v50 = vadd.f32 %v10044_v36, %v4776_v34  ;;  %v7812_v46 = vpop.eup %7811  ;;  %v10924_v34 = vld [vmem:[#allocation27_spill] sm:$0xff] }
 0x396   : > { %7821 = vrcp.f32 %v4987_v48  ;;  %v10139_v25 = vsel %vm5146_vm7, %v7812_v46, %v5107_v9  ;;  %v5109_v46 = vmax.f32 %v10088_v52, 0.0 }
 0x397   : > { %7823 = vpow2.f32 %v6145_v29  ;;  %v6146_v31 = vmul.f32 -1.442695, %v10135_v50  ;;  %v4230_v6 = vpop.f32.mrb[64].mxu1  ;;  %v4647_v33 = vpop.f32.mrb[64].mxu0 }
 0x398   : > { %v7814_v18 = vpop.eup %7813  ;;  %v4354_v61 = vadd.f32 %v4230_v6, %v9898_v51  ;;  %v4777_v13 = vadd.f32 %v4647_v33, %v4352_v27  ;;  %v7389_v15 = vpop.f32.mrb[65].mxu1 }
 0x399   : > { %v7816_v22 = vpop.eup %7815  ;;  %v10145_v28 = vsel %vm5146_vm7, %v7814_v18, %v5108_v62  ;;  %7825 = vpow2.f32 %v6146_v31  ;;  %v7485_v49 = vpop.f32.mrb[65].mxu0  ;;  %v5110_v18 = vmax.f32 %v10095_v10, 0.0 }
 0x39a   : > { %v4988_v58 = vadd.f32 1.0, %v7816_v22  ;;  %v4233_v39 = vpop.f32.mrb[66].mxu1  ;;  %v4650_v21 = vpop.f32.mrb[66].mxu0  ;;  %v10149_v54 = vadd.f32 %v10044_v36, %v4777_v13 }
 0x39b   : > { %v7818_v30 = vpop.eup %7817  ;;  %v4355_v37 = vadd.f32 %v4233_v39, %v10924_v34  ;;  %v4778_v1 = vadd.f32 %v4650_v21, %v4353_v17  ;;  %v7486_v48 = vpop.f32.mrb[67].mxu0 }
 0x39c   : > { %v7390_v9 = vpop.f32.mrb[67].mxu1  ;;  %7827 = vrcp.f32 %v4988_v58  ;;  %v4989_v29 = vadd.f32 1.0, %v7818_v30  ;;  %v6147_v51 = vmul.f32 -1.442695, %v10149_v54 }
 0x39d   : > { %v10155_v27 = vadd.f32 %v10044_v36, %v4778_v1  ;;  %v7820_v62 = vpop.eup %7819 }
 0x39e   : > { %7829 = vrcp.f32 %v4989_v29  ;;  %v10159_v31 = vsel %vm5146_vm7, %v7820_v62, %v5109_v46  ;;  %v5111_v62 = vmax.f32 %v10109_v38, 0.0 }
 0x39f   : > { %7831 = vpow2.f32 %v6147_v51  ;;  %v6148_v17 = vmul.f32 -1.442695, %v10155_v27  ;;  %v4238_v33 = vpop.f32.mrb[68].mxu1  ;;  %v4655_v22 = vpop.f32.mrb[68].mxu0 }
 0x3a0   : > { %v7822_v6 = vpop.eup %7821  ;;  %v4356_v15 = vadd.f32 %v4238_v33, %v9915_v56  ;;  %v4779_v49 = vadd.f32 %v4655_v22, %v4354_v61  ;;  %v7393_v58 = vpop.f32.mrb[69].mxu1 }
 0x3a1   : > { %v7824_v52 = vpop.eup %7823  ;;  %v10165_v13 = vsel %vm5146_vm7, %v7822_v6, %v5110_v18  ;;  %7833 = vpow2.f32 %v6148_v17  ;;  %v7489_v39 = vpop.f32.mrb[69].mxu0 }
 0x3a2   : > { %v4990_v21 = vadd.f32 1.0, %v7824_v52  ;;  %v4241_v30 = vpop.f32.mrb[70].mxu1  ;;  %v4658_v10 = vpop.f32.mrb[70].mxu0  ;;  %v10169_v1 = vadd.f32 %v10044_v36, %v4779_v49 }
 0x3a3   : > { %v7826_v34 = vpop.eup %7825  ;;  %v4357_v48 = vadd.f32 %v4241_v30, %v9924_v2  ;;  %v4780_v9 = vadd.f32 %v4658_v10, %v4355_v37  ;;  %v7490_v29 = vpop.f32.mrb[71].mxu0  ;;  %v5112_v2 = vmax.f32 %v10115_v40, 0.0 }
 0x3a4   : > { %v7394_v46 = vpop.f32.mrb[71].mxu1  ;;  %7835 = vrcp.f32 %v4990_v21  ;;  %v4991_v51 = vadd.f32 1.0, %v7826_v34  ;;  %v6149_v56 = vmul.f32 -1.442695, %v10169_v1 }
 0x3a5   : > { %v10175_v61 = vadd.f32 %v10044_v36, %v4780_v9 }
 0x3a6   : > { %v7828_v18 = vpop.eup %7827  ;;  %7837 = vrcp.f32 %v4991_v51 }
 0x3a7   : > { %v10179_v17 = vsel %vm5146_vm7, %v7828_v18, %v5111_v62  ;;  %7839 = vpow2.f32 %v6149_v56  ;;  %v6150_v37 = vmul.f32 -1.442695, %v10175_v61  ;;  %v4246_v33 = vpop.f32.mrb[72].mxu1  ;;  %v4663_v22 = vpop.f32.mrb[72].mxu0  ;;  %v5113_v18 = vmax.f32 %v10129_v24, 0.0 }
 0x3a8   : > { %v7830_v6 = vpop.eup %7829  ;;  %v4358_v49 = vadd.f32 %v4246_v33, %v9932_v19  ;;  %v4781_v58 = vadd.f32 %v4663_v22, %v4356_v15  ;;  %v7397_v39 = vpop.f32.mrb[73].mxu1 }
 0x3a9   : > { %v7832_v38 = vpop.eup %7831  ;;  %v10185_v52 = vsel %vm5146_vm7, %v7830_v6, %v5112_v2  ;;  %7841 = vpow2.f32 %v6150_v37  ;;  %v7493_v21 = vpop.f32.mrb[73].mxu0 }
 0x3aa   : > { %v4992_v30 = vadd.f32 1.0, %v7832_v38  ;;  %v4249_v10 = vpop.f32.mrb[74].mxu1  ;;  %v4666_v40 = vpop.f32.mrb[74].mxu0  ;;  %v10189_v9 = vadd.f32 %v10044_v36, %v4781_v58 }
 0x3ab   : > { %v7834_v34 = vpop.eup %7833  ;;  %v4359_v29 = vadd.f32 %v4249_v10, %v9941_v23  ;;  %v4782_v46 = vadd.f32 %v4666_v40, %v4357_v48  ;;  %v7494_v51 = vpop.f32.mrb[75].mxu0  ;;  %v5114_v23 = vmax.f32 %v10135_v50, 0.0 }
 0x3ac   : > { %v7398_v62 = vpop.f32.mrb[75].mxu1  ;;  %7843 = vrcp.f32 %v4992_v30  ;;  %v4993_v56 = vadd.f32 1.0, %v7834_v34  ;;  %v6151_v19 = vmul.f32 -1.442695, %v10189_v9 }
 0x3ad   : > { %v10195_v15 = vadd.f32 %v10044_v36, %v4782_v46 }
 0x3ae   : > { %v7836_v2 = vpop.eup %7835  ;;  %7845 = vrcp.f32 %v4993_v56 }
 0x3af   : > { %v10199_v37 = vsel %vm5146_vm7, %v7836_v2, %v5113_v18  ;;  %7847 = vpow2.f32 %v6151_v19  ;;  %v6152_v48 = vmul.f32 -1.442695, %v10195_v15  ;;  %v4254_v33 = vpop.f32.mrb[76].mxu1  ;;  %v4671_v22 = vpop.f32.mrb[76].mxu0  ;;  %v5115_v2 = vmax.f32 %v10149_v54, 0.0 }
 0x3b0   : > { %v7838_v6 = vpop.eup %7837  ;;  %v4360_v58 = vadd.f32 %v4254_v33, %v9949_v41  ;;  %v4783_v39 = vadd.f32 %v4671_v22, %v4358_v49  ;;  %v7401_v21 = vpop.f32.mrb[77].mxu1 }
 0x3b1   : > { %v7840_v24 = vpop.eup %7839  ;;  %v10205_v38 = vsel %vm5146_vm7, %v7838_v6, %v5114_v23  ;;  %7849 = vpow2.f32 %v6152_v48  ;;  %v7497_v30 = vpop.f32.mrb[77].mxu0 }
 0x3b2   : > { %v4994_v10 = vadd.f32 1.0, %v7840_v24  ;;  %v4257_v40 = vpop.f32.mrb[78].mxu1  ;;  %v4674_v50 = vpop.f32.mrb[78].mxu0  ;;  %v10209_v46 = vadd.f32 %v10044_v36, %v4783_v39 }
 0x3b3   : > { %v7842_v34 = vpop.eup %7841  ;;  %v4361_v51 = vadd.f32 %v4257_v40, %v9958_v3  ;;  %v4784_v62 = vadd.f32 %v4674_v50, %v4359_v29  ;;  %v7498_v56 = vpop.f32.mrb[79].mxu0  ;;  %v5116_v3 = vmax.f32 %v10155_v27, 0.0 }
 0x3b4   : > { %v7402_v18 = vpop.f32.mrb[79].mxu1  ;;  %7851 = vrcp.f32 %v4994_v10  ;;  %v4995_v19 = vadd.f32 1.0, %v7842_v34  ;;  %v6153_v41 = vmul.f32 -1.442695, %v10209_v46 }
 0x3b5   : > { %v10215_v49 = vadd.f32 %v10044_v36, %v4784_v62 }
 0x3b6   : > { %v7844_v23 = vpop.eup %7843  ;;  %7853 = vrcp.f32 %v4995_v19 }
 0x3b7   : > { %v10219_v48 = vsel %vm5146_vm7, %v7844_v23, %v5115_v2  ;;  %7855 = vpow2.f32 %v6153_v41  ;;  %v6154_v29 = vmul.f32 -1.442695, %v10215_v49  ;;  %v4262_v33 = vpop.f32.mrb[80].mxu1  ;;  %v4679_v22 = vpop.f32.mrb[80].mxu0  ;;  %v5117_v23 = vmax.f32 %v10169_v1, 0.0 }
 0x3b8   : > { %v7846_v6 = vpop.eup %7845  ;;  %v4362_v39 = vadd.f32 %v4262_v33, %v9966_v8  ;;  %v4785_v21 = vadd.f32 %v4679_v22, %v4360_v58  ;;  %v7405_v30 = vpop.f32.mrb[81].mxu1 }
 0x3b9   : > { %v7848_v54 = vpop.eup %7847  ;;  %v10225_v24 = vsel %vm5146_vm7, %v7846_v6, %v5116_v3  ;;  %7857 = vpow2.f32 %v6154_v29  ;;  %v7501_v10 = vpop.f32.mrb[81].mxu0 }
 0x3ba   : > { %v4996_v40 = vadd.f32 1.0, %v7848_v54  ;;  %v4265_v50 = vpop.f32.mrb[82].mxu1  ;;  %v4682_v27 = vpop.f32.mrb[82].mxu0  ;;  %v10229_v62 = vadd.f32 %v10044_v36, %v4785_v21 }
 0x3bb   : > { %v7850_v34 = vpop.eup %7849  ;;  %v4363_v56 = vadd.f32 %v4265_v50, %v9976_v5  ;;  %v4786_v18 = vadd.f32 %v4682_v27, %v4361_v51  ;;  %v7502_v19 = vpop.f32.mrb[83].mxu0  ;;  %v5118_v5 = vmax.f32 %v10175_v61, 0.0 }
 0x3bc   : > { %v7406_v2 = vpop.f32.mrb[83].mxu1  ;;  %7859 = vrcp.f32 %v4996_v40  ;;  %v4997_v41 = vadd.f32 1.0, %v7850_v34  ;;  %v6155_v8 = vmul.f32 -1.442695, %v10229_v62 }
 0x3bd   : > { %v10235_v58 = vadd.f32 %v10044_v36, %v4786_v18 }
 0x3be   : > { %v7852_v3 = vpop.eup %7851  ;;  %7861 = vrcp.f32 %v4997_v41 }
 0x3bf   : > { %v10239_v29 = vsel %vm5146_vm7, %v7852_v3, %v5117_v23  ;;  %7863 = vpow2.f32 %v6155_v8  ;;  %v6156_v51 = vmul.f32 -1.442695, %v10235_v58  ;;  %v4270_v33 = vpop.f32.mrb[84].mxu1  ;;  %v4687_v22 = vpop.f32.mrb[84].mxu0  ;;  %v5119_v3 = vmax.f32 %v10189_v9, 0.0 }
 0x3c0   : > { %v7854_v6 = vpop.eup %7853  ;;  %v4364_v21 = vadd.f32 %v4270_v33, %v9984_v42  ;;  %v4787_v30 = vadd.f32 %v4687_v22, %v4362_v39  ;;  %v7409_v10 = vpop.f32.mrb[85].mxu1 }
 0x3c1   : > { %v7856_v1 = vpop.eup %7855  ;;  %v10245_v54 = vsel %vm5146_vm7, %v7854_v6, %v5118_v5  ;;  %7865 = vpow2.f32 %v6156_v51  ;;  %v7505_v40 = vpop.f32.mrb[85].mxu0 }
 0x3c2   : > { %v4998_v50 = vadd.f32 1.0, %v7856_v1  ;;  %v4273_v27 = vpop.f32.mrb[86].mxu1  ;;  %v4690_v61 = vpop.f32.mrb[86].mxu0  ;;  %v10249_v18 = vadd.f32 %v10044_v36, %v4787_v30 }
 0x3c3   : > { %v7858_v34 = vpop.eup %7857  ;;  %v4365_v19 = vadd.f32 %v4273_v27, %v9989_v11  ;;  %v4788_v2 = vadd.f32 %v4690_v61, %v4363_v56  ;;  %v7506_v41 = vpop.f32.mrb[87].mxu0  ;;  %v5120_v11 = vmax.f32 %v10195_v15, 0.0 }
 0x3c4   : > { %v7410_v23 = vpop.f32.mrb[87].mxu1  ;;  %7867 = vrcp.f32 %v4998_v50  ;;  %v4999_v8 = vadd.f32 1.0, %v7858_v34  ;;  %v6157_v42 = vmul.f32 -1.442695, %v10249_v18 }
 0x3c5   : > { %v10255_v39 = vadd.f32 %v10044_v36, %v4788_v2 }
 0x3c6   : > { %v7860_v5 = vpop.eup %7859  ;;  %7869 = vrcp.f32 %v4999_v8 }
 0x3c7   : > { %v10259_v51 = vsel %vm5146_vm7, %v7860_v5, %v5119_v3  ;;  %7871 = vpow2.f32 %v6157_v42  ;;  %v6158_v56 = vmul.f32 -1.442695, %v10255_v39  ;;  %v4278_v33 = vpop.f32.mrb[88].mxu1  ;;  %v4695_v22 = vpop.f32.mrb[88].mxu0  ;;  %v5121_v5 = vmax.f32 %v10209_v46, 0.0 }
 0x3c8   : > { %v7862_v6 = vpop.eup %7861  ;;  %v4366_v30 = vadd.f32 %v4278_v33, %v9996_v59  ;;  %v4789_v10 = vadd.f32 %v4695_v22, %v4364_v21  ;;  %v7413_v40 = vpop.f32.mrb[89].mxu1 }
 0x3c9   : > { %v7864_v9 = vpop.eup %7863  ;;  %v10265_v1 = vsel %vm5146_vm7, %v7862_v6, %v5120_v11  ;;  %7873 = vpow2.f32 %v6158_v56  ;;  %v7509_v50 = vpop.f32.mrb[89].mxu0 }
 0x3ca   : > { %v5000_v27 = vadd.f32 1.0, %v7864_v9  ;;  %v4281_v61 = vpop.f32.mrb[90].mxu1  ;;  %v4698_v15 = vpop.f32.mrb[90].mxu0  ;;  %v10269_v2 = vadd.f32 %v10044_v36, %v4789_v10 }
 0x3cb   : > { %v7866_v34 = vpop.eup %7865  ;;  %v4367_v41 = vadd.f32 %v4281_v61, %v10000_v35  ;;  %v4790_v23 = vadd.f32 %v4698_v15, %v4365_v19  ;;  %v7510_v8 = vpop.f32.mrb[91].mxu0  ;;  %v5122_v35 = vmax.f32 %v10215_v49, 0.0 }
 0x3cc   : > { %v7414_v3 = vpop.f32.mrb[91].mxu1  ;;  %7875 = vrcp.f32 %v5000_v27  ;;  %v5001_v42 = vadd.f32 1.0, %v7866_v34  ;;  %v6159_v59 = vmul.f32 -1.442695, %v10269_v2 }
 0x3cd   : > { %v10275_v21 = vadd.f32 %v10044_v36, %v4790_v23 }
 0x3ce   : > { %v7868_v11 = vpop.eup %7867  ;;  %7877 = vrcp.f32 %v5001_v42 }
 0x3cf   : > { %v10279_v56 = vsel %vm5146_vm7, %v7868_v11, %v5121_v5  ;;  %7879 = vpow2.f32 %v6159_v59  ;;  %v6160_v19 = vmul.f32 -1.442695, %v10275_v21  ;;  %v4286_v33 = vpop.f32.mrb[92].mxu1  ;;  %v4703_v22 = vpop.f32.mrb[92].mxu0  ;;  %v5123_v11 = vmax.f32 %v10229_v62, 0.0 }
 0x3d0   : > { %v7870_v6 = vpop.eup %7869  ;;  %v4368_v10 = vadd.f32 %v4286_v33, %v10005_v53  ;;  %v4791_v40 = vadd.f32 %v4703_v22, %v4366_v30  ;;  %v7417_v50 = vpop.f32.mrb[93].mxu1 }
 0x3d1   : > { %v7872_v46 = vpop.eup %7871  ;;  %v10285_v9 = vsel %vm5146_vm7, %v7870_v6, %v5122_v35  ;;  %7881 = vpow2.f32 %v6160_v19  ;;  %v7513_v27 = vpop.f32.mrb[93].mxu0 }
 0x3d2   : > { %v5002_v61 = vadd.f32 1.0, %v7872_v46  ;;  %v4289_v15 = vpop.f32.mrb[94].mxu1  ;;  %v4706_v49 = vpop.f32.mrb[94].mxu0  ;;  %v10289_v23 = vadd.f32 %v10044_v36, %v4791_v40 }
 0x3d3   : > { %v7874_v34 = vpop.eup %7873  ;;  %v4369_v8 = vadd.f32 %v4289_v15, %v10008_v43  ;;  %v4792_v3 = vadd.f32 %v4706_v49, %v4367_v41  ;;  %v7514_v42 = vpop.f32.mrb[95].mxu0  ;;  %v5124_v43 = vmax.f32 %v10235_v58, 0.0 }
 0x3d4   : > { %v7418_v5 = vpop.f32.mrb[95].mxu1  ;;  %7883 = vrcp.f32 %v5002_v61  ;;  %v5003_v59 = vadd.f32 1.0, %v7874_v34  ;;  %v6161_v53 = vmul.f32 -1.442695, %v10289_v23 }
 0x3d5   : > { %v10295_v30 = vadd.f32 %v10044_v36, %v4792_v3 }
 0x3d6   : > { %v7876_v35 = vpop.eup %7875  ;;  %7885 = vrcp.f32 %v5003_v59 }
 0x3d7   : > { %v10299_v19 = vsel %vm5146_vm7, %v7876_v35, %v5123_v11  ;;  %7887 = vpow2.f32 %v6161_v53  ;;  %v6162_v41 = vmul.f32 -1.442695, %v10295_v30  ;;  %v4294_v33 = vpop.f32.mrb[96].mxu1  ;;  %v4711_v22 = vpop.f32.mrb[96].mxu0  ;;  %v5125_v35 = vmax.f32 %v10249_v18, 0.0 }
 0x3d8   : > { %v7878_v6 = vpop.eup %7877  ;;  %v4370_v40 = vadd.f32 %v4294_v33, %v10011_v47  ;;  %v4793_v50 = vadd.f32 %v4711_v22, %v4368_v10  ;;  %v7421_v27 = vpop.f32.mrb[97].mxu1 }
 0x3d9   : > { %v7880_v62 = vpop.eup %7879  ;;  %v10305_v46 = vsel %vm5146_vm7, %v7878_v6, %v5124_v43  ;;  %7889 = vpow2.f32 %v6162_v41  ;;  %v7517_v61 = vpop.f32.mrb[97].mxu0 }
 0x3da   : > { %v5004_v15 = vadd.f32 1.0, %v7880_v62  ;;  %v4297_v49 = vpop.f32.mrb[98].mxu1  ;;  %v4714_v58 = vpop.f32.mrb[98].mxu0  ;;  %v10309_v3 = vadd.f32 %v10044_v36, %v4793_v50 }
 0x3db   : > { %v7882_v34 = vpop.eup %7881  ;;  %v4371_v42 = vadd.f32 %v4297_v49, %v10014_v7  ;;  %v4794_v5 = vadd.f32 %v4714_v58, %v4369_v8  ;;  %v7518_v59 = vpop.f32.mrb[99].mxu0  ;;  %v5126_v7 = vmax.f32 %v10255_v39, 0.0 }
 0x3dc   : > { %v7422_v11 = vpop.f32.mrb[99].mxu1  ;;  %7891 = vrcp.f32 %v5004_v15  ;;  %v5005_v53 = vadd.f32 1.0, %v7882_v34  ;;  %v6163_v47 = vmul.f32 -1.442695, %v10309_v3 }
 0x3dd   : > { %v10315_v10 = vadd.f32 %v10044_v36, %v4794_v5 }
 0x3de   : > { %v7884_v43 = vpop.eup %7883  ;;  %7893 = vrcp.f32 %v5005_v53 }
 0x3df   : > { %v10319_v41 = vsel %vm5146_vm7, %v7884_v43, %v5125_v35  ;;  %7895 = vpow2.f32 %v6163_v47  ;;  %v6164_v8 = vmul.f32 -1.442695, %v10315_v10  ;;  %v4302_v33 = vpop.f32.mrb[100].mxu1  ;;  %v4719_v22 = vpop.f32.mrb[100].mxu0  ;;  %v5127_v43 = vmax.f32 %v10269_v2, 0.0 }
 0x3e0   : > { %v7886_v6 = vpop.eup %7885  ;;  %v4372_v50 = vadd.f32 %v4302_v33, %v10017_v45  ;;  %v4795_v27 = vadd.f32 %v4719_v22, %v4370_v40  ;;  %v7425_v61 = vpop.f32.mrb[101].mxu1 }
 0x3e1   : > { %v7888_v18 = vpop.eup %7887  ;;  %v10325_v62 = vsel %vm5146_vm7, %v7886_v6, %v5126_v7  ;;  %7897 = vpow2.f32 %v6164_v8  ;;  %v7521_v15 = vpop.f32.mrb[101].mxu0 }
 0x3e2   : > { %v5006_v49 = vadd.f32 1.0, %v7888_v18  ;;  %v4305_v58 = vpop.f32.mrb[102].mxu1  ;;  %v4722_v39 = vpop.f32.mrb[102].mxu0  ;;  %v10329_v5 = vadd.f32 %v10044_v36, %v4795_v27 }
 0x3e3   : > { %v7890_v34 = vpop.eup %7889  ;;  %v4373_v59 = vadd.f32 %v4305_v58, %v10020_v12  ;;  %v4796_v11 = vadd.f32 %v4722_v39, %v4371_v42  ;;  %v7522_v53 = vpop.f32.mrb[103].mxu0  ;;  %v5128_v12 = vmax.f32 %v10275_v21, 0.0 }
 0x3e4   : > { %v7426_v35 = vpop.f32.mrb[103].mxu1  ;;  %7899 = vrcp.f32 %v5006_v49  ;;  %v5007_v47 = vadd.f32 1.0, %v7890_v34  ;;  %v6165_v45 = vmul.f32 -1.442695, %v10329_v5 }
 0x3e5   : > { %v10335_v40 = vadd.f32 %v10044_v36, %v4796_v11 }
 0x3e6   : > { %v7892_v7 = vpop.eup %7891  ;;  %7901 = vrcp.f32 %v5007_v47 }
 0x3e7   : > { %v10339_v8 = vsel %vm5146_vm7, %v7892_v7, %v5127_v43  ;;  %7903 = vpow2.f32 %v6165_v45  ;;  %v6166_v42 = vmul.f32 -1.442695, %v10335_v40  ;;  %v4310_v33 = vpop.f32.mrb[104].mxu1  ;;  %v4727_v22 = vpop.f32.mrb[104].mxu0  ;;  %v5129_v7 = vmax.f32 %v10289_v23, 0.0 }
 0x3e8   : > { %v7894_v6 = vpop.eup %7893  ;;  %v4374_v27 = vadd.f32 %v4310_v33, %v10023_v14  ;;  %v4797_v61 = vadd.f32 %v4727_v22, %v4372_v50  ;;  %v7429_v15 = vpop.f32.mrb[105].mxu1 }
 0x3e9   : > { %v7896_v2 = vpop.eup %7895  ;;  %v10345_v18 = vsel %vm5146_vm7, %v7894_v6, %v5128_v12  ;;  %7905 = vpow2.f32 %v6166_v42  ;;  %v7525_v49 = vpop.f32.mrb[105].mxu0 }
 0x3ea   : > { %v5008_v58 = vadd.f32 1.0, %v7896_v2  ;;  %v4313_v39 = vpop.f32.mrb[106].mxu1  ;;  %v4730_v21 = vpop.f32.mrb[106].mxu0  ;;  %v10349_v11 = vadd.f32 %v10044_v36, %v4797_v61 }
 0x3eb   : > { %v7898_v34 = vpop.eup %7897  ;;  %v4375_v53 = vadd.f32 %v4313_v39, %v10026_v20  ;;  %v4798_v35 = vadd.f32 %v4730_v21, %v4373_v59  ;;  %v7526_v47 = vpop.f32.mrb[107].mxu0  ;;  %v5130_v20 = vmax.f32 %v10295_v30, 0.0 }
 0x3ec   : > { %v7430_v43 = vpop.f32.mrb[107].mxu1  ;;  %7907 = vrcp.f32 %v5008_v58  ;;  %v5009_v45 = vadd.f32 1.0, %v7898_v34  ;;  %v6167_v14 = vmul.f32 -1.442695, %v10349_v11 }
 0x3ed   : > { %v10355_v50 = vadd.f32 %v10044_v36, %v4798_v35 }
 0x3ee   : > { %v7900_v12 = vpop.eup %7899  ;;  %7909 = vrcp.f32 %v5009_v45 }
 0x3ef   : > { %v10359_v42 = vsel %vm5146_vm7, %v7900_v12, %v5129_v7  ;;  %7911 = vpow2.f32 %v6167_v14  ;;  %v6168_v59 = vmul.f32 -1.442695, %v10355_v50  ;;  %v4318_v33 = vpop.f32.mrb[108].mxu1  ;;  %v4735_v22 = vpop.f32.mrb[108].mxu0  ;;  %v5131_v12 = vmax.f32 %v10309_v3, 0.0 }
 0x3f0   : > { %v7902_v6 = vpop.eup %7901  ;;  %v4376_v61 = vadd.f32 %v4318_v33, %v10029_v55  ;;  %v4799_v15 = vadd.f32 %v4735_v22, %v4374_v27  ;;  %v7433_v49 = vpop.f32.mrb[109].mxu1 }
 0x3f1   : > { %v7904_v23 = vpop.eup %7903  ;;  %v10365_v2 = vsel %vm5146_vm7, %v7902_v6, %v5130_v20  ;;  %7913 = vpow2.f32 %v6168_v59  ;;  %v7529_v58 = vpop.f32.mrb[109].mxu0 }
 0x3f2   : > { %v5010_v39 = vadd.f32 1.0, %v7904_v23  ;;  %v4321_v21 = vpop.f32.mrb[110].mxu1  ;;  %v4738_v30 = vpop.f32.mrb[110].mxu0  ;;  %v10369_v35 = vadd.f32 %v10044_v36, %v4799_v15 }
 0x3f3   : > { %v7906_v34 = vpop.eup %7905  ;;  %v4377_v47 = vadd.f32 %v4321_v21, %v10032_v32  ;;  %v4800_v43 = vadd.f32 %v4738_v30, %v4375_v53  ;;  %v7530_v45 = vpop.f32.mrb[111].mxu0  ;;  %v5132_v32 = vmax.f32 %v10315_v10, 0.0 }
 0x3f4   : > { %v7434_v7 = vpop.f32.mrb[111].mxu1  ;;  %7915 = vrcp.f32 %v5010_v39  ;;  %v5011_v14 = vadd.f32 1.0, %v7906_v34  ;;  %v6169_v55 = vmul.f32 -1.442695, %v10369_v35  ;;  %v7965_v34 = vld [vmem:[%s8074_s27] ss:$0 sm:$0xff] }
 0x3f5   : > { %v10375_v27 = vadd.f32 %v10044_v36, %v4800_v43 }
 0x3f6   : > { %v7908_v20 = vpop.eup %7907  ;;  %7917 = vrcp.f32 %v5011_v14 }
 0x3f7   : > { %v10379_v59 = vsel %vm5146_vm7, %v7908_v20, %v5131_v12  ;;  %7919 = vpow2.f32 %v6169_v55  ;;  %v6170_v53 = vmul.f32 -1.442695, %v10375_v27  ;;  %v4326_v33 = vpop.f32.mrb[112].mxu1  ;;  %v4743_v3 = vpop.f32.mrb[112].mxu0  ;;  %v5133_v20 = vmax.f32 %v10329_v5, 0.0 }
 0x3f8   : > { %v7910_v6 = vpop.eup %7909  ;;  %v4378_v23 = vadd.f32 %v4326_v33, %v10035_v26  ;;  %v4801_v15 = vadd.f32 %v4743_v3, %v4376_v61  ;;  %v7437_v49 = vpop.f32.mrb[113].mxu1 }
 0x3f9   : > { %v7912_v22 = vpop.eup %7911  ;;  %v10385_v36 = vsel %vm5146_vm7, %v7910_v6, %v5132_v32  ;;  %7921 = vpow2.f32 %v6170_v53  ;;  %v7533_v58 = vpop.f32.mrb[113].mxu0  ;;  %v5134_v6 = vmax.f32 %v10335_v40, 0.0 }
 0x3fa   : > { %v5012_v39 = vadd.f32 1.0, %v7912_v22  ;;  %v4329_v10 = vpop.f32.mrb[114].mxu1  ;;  %v4746_v21 = vpop.f32.mrb[114].mxu0  ;;  %v10389_v43 = vadd.f32 %v7965_v34, %v4801_v15 }
 0x3fb   : > { %v7914_v30 = vpop.eup %7913  ;;  %v4379_v45 = vadd.f32 %v4329_v10, %v10037_v16  ;;  %v4802_v7 = vadd.f32 %v4746_v21, %v4377_v47  ;;  %v7534_v14 = vpop.f32.mrb[115].mxu0 }
 0x3fc   : > { %v7438_v12 = vpop.f32.mrb[115].mxu1  ;;  %7923 = vrcp.f32 %v5012_v39  ;;  %v5013_v55 = vadd.f32 1.0, %v7914_v30  ;;  %v6171_v26 = vmul.f32 -1.442695, %v10389_v43 }
 0x3fd   : > { %v10394_v61 = vadd.f32 %v7965_v34, %v4802_v7 }
 0x3fe   : > { %v7916_v32 = vpop.eup %7915  ;;  %7925 = vrcp.f32 %v5013_v55 }
 0x3ff   : > { %v10398_v53 = vsel %vm5146_vm7, %v7916_v32, %v5133_v20  ;;  %7927 = vpow2.f32 %v6171_v26  ;;  %v6172_v16 = vmul.f32 -1.442695, %v10394_v61  ;;  %v4334_v33 = vpop.f32.mrb[116].mxu1  ;;  %v4751_v3 = vpop.f32.mrb[116].mxu0  ;;  %v5135_v26 = vmax.f32 %v10349_v11, 0.0 }
 0x400   : > { %v7918_v47 = vpop.eup %7917  ;;  %v4380_v15 = vadd.f32 %v4334_v33, %v10039_v44  ;;  %v4803_v49 = vadd.f32 %v4751_v3, %v4378_v23  ;;  %v7537_v58 = vpop.f32.mrb[117].mxu0  ;;  %v5136_v23 = vmax.f32 %v10355_v50, 0.0  ;;  %v5137_v50 = vmax.f32 %v10369_v35, 0.0 }
 0x401   : > { %v7920_v22 = vpop.eup %7919  ;;  %v10404_v5 = vsel %vm5146_vm7, %v7918_v47, %v5134_v6  ;;  %7929 = vpow2.f32 %v6172_v16  ;;  %v7441_v39 = vpop.f32.mrb[117].mxu1 }
 0x402   : > { %v5014_v10 = vadd.f32 1.0, %v7920_v22  ;;  %v4754_v21 = vpop.f32.mrb[118].mxu0  ;;  %v4337_v40 = vpop.f32.mrb[118].mxu1  ;;  %v4851_v7 = vadd.f32 %v7965_v34, %v4803_v49 }
 0x403   : > { %v7922_v30 = vpop.eup %7921  ;;  %v4804_v14 = vadd.f32 %v4754_v21, %v4379_v45  ;;  %v7538_v12 = vpop.f32.mrb[119].mxu0 }
 0x404   : > { %v7442_v55 = vpop.f32.mrb[119].mxu1  ;;  %7931 = vrcp.f32 %v5014_v10  ;;  %v5015_v20 = vadd.f32 1.0, %v7922_v30  ;;  %v6173_v32 = vmul.f32 -1.442695, %v4851_v7 }
 0x405   : > { %v4852_v6 = vadd.f32 %v7965_v34, %v4804_v14 }
 0x406   : > { %v7924_v16 = vpop.eup %7923  ;;  %7933 = vrcp.f32 %v5015_v20  ;;  %v5138_v20 = vmax.f32 %v10375_v27, 0.0  ;;  %v5140_v27 = vmax.f32 %v10394_v61, 0.0 }
 0x407   : > { %v10410_v44 = vsel %vm5146_vm7, %v7924_v16, %v5135_v26  ;;  %7935 = vpow2.f32 %v6173_v32  ;;  %v6174_v47 = vmul.f32 -1.442695, %v4852_v6  ;;  %v4759_v45 = vpop.f32.mrb[120].mxu0 }
 0x408   : > { %v7926_v33 = vpop.eup %7925  ;;  %v4805_v11 = vadd.f32 %v4759_v45, %v4380_v15  ;;  %v7541_v49 = vpop.f32.mrb[121].mxu0 }
 0x409   : > { %v7928_v3 = vpop.eup %7927  ;;  %v10415_v22 = vsel %vm5146_vm7, %v7926_v33, %v5136_v23  ;;  %7937 = vpow2.f32 %v6174_v47  ;;  %v4762_v39 = vpop.f32.mrb[122].mxu0  ;;  %v5139_v23 = vmax.f32 %v10389_v43, 0.0 }
 0x40a   : > { %v5016_v58 = vadd.f32 1.0, %v7928_v3  ;;  %v4853_v21 = vadd.f32 %v7965_v34, %v4805_v11  ;;  %v7542_v40 = vpop.f32.mrb[123].mxu0 }
 0x40b   : > { %v7930_v10 = vpop.eup %7929 }
 0x40c   : > { %7939 = vrcp.f32 %v5016_v58  ;;  %v5017_v30 = vadd.f32 1.0, %v7930_v10  ;;  %v6175_v14 = vmul.f32 -1.442695, %v4853_v21  ;;  %v5141_v58 = vmax.f32 %v4851_v7, 0.0  ;;  %v5194_v7 = vld [vmem:[%s10715_s3 + $0x10] sm:$0xff] (!%p6176_p11) }
 0x40d   : > { %v5142_v10 = vmax.f32 %v4852_v6, 0.0  ;;  %v5143_v61 = vmax.f32 %v4853_v21, 0.0  ;;  %v5192_v6 = vld [vmem:[%s10715_s3] sm:$0xff] (!%p6176_p11)  ;;  %v5193_v21 = vld [vmem:[%s10715_s3 + $0x8] sm:$0xff] (!%p6176_p11) }
 0x40e   : > { %v7932_v12 = vpop.eup %7931  ;;  %7941 = vrcp.f32 %v5017_v30 }
 0x40f   : > { %v10420_v55 = vsel %vm5146_vm7, %v7932_v12, %v5137_v50  ;;  %7943 = vpow2.f32 %v6175_v14  ;;  %v8011_v12 = vmov (!%p6176_p11), 0  }
 0x410   : > { %v7934_v15 = vpop.eup %7933  ;;  %7967 = vset.pattern.permute.xlu1 (!%p6176_p11), %v8011_v12  ;;  %7966 = vset.pattern.permute.xlu0 (!%p6176_p11), %v8011_v12  ;;  %v5217_v12 = vld [vmem:[%s10715_s3 + $0xc8] sm:$0xff] (!%p6176_p11) }
 0x411   : > { %v7936_v26 = vpop.eup %7935  ;;  %v10425_v34 = vsel %vm5146_vm7, %v7934_v15, %v5138_v20  ;;  %5245 = vperm.xlu1 (!%p6176_p11), %7967, %v5194_v7   ;;  %5235 = vperm.xlu0 (!%p6176_p11), %7966, %v5192_v6   ;;  %v5197_v20 = vld [vmem:[%s10715_s3 + $0x28] sm:$0xff] (!%p6176_p11)  ;;  %v5196_v15 = vld [vmem:[%s10715_s3 + $0x20] sm:$0xff] (!%p6176_p11)  ;;  %v5215_v7 = vld [vmem:[%s10715_s3 + $0xb8] sm:$0xff] (!%p6176_p11) }
 0x412   : > { %v5018_v32 = vadd.f32 1.0, %v7936_v26  ;;  %v5199_v26 = vld [vmem:[%s10715_s3 + $0x38] sm:$0xff] (!%p6176_p11)  ;;  %v5214_v6 = vld [vmem:[%s10715_s3 + $0xb0] sm:$0xff] (!%p6176_p11) }
 0x413   : > { %v7938_v16 = vpop.eup %7937 }
 0x414   : > { %7945 = vrcp.f32 %v5018_v32  ;;  %v5019_v35 = vadd.f32 1.0, %v7938_v16  ;;  %v5198_v32 = vld [vmem:[%s10715_s3 + $0x30] sm:$0xff] (!%p6176_p11)  ;;  %v5201_v16 = vld [vmem:[%s10715_s3 + $0x48] sm:$0xff] (!%p6176_p11) }
 0x415   : > { %5250 = vperm.xlu1 (!%p6176_p11), %7967, %v5195_v0   ;;  %5240 = vperm.xlu0 (!%p6176_p11), %7966, %v5193_v21   ;;  %v5216_v0 = vld [vmem:[%s10715_s3 + $0xc0] sm:$0xff] (!%p6176_p11)  ;;  %v5219_v21 = vld [vmem:[%s10715_s3 + $0xd8] sm:$0xff] (!%p6176_p11) }
 0x416   : > { %v7940_v47 = vpop.eup %7939  ;;  %7947 = vrcp.f32 %v5019_v35  ;;  %v5200_v35 = vld [vmem:[%s10715_s3 + $0x40] sm:$0xff] (!%p6176_p11) }
 0x417   : > { %v10430_v33 = vsel %vm5146_vm7, %v7940_v47, %v5139_v23  ;;  %v5203_v23 = vld [vmem:[%s10715_s3 + $0x58] sm:$0xff] (!%p6176_p11)  ;;  %v5202_v47 = vld [vmem:[%s10715_s3 + $0x50] sm:$0xff] (!%p6176_p11) }
 0x418   : > { %v7942_v45 = vpop.eup %7941 }
 0x419   : > { %v7944_v3 = vpop.eup %7943  ;;  %v10435_v11 = vsel %vm5146_vm7, %v7942_v45, %v5140_v27  ;;  %5260 = vperm.xlu1 (!%p6176_p11), %7967, %v5197_v20   ;;  %5255 = vperm.xlu0 (!%p6176_p11), %7966, %v5196_v15   ;;  %v5205_v27 = vld [vmem:[%s10715_s3 + $0x68] sm:$0xff] (!%p6176_p11)  ;;  %v5204_v45 = vld [vmem:[%s10715_s3 + $0x60] sm:$0xff] (!%p6176_p11)  ;;  %v5218_v20 = vld [vmem:[%s10715_s3 + $0xd0] sm:$0xff] (!%p6176_p11) }
 0x41a   : > { %v5020_v49 = vadd.f32 1.0, %v7944_v3  ;;  %v5207_v3 = vld [vmem:[%s10715_s3 + $0x78] sm:$0xff] (!%p6176_p11)  ;;  %v5221_v15 = vld [vmem:[%s10715_s3 + $0xe8] sm:$0xff] (!%p6176_p11) }
 0x41c   : > { %7949 = vrcp.f32 %v5020_v49  ;;  %v5206_v49 = vld [vmem:[%s10715_s3 + $0x70] sm:$0xff] (!%p6176_p11) }
 0x41d   : > { %5270 = vperm.xlu1 (!%p6176_p11), %7967, %v5199_v26   ;;  %5265 = vperm.xlu0 (!%p6176_p11), %7966, %v5198_v32   ;;  %v5220_v26 = vld [vmem:[%s10715_s3 + $0xe0] sm:$0xff] (!%p6176_p11)  ;;  %v5223_v32 = vld [vmem:[%s10715_s3 + $0xf8] sm:$0xff] (!%p6176_p11) }
 0x41e   : > { %v7946_v39 = vpop.eup %7945 }
 0x41f   : > { %v10439_v43 = vsel %vm5146_vm7, %v7946_v39, %v5141_v58  ;;  %v5209_v58 = vld [vmem:[%s10715_s3 + $0x88] sm:$0xff] (!%p6176_p11)  ;;  %v5208_v39 = vld [vmem:[%s10715_s3 + $0x80] sm:$0xff] (!%p6176_p11) }
 0x420   : > { %v7948_v40 = vpop.eup %7947 }
 0x421   : > { %v10443_v30 = vsel %vm5146_vm7, %v7948_v40, %v5142_v10  ;;  %5191 = sbr.rel (%p6176_p11) target bundleno = 1254 (0x4e6), region = 44  ;;  %5280 = vperm.xlu1 (!%p6176_p11), %7967, %v5201_v16   ;;  %5275 = vperm.xlu0 (!%p6176_p11), %7966, %v5200_v35   ;;  %v5211_v10 = vld [vmem:[%s10715_s3 + $0x98] sm:$0xff] (!%p6176_p11)  ;;  %v5210_v40 = vld [vmem:[%s10715_s3 + $0x90] sm:$0xff] (!%p6176_p11)  ;;  %v5225_v35 = vld [vmem:[%s10715_s3 + $0x108] sm:$0xff] (!%p6176_p11) }
 0x422   : > { %v5222_v16 = vld [vmem:[%s10715_s3 + $0xf0] sm:$0xff] (!%p6176_p11) }
 0x425   : > { %5290 = vperm.xlu1 (!%p6176_p11), %7967, %v5203_v23   ;;  %5285 = vperm.xlu0 (!%p6176_p11), %7966, %v5202_v47   ;;  %v5224_v23 = vld [vmem:[%s10715_s3 + $0x100] sm:$0xff] (!%p6176_p11)  ;;  %v5227_v47 = vld [vmem:[%s10715_s3 + $0x118] sm:$0xff] (!%p6176_p11) }
 0x426   : > { %v7950_v50 = vpop.eup %7949 }
 0x427   : > { %v10447_v14 = vsel %vm5146_vm7, %v7950_v50, %v5143_v61  ;;  %v5213_v61 = vld [vmem:[%s10715_s3 + $0xa8] sm:$0xff] (!%p6176_p11)  ;;  %v5212_v50 = vld [vmem:[%s10715_s3 + $0xa0] sm:$0xff] (!%p6176_p11) }
 0x429   : > { %5300 = vperm.xlu1 %7967, %v5205_v27   ;;  %5295 = vperm.xlu0 %7966, %v5204_v45   ;;  %v5226_v27 = vld [vmem:[%s10715_s3 + $0x110] sm:$0xff]  ;;  %v5229_v45 = vld [vmem:[%s10715_s3 + $0x128] sm:$0xff] }
 0x42d   : > { %5310 = vperm.xlu1 %7967, %v5207_v3   ;;  %5305 = vperm.xlu0 %7966, %v5206_v49   ;;  %v5228_v3 = vld [vmem:[%s10715_s3 + $0x120] sm:$0xff]  ;;  %v5231_v49 = vld [vmem:[%s10715_s3 + $0x138] sm:$0xff] }
 0x431   : > { %5320 = vperm.xlu1 %7967, %v5209_v58   ;;  %5315 = vperm.xlu0 %7966, %v5208_v39   ;;  %v5230_v58 = vld [vmem:[%s10715_s3 + $0x130] sm:$0xff]  ;;  %v5232_v39 = vld [vmem:[%s10715_s3 + $0x140] sm:$0xff] }
 0x435   : > { %5330 = vperm.xlu1 %7967, %v5211_v10   ;;  %5325 = vperm.xlu0 %7966, %v5210_v40  }
 0x439   : > { %5340 = vperm.xlu1 %7967, %v5213_v61   ;;  %5335 = vperm.xlu0 %7966, %v5212_v50  }
 0x43d   : > { %5350 = vperm.xlu1 %7967, %v5215_v7   ;;  %5345 = vperm.xlu0 %7966, %v5214_v6  }
 0x441   : > { %5360 = vperm.xlu1 %7967, %v5217_v12   ;;  %5355 = vperm.xlu0 %7966, %v5216_v0  }
 0x445   : > { %5370 = vperm.xlu1 %7967, %v5219_v21   ;;  %5365 = vperm.xlu0 %7966, %v5218_v20  }
 0x449   : > { %5380 = vperm.xlu1 %7967, %v5221_v15   ;;  %5375 = vperm.xlu0 %7966, %v5220_v26  }
 0x44d   : > { %5390 = vperm.xlu1 %7967, %v5223_v32   ;;  %5385 = vperm.xlu0 %7966, %v5222_v16  }
 0x451   : > { %5400 = vperm.xlu1 %7967, %v5225_v35   ;;  %5395 = vperm.xlu0 %7966, %v5224_v23  }
 0x455   : > { %5410 = vperm.xlu1 %7967, %v5227_v47   ;;  %5405 = vperm.xlu0 %7966, %v5226_v27  }
 0x459   : > { %5420 = vperm.xlu1 %7967, %v5229_v45   ;;  %5415 = vperm.xlu0 %7966, %v5228_v3  }
 0x45d   : > { %5430 = vperm.xlu1 %7967, %v5231_v49   ;;  %5425 = vperm.xlu0 %7966, %v5230_v58  }
 0x461   : > { %5435 = vperm.xlu0 %7966, %v5232_v39  }
 0x490   : > { %v5246_v10 = vpop.permute.xlu1 %5245  ;;  %v5236_v40 = vpop.permute.xlu0 %5235 }
 0x491   : > { %v5438_v61 = vmul.f32 %v5236_v40, %v10099_v60  ;;  %v5440_v50 = vmul.f32 %v5246_v10, %v10119_v57 }
 0x493   : > { %v6221_v7 = vpack.c.bf16 %v5438_v61, %v5438_v61 }
 0x494   : > { %v5251_v6 = vpop.permute.xlu1 %5250  ;;  %v5241_v12 = vpop.permute.xlu0 %5240 }
 0x495   : > { %5644 = vst [vmem:[#allocation2 + $0xc] sm:$0xf] %v6221_v7  ;;  %v5439_v0 = vmul.f32 %v5241_v12, %v10105_v4  ;;  %v5441_v26 = vmul.f32 %v5251_v6, %v10125_v63 }
 0x497   : > { %v6265_v21 = vpack.c.bf16 %v5440_v50, %v5439_v0 }
 0x498   : > { %v5261_v20 = vpop.permute.xlu1 %5260  ;;  %v5256_v15 = vpop.permute.xlu0 %5255 }
 0x499   : > { %6362 = vst [vmem:[#allocation2 + $0x10] sm:$0xff] %v6265_v21   ;;  %v5442_v32 = vmul.f32 %v5256_v15, %v10139_v25  ;;  %v5443_v47 = vmul.f32 %v5261_v20, %v10145_v28 }
 0x49b   : > { %v6270_v16 = vpack.c.bf16 %v5442_v32, %v5441_v26 }
 0x49c   : > { %v5271_v35 = vpop.permute.xlu1 %5270  ;;  %v5266_v23 = vpop.permute.xlu0 %5265 }
 0x49d   : > { %6363 = vst [vmem:[#allocation2 + $0x18] sm:$0xff] %v6270_v16   ;;  %v5444_v27 = vmul.f32 %v5266_v23, %v10159_v31  ;;  %v5445_v58 = vmul.f32 %v5271_v35, %v10165_v13 }
 0x49f   : > { %v6275_v45 = vpack.c.bf16 %v5444_v27, %v5443_v47 }
 0x4a0   : > { %v5281_v3 = vpop.permute.xlu1 %5280  ;;  %v5276_v49 = vpop.permute.xlu0 %5275 }
 0x4a1   : > { %6364 = vst [vmem:[#allocation2 + $0x20] sm:$0xff] %v6275_v45   ;;  %v5446_v39 = vmul.f32 %v5276_v49, %v10179_v17  ;;  %v5447_v50 = vmul.f32 %v5281_v3, %v10185_v52 }
 0x4a3   : > { %v6280_v10 = vpack.c.bf16 %v5446_v39, %v5445_v58 }
 0x4a4   : > { %v5291_v40 = vpop.permute.xlu1 %5290  ;;  %v5286_v61 = vpop.permute.xlu0 %5285 }
 0x4a5   : > { %6365 = vst [vmem:[#allocation2 + $0x28] sm:$0xff] %v6280_v10   ;;  %v5448_v7 = vmul.f32 %v5286_v61, %v10199_v37  ;;  %v5449_v21 = vmul.f32 %v5291_v40, %v10205_v38 }
 0x4a7   : > { %v6285_v6 = vpack.c.bf16 %v5448_v7, %v5447_v50 }
 0x4a8   : > { %v5301_v12 = vpop.permute.xlu1 %5300  ;;  %v5296_v0 = vpop.permute.xlu0 %5295 }
 0x4a9   : > { %6366 = vst [vmem:[#allocation2 + $0x30] sm:$0xff] %v6285_v6   ;;  %v5450_v20 = vmul.f32 %v5296_v0, %v10219_v48  ;;  %v5451_v16 = vmul.f32 %v5301_v12, %v10225_v24 }
 0x4ab   : > { %v6290_v15 = vpack.c.bf16 %v5450_v20, %v5449_v21 }
 0x4ac   : > { %v5311_v26 = vpop.permute.xlu1 %5310  ;;  %v5306_v32 = vpop.permute.xlu0 %5305 }
 0x4ad   : > { %6367 = vst [vmem:[#allocation2 + $0x38] sm:$0xff] %v6290_v15   ;;  %v5452_v35 = vmul.f32 %v5306_v32, %v10239_v29  ;;  %v5453_v45 = vmul.f32 %v5311_v26, %v10245_v54 }
 0x4af   : > { %v6295_v23 = vpack.c.bf16 %v5452_v35, %v5451_v16 }
 0x4b0   : > { %v5321_v47 = vpop.permute.xlu1 %5320  ;;  %v5316_v27 = vpop.permute.xlu0 %5315 }
 0x4b1   : > { %6368 = vst [vmem:[#allocation2 + $0x40] sm:$0xff] %v6295_v23   ;;  %v5454_v3 = vmul.f32 %v5316_v27, %v10259_v51  ;;  %v5455_v10 = vmul.f32 %v5321_v47, %v10265_v1 }
 0x4b3   : > { %v6300_v49 = vpack.c.bf16 %v5454_v3, %v5453_v45 }
 0x4b4   : > { %v5331_v58 = vpop.permute.xlu1 %5330  ;;  %v5326_v39 = vpop.permute.xlu0 %5325 }
 0x4b5   : > { %6369 = vst [vmem:[#allocation2 + $0x48] sm:$0xff] %v6300_v49   ;;  %v5456_v40 = vmul.f32 %v5326_v39, %v10279_v56  ;;  %v5457_v6 = vmul.f32 %v5331_v58, %v10285_v9 }
 0x4b7   : > { %v6305_v61 = vpack.c.bf16 %v5456_v40, %v5455_v10 }
 0x4b8   : > { %v5341_v50 = vpop.permute.xlu1 %5340  ;;  %v5336_v7 = vpop.permute.xlu0 %5335 }
 0x4b9   : > { %6370 = vst [vmem:[#allocation2 + $0x50] sm:$0xff] %v6305_v61   ;;  %v5458_v12 = vmul.f32 %v5336_v7, %v10299_v19  ;;  %v5459_v15 = vmul.f32 %v5341_v50, %v10305_v46 }
 0x4bb   : > { %v6310_v0 = vpack.c.bf16 %v5458_v12, %v5457_v6 }
 0x4bc   : > { %v5351_v21 = vpop.permute.xlu1 %5350  ;;  %v5346_v20 = vpop.permute.xlu0 %5345 }
 0x4bd   : > { %6371 = vst [vmem:[#allocation2 + $0x58] sm:$0xff] %v6310_v0   ;;  %v5460_v26 = vmul.f32 %v5346_v20, %v10319_v41  ;;  %v5461_v23 = vmul.f32 %v5351_v21, %v10325_v62 }
 0x4bf   : > { %v6315_v32 = vpack.c.bf16 %v5460_v26, %v5459_v15 }
 0x4c0   : > { %v5361_v16 = vpop.permute.xlu1 %5360  ;;  %v5356_v35 = vpop.permute.xlu0 %5355 }
 0x4c1   : > { %6372 = vst [vmem:[#allocation2 + $0x60] sm:$0xff] %v6315_v32   ;;  %v5462_v47 = vmul.f32 %v5356_v35, %v10339_v8  ;;  %v5463_v49 = vmul.f32 %v5361_v16, %v10345_v18 }
 0x4c3   : > { %v6320_v27 = vpack.c.bf16 %v5462_v47, %v5461_v23 }
 0x4c4   : > { %v5371_v45 = vpop.permute.xlu1 %5370  ;;  %v5366_v3 = vpop.permute.xlu0 %5365 }
 0x4c5   : > { %6373 = vst [vmem:[#allocation2 + $0x68] sm:$0xff] %v6320_v27   ;;  %v5464_v58 = vmul.f32 %v5366_v3, %v10359_v42  ;;  %v5465_v61 = vmul.f32 %v5371_v45, %v10365_v2 }
 0x4c7   : > { %v6325_v39 = vpack.c.bf16 %v5464_v58, %v5463_v49 }
 0x4c8   : > { %v5381_v10 = vpop.permute.xlu1 %5380  ;;  %v5376_v40 = vpop.permute.xlu0 %5375 }
 0x4c9   : > { %6374 = vst [vmem:[#allocation2 + $0x70] sm:$0xff] %v6325_v39   ;;  %v5466_v50 = vmul.f32 %v5376_v40, %v10379_v59  ;;  %v5467_v0 = vmul.f32 %v5381_v10, %v10385_v36 }
 0x4cb   : > { %v6330_v7 = vpack.c.bf16 %v5466_v50, %v5465_v61 }
 0x4cc   : > { %v5391_v6 = vpop.permute.xlu1 %5390  ;;  %v5386_v12 = vpop.permute.xlu0 %5385 }
 0x4cd   : > { %6375 = vst [vmem:[#allocation2 + $0x78] sm:$0xff] %v6330_v7   ;;  %v5468_v21 = vmul.f32 %v5386_v12, %v10398_v53  ;;  %v5469_v32 = vmul.f32 %v5391_v6, %v10404_v5 }
 0x4cf   : > { %v6335_v20 = vpack.c.bf16 %v5468_v21, %v5467_v0 }
 0x4d0   : > { %v5401_v15 = vpop.permute.xlu1 %5400  ;;  %v5396_v26 = vpop.permute.xlu0 %5395 }
 0x4d1   : > { %6376 = vst [vmem:[#allocation2 + $0x80] sm:$0xff] %v6335_v20   ;;  %v5470_v16 = vmul.f32 %v5396_v26, %v10410_v44  ;;  %v5471_v27 = vmul.f32 %v5401_v15, %v10415_v22 }
 0x4d3   : > { %v6340_v35 = vpack.c.bf16 %v5470_v16, %v5469_v32 }
 0x4d4   : > { %v5411_v23 = vpop.permute.xlu1 %5410  ;;  %v5406_v47 = vpop.permute.xlu0 %5405 }
 0x4d5   : > { %6377 = vst [vmem:[#allocation2 + $0x88] sm:$0xff] %v6340_v35   ;;  %v5472_v45 = vmul.f32 %v5406_v47, %v10420_v55  ;;  %v5473_v39 = vmul.f32 %v5411_v23, %v10425_v34 }
 0x4d7   : > { %v6345_v3 = vpack.c.bf16 %v5472_v45, %v5471_v27 }
 0x4d8   : > { %v5421_v49 = vpop.permute.xlu1 %5420  ;;  %v5416_v58 = vpop.permute.xlu0 %5415 }
 0x4d9   : > { %6378 = vst [vmem:[#allocation2 + $0x90] sm:$0xff] %v6345_v3   ;;  %v5474_v10 = vmul.f32 %v5416_v58, %v10430_v33  ;;  %v5475_v50 = vmul.f32 %v5421_v49, %v10435_v11 }
 0x4db   : > { %v6350_v40 = vpack.c.bf16 %v5474_v10, %v5473_v39 }
 0x4dc   : > { %v5426_v61 = vpop.permute.xlu0 %5425  ;;  %v5431_v6 = vpop.permute.xlu1 %5430 }
 0x4dd   : > { %6379 = vst [vmem:[#allocation2 + $0x98] sm:$0xff] %v6350_v40   ;;  %v5476_v7 = vmul.f32 %v5426_v61, %v10439_v43  ;;  %v5477_v21 = vmul.f32 %v5431_v6, %v10443_v30 }
 0x4df   : > { %v6355_v12 = vpack.c.bf16 %v5476_v7, %v5475_v50 }
 0x4e0   : > { %v5436_v0 = vpop.permute.xlu0 %5435 }
 0x4e1   : > { %6380 = vst [vmem:[#allocation2 + $0xa0] sm:$0xff] %v6355_v12   ;;  %v5478_v20 = vmul.f32 %v5436_v0, %v10447_v14 }
 0x4e3   : > { %v6360_v15 = vpack.c.bf16 %v5478_v20, %v5477_v21 }
 0x4e5   : > { %6381 = vst [vmem:[#allocation2 + $0xa8] sm:$0xff] %v6360_v15  }
 0x4e6 PF: > { %p6218_p12 = scmp.ne.s32.totalorder %s7990_s15, 7 }
 0x4e7   : > { %5688 = vst [vmem:[%s8089_s11] sm:$0xff] (!%p6218_p12), %v10099_v60  ;;  %5689 = vst [vmem:[%s8089_s11 + $0x8] sm:$0xff] (!%p6218_p12), %v10105_v4 }
 0x4e8   : > { %5687 = sbr.rel (%p6218_p12) target bundleno = 1276 (0x4fc), region = 48  ;;  %5690 = vst [vmem:[%s8089_s11 + $0x10] sm:$0xff] (!%p6218_p12), %v10119_v57  ;;  %5691 = vst [vmem:[%s8089_s11 + $0x18] sm:$0xff] (!%p6218_p12), %v10125_v63 }
 0x4e9   : > { %5692 = vst [vmem:[%s8089_s11 + $0x20] sm:$0xff] (!%p6218_p12), %v10139_v25  ;;  %5693 = vst [vmem:[%s8089_s11 + $0x28] sm:$0xff] (!%p6218_p12), %v10145_v28 }
 0x4ea   : > { %5694 = vst [vmem:[%s8089_s11 + $0x30] sm:$0xff] (!%p6218_p12), %v10159_v31  ;;  %5695 = vst [vmem:[%s8089_s11 + $0x38] sm:$0xff] (!%p6218_p12), %v10165_v13 }
 0x4eb   : > { %5696 = vst [vmem:[%s8089_s11 + $0x40] sm:$0xff] (!%p6218_p12), %v10179_v17  ;;  %5697 = vst [vmem:[%s8089_s11 + $0x48] sm:$0xff] (!%p6218_p12), %v10185_v52 }
 0x4ec   : > { %5698 = vst [vmem:[%s8089_s11 + $0x50] sm:$0xff] (!%p6218_p12), %v10199_v37  ;;  %5699 = vst [vmem:[%s8089_s11 + $0x58] sm:$0xff] (!%p6218_p12), %v10205_v38 }
 0x4ed   : > { %5700 = vst [vmem:[%s8089_s11 + $0x60] sm:$0xff] (!%p6218_p12), %v10219_v48  ;;  %5701 = vst [vmem:[%s8089_s11 + $0x68] sm:$0xff] (!%p6218_p12), %v10225_v24 }
 0x4ee   : > { %5702 = vst [vmem:[%s8089_s11 + $0x70] sm:$0xff] (!%p6218_p12), %v10239_v29  ;;  %5703 = vst [vmem:[%s8089_s11 + $0x78] sm:$0xff] (!%p6218_p12), %v10245_v54 }
 0x4ef   : > { %5704 = vst [vmem:[%s8089_s11 + $0x80] sm:$0xff] %v10259_v51  ;;  %5705 = vst [vmem:[%s8089_s11 + $0x88] sm:$0xff] %v10265_v1 }
 0x4f0   : > { %5706 = vst [vmem:[%s8089_s11 + $0x90] sm:$0xff] %v10279_v56  ;;  %5707 = vst [vmem:[%s8089_s11 + $0x98] sm:$0xff] %v10285_v9 }
 0x4f1   : > { %5708 = vst [vmem:[%s8089_s11 + $0xa0] sm:$0xff] %v10299_v19  ;;  %5709 = vst [vmem:[%s8089_s11 + $0xa8] sm:$0xff] %v10305_v46 }
 0x4f2   : > { %5710 = vst [vmem:[%s8089_s11 + $0xb0] sm:$0xff] %v10319_v41  ;;  %5711 = vst [vmem:[%s8089_s11 + $0xb8] sm:$0xff] %v10325_v62 }
 0x4f3   : > { %5712 = vst [vmem:[%s8089_s11 + $0xc0] sm:$0xff] %v10339_v8  ;;  %5713 = vst [vmem:[%s8089_s11 + $0xc8] sm:$0xff] %v10345_v18 }
 0x4f4   : > { %5714 = vst [vmem:[%s8089_s11 + $0xd0] sm:$0xff] %v10359_v42  ;;  %5715 = vst [vmem:[%s8089_s11 + $0xd8] sm:$0xff] %v10365_v2 }
 0x4f5   : > { %5716 = vst [vmem:[%s8089_s11 + $0xe0] sm:$0xff] %v10379_v59  ;;  %5717 = vst [vmem:[%s8089_s11 + $0xe8] sm:$0xff] %v10385_v36 }
 0x4f6   : > { %5718 = vst [vmem:[%s8089_s11 + $0xf0] sm:$0xff] %v10398_v53  ;;  %5719 = vst [vmem:[%s8089_s11 + $0xf8] sm:$0xff] %v10404_v5 }
 0x4f7   : > { %5720 = vst [vmem:[%s8089_s11 + $0x100] sm:$0xff] %v10410_v44  ;;  %5721 = vst [vmem:[%s8089_s11 + $0x108] sm:$0xff] %v10415_v22 }
 0x4f8   : > { %5722 = vst [vmem:[%s8089_s11 + $0x110] sm:$0xff] %v10420_v55  ;;  %5723 = vst [vmem:[%s8089_s11 + $0x118] sm:$0xff] %v10425_v34 }
 0x4f9   : > { %5724 = vst [vmem:[%s8089_s11 + $0x120] sm:$0xff] %v10430_v33  ;;  %5725 = vst [vmem:[%s8089_s11 + $0x128] sm:$0xff] %v10435_v11 }
 0x4fa   : > { %5726 = vst [vmem:[%s8089_s11 + $0x130] sm:$0xff] %v10439_v43  ;;  %5727 = vst [vmem:[%s8089_s11 + $0x138] sm:$0xff] %v10443_v30 }
 0x4fb   : > { %5728 = vst [vmem:[%s8089_s11 + $0x140] sm:$0xff] %v10447_v14 }
 0x4fc PF: > { %s14_s19 = sadd.s32 1, %s8006_s19   ;;  %s10925_s15 = smov %s7998_s17 }
 0x4fd   : > { %p11_p13 = scmp.ge.s32.totalorder %s14_s19, 18   ;;  %s10926_s16 = smov %s8002_s18 }
 0x4fe   : > { %s10927_s17 = smov %s10930_s20  ;;  %s10928_s18 = smov %s10934_s21 }
 0x4ff   :  { %13 = sbr.rel (!%p11_p13) target bundleno = 3 (0x3), region = 92 }

</bundles_post_ra>
